<compile_context>
chip_gen: v6e
topology: v6e:2x2x1
jax: 0.10.0
libtpu: 0.0.40
codegen_flags: <defaults>
</compile_context>

<pallas_src>
import functools

import jax
import jax.numpy as jnp
from jax.experimental import pallas as pl
from jax.experimental.pallas import tpu as pltpu

_LANE = 128


def _round_up(x, m):
    return ((x + m - 1) // m) * m


def _pick_batch_block(batch, requested=None):
    """How many batches to fold into a single grid step.

    Folding the batch amortizes the ~0.35us per-grid-step pipeline cost (these
    kernels are launch/DMA bound, not MXU bound).  We keep >=2 grid steps when
    possible so both TensorCores of a v7x chip get work; on v5e/v6e the grid is
    a serial loop, so the one extra step is negligible.
    """
    if requested is not None:
        assert batch % requested == 0
        return requested
    if batch >= 2 and batch % 2 == 0:
        return batch // 2
    return batch


# ---------------------------------------------------------------------------
# Kernel 1: class prototypes from the support set
# ---------------------------------------------------------------------------
def _prototype_kernel(targets_ref, reps_ref, inv_ref, proto_ref):
    # targets_ref: (Bb, S*L, NT_pad) bf16 one-hot (exact in bf16)
    # reps_ref   : (Bb, S*L, D)      bf16
    # inv_ref    : (Bb, NT_pad, 1)   f32   (1 / (tag_count + 1e-4))
    # proto_ref  : (Bb, NT_pad, D)   f32
    sum_reps = jax.lax.dot_general(
        targets_ref[...], reps_ref[...],
        dimension_numbers=(((1,), (1,)), ((0,), (0,))),
        preferred_element_type=jnp.float32)            # (Bb, NT_pad, D)
    # Lane-broadcast multiply by the reciprocal tag count.
    proto_ref[...] = sum_reps * inv_ref[...]


def compute_prototypes(targets_padded, support_reps, *, num_batch_blocks=None):
    """targets_padded: (B,S,L,NT_pad) f32; support_reps: (B,S,L,D) -> (B,NT_pad,D) f32."""
    batch, s, l, nt_pad = targets_padded.shape
    dim = support_reps.shape[-1]
    sl = s * l
    targets = targets_padded.reshape(batch, sl, nt_pad).astype(jnp.bfloat16)
    reps = support_reps.reshape(batch, sl, dim).astype(jnp.bfloat16)
    # remove_0: +1e-4 avoids division by zero (also zeroes padded tag rows).
    tag_count = jnp.sum(targets_padded, axis=(1, 2))                 # (B, NT_pad)
    inv_count = (1.0 / (tag_count + 1e-4))[..., None]                # (B, NT_pad, 1)
    bb = _pick_batch_block(batch, num_batch_blocks)
    # TODO(synk): at production scale (large S*L*D) add an "arbitrary" grid axis
    # over S*L with an accumulator scratch instead of one full block per step
    # (v7x only has 64 MiB physical VMEM) and set vmem_limit_bytes explicitly.
    return pl.pallas_call(
        _prototype_kernel,
        out_shape=jax.ShapeDtypeStruct((batch, nt_pad, dim), jnp.float32),
        grid=(batch // bb,),
        in_specs=[
            pl.BlockSpec((bb, sl, nt_pad), lambda b: (b, 0, 0)),
            pl.BlockSpec((bb, sl, dim), lambda b: (b, 0, 0)),
            pl.BlockSpec((bb, nt_pad, 1), lambda b: (b, 0, 0)),
        ],
        out_specs=pl.BlockSpec((bb, nt_pad, dim), lambda b: (b, 0, 0)),
        compiler_params=pltpu.CompilerParams(
            dimension_semantics=("parallel",)),
    )(targets, reps, inv_count)


def prototypes_reference(targets_padded, support_reps):
    """Pure-JAX equivalent of the prototype kernel (same bf16/f32 numerics)."""
    batch, s, l, nt_pad = targets_padded.shape
    dim = support_reps.shape[-1]
    t = targets_padded.reshape(batch, s * l, nt_pad).astype(jnp.bfloat16)
    r = support_reps.reshape(batch, s * l, dim).astype(jnp.bfloat16)
    sum_reps = jnp.einsum('bln,bld->bnd', t, r,
                          preferred_element_type=jnp.float32)
    tag_count = jnp.sum(targets_padded, axis=(1, 2))
    inv_count = (1.0 / (tag_count + 1e-4))[..., None]
    return sum_reps * inv_count


# ---------------------------------------------------------------------------
# Kernel 2: fused mean/blend + projected dot-product similarity + logsumexp
# ---------------------------------------------------------------------------
def _tapnet_sim_kernel(test_ref, proto_ref, label_ref, m_ref, out_ref, *,
                       num_tags, tap_proto_r):
    # test_ref : (Bb, S, T, D)      bf16
    # proto_ref: (Bb, NT_pad, D)    f32  (padded tag rows are zero)
    # label_ref: (Bb, NT_pad, D)    f32  (padded tag rows are zero)
    # m_ref    : (Bb, D, D)         f32  (zero-masked columns)
    # out_ref  : (Bb, T, NT_pad)    f32
    support_size = test_ref.shape[1]

    # Mean over the support dimension, fused here (VPU adds over static small S)
    # to avoid an HBM round-trip for a (B, T, D) intermediate.
    acc = test_ref[:, 0].astype(jnp.float32)                      # (Bb, T, D)
    for s in range(1, support_size):
        acc = acc + test_ref[:, s].astype(jnp.float32)
    test_mean = acc * (1.0 / support_size)

    # tap_proto blend fused for the same reason.
    blended = tap_proto_r * proto_ref[...] + (1.0 - tap_proto_r) * label_ref[...]

    # Projections through M (shared bf16 RHS tile), f32 accumulation on MXU.
    m_b = m_ref[...].astype(jnp.bfloat16)
    test_proj = jax.lax.dot_general(
        test_mean.astype(jnp.bfloat16), m_b,
        dimension_numbers=(((2,), (1,)), ((0,), (0,))),
        preferred_element_type=jnp.float32)                       # (Bb, T, D)
    proto_proj = jax.lax.dot_general(
        blended.astype(jnp.bfloat16), m_b,
        dimension_numbers=(((2,), (1,)), ((0,), (0,))),
        preferred_element_type=jnp.float32)                       # (Bb, NTp, D)

    # sim_func = reps_dot: test_proj @ proto_proj^T
    sim = jax.lax.dot_general(
        test_proj.astype(jnp.bfloat16), proto_proj.astype(jnp.bfloat16),
        dimension_numbers=(((2,), (2,)), ((0,), (0,))),
        preferred_element_type=jnp.float32)                       # (Bb, T, NTp)

    # Numerically-stable log-sum-exp over the *real* tag columns only.
    col = jax.lax.broadcasted_iota(jnp.int32, sim.shape, 2)
    neg = jnp.where(col < num_tags, -sim, -jnp.inf)
    mx = jnp.max(neg, axis=-1, keepdims=True)
    lse = mx + jnp.log(jnp.sum(jnp.exp(neg - mx), axis=-1, keepdims=True))
    out_ref[...] = 2.0 * sim + lse


def tapnet_similarity(test_reps, proto_pad, label_pad, m_proj, *,
                      num_tags, tap_proto_r, num_batch_blocks=None):
    """test_reps: (B,S,T,D); proto_pad/label_pad: (B,NT_pad,D); m_proj: (B,D,D).

    Returns (B, T, num_tags) float32.
    """
    batch, support_size, test_len, dim = test_reps.shape
    nt_pad = proto_pad.shape[1]
    dp = m_proj.shape[-1]
    bb = _pick_batch_block(batch, num_batch_blocks)
    kernel = functools.partial(_tapnet_sim_kernel,
                               num_tags=num_tags,
                               tap_proto_r=float(tap_proto_r))
    sim = pl.pallas_call(
        kernel,
        out_shape=jax.ShapeDtypeStruct((batch, test_len, nt_pad), jnp.float32),
        grid=(batch // bb,),
        in_specs=[
            pl.BlockSpec((bb, support_size, test_len, dim),
                         lambda b: (b, 0, 0, 0)),
            pl.BlockSpec((bb, nt_pad, dim), lambda b: (b, 0, 0)),
            pl.BlockSpec((bb, nt_pad, dim), lambda b: (b, 0, 0)),
            pl.BlockSpec((bb, dim, dp), lambda b: (b, 0, 0)),
        ],
        out_specs=pl.BlockSpec((bb, test_len, nt_pad), lambda b: (b, 0, 0)),
        compiler_params=pltpu.CompilerParams(
            dimension_semantics=("parallel",)),
    )(test_reps.astype(jnp.bfloat16),
      proto_pad.astype(jnp.float32),
      label_pad.astype(jnp.float32),
      m_proj.astype(jnp.float32))
    return sim[:, :, :num_tags]


def similarity_reference(test_reps, proto_pad, label_pad, m_proj, *,
                         num_tags, tap_proto_r):
    """Pure-JAX equivalent of the similarity kernel (same numerics path)."""
    support_size = test_reps.shape[1]
    test_b = test_reps.astype(jnp.bfloat16).astype(jnp.float32)
    test_mean = jnp.sum(test_b, axis=1) * (1.0 / support_size)
    blended = tap_proto_r * proto_pad + (1.0 - tap_proto_r) * label_pad
    m_b = m_proj.astype(jnp.bfloat16)
    tp = jnp.einsum('btd,bde->bte', test_mean.astype(jnp.bfloat16), m_b,
                    preferred_element_type=jnp.float32)
    pp = jnp.einsum('bnd,bde->bne', blended.astype(jnp.bfloat16), m_b,
                    preferred_element_type=jnp.float32)
    sim = jnp.einsum('bte,bne->btn', tp.astype(jnp.bfloat16),
                     pp.astype(jnp.bfloat16),
                     preferred_element_type=jnp.float32)
    nt_pad = proto_pad.shape[1]
    col = jnp.arange(nt_pad)[None, None, :]
    neg = jnp.where(col < num_tags, -sim, -jnp.inf)
    mx = jnp.max(neg, axis=-1, keepdims=True)
    lse = mx + jnp.log(jnp.sum(jnp.exp(neg - mx), axis=-1, keepdims=True))
    return (2.0 * sim + lse)[:, :, :num_tags]


# ---------------------------------------------------------------------------
# Glue (plain JAX)
# ---------------------------------------------------------------------------
def _build_label_reps(params, label_reps, batch, no_pad, random_init_r):
    anchors = params["anchor_reps"]                    # (num_anchors, D)
    perm = params["anchor_perm"]
    # TODO(synk): torch draws a fresh torch.randperm at every forward; we use a
    # fixed deterministic permutation parameter instead.
    dim = anchors.shape[-1]
    rand = jnp.broadcast_to(anchors[perm[:no_pad]][None], (batch, no_pad, dim))
    if label_reps is not None:
        return (1.0 - random_init_r) * label_reps + random_init_r * rand
    return rand


def _projection_space(prototype_reps, label_reps, no_pad):
    """Error matrix + SVD -> projection space M, shape (B, D, D) float32.

    Instead of slicing V[:, :, s_sum:] (data-dependent width -> host sync and
    per-rank recompiles), keep the full (D, D) V and zero the first s_sum
    columns; zero columns contribute nothing to the projected dot products so
    the similarity is unchanged and M's shape is static (jit friendly).
    """
    # NOTE: divides by (no_pad - 1); num_tags == 2 is not supported (same as torch).
    lsum = jnp.sum(label_reps, axis=1, keepdims=True) - label_reps
    lsum = label_reps - (1.0 / (no_pad - 1)) * lsum
    lsum = lsum / (jnp.linalg.norm(lsum, axis=-1, keepdims=True) + 1e-13)
    lsum_pad = jnp.concatenate([jnp.zeros_like(lsum[:, :1]), lsum], axis=1)
    proto_norm = prototype_reps / (
        jnp.linalg.norm(prototype_reps, axis=-1, keepdims=True) + 1e-13)
    error_every_class = lsum_pad - proto_norm                       # (B, NT, D)

    # TODO(synk): batched SVD has no Pallas equivalent; kept in XLA (tiny: NTxD).
    _, s, vh = jnp.linalg.svd(error_every_class, full_matrices=True)
    s_sum = jnp.max(jnp.sum((s >= 1e-13).astype(jnp.int32), axis=1))  # traced scalar
    v = jnp.swapaxes(vh, -1, -2)                                    # (B, D, D)
    dim = v.shape[-1]
    keep = (jnp.arange(dim)[None, None, :] >= s_sum).astype(v.dtype)
    return v * keep


def tapnet_forward(params, test_reps, support_reps,
                   test_output_mask, support_output_mask,
                   support_targets, label_reps=None, *,
                   random_init_r=1.0, tap_proto=True, tap_proto_r=0.5,
                   use_pallas=True, num_batch_blocks=None):
    # test_output_mask / support_output_mask are unused by this scorer's
    # forward (kept for signature parity with the torch module).
    del test_output_mask, support_output_mask
    batch = test_reps.shape[0]
    num_tags = support_targets.shape[-1]
    no_pad = num_tags - 1
    nt_pad = _round_up(num_tags, _LANE)

    # --- anchor-based label reps (random_init=True path) -------------------
    label_reps = _build_label_reps(params, label_reps, batch, no_pad,
                                   random_init_r)                 # (B, no_pad, D)

    # Pad the tag dim once: lane-dense loads and a lane-dense sim output.
    targets_padded = jnp.pad(
        support_targets.astype(jnp.float32),
        ((0, 0), (0, 0), (0, 0), (0, nt_pad - num_tags)))

    # --- prototypes (Pallas kernel 1) ---------------------------------------
    if use_pallas:
        prototype_pad = compute_prototypes(
            targets_padded, support_reps, num_batch_blocks=num_batch_blocks)
    else:
        prototype_pad = prototypes_reference(targets_padded, support_reps)
    prototype_reps = prototype_pad[:, :num_tags, :]                # (B, NT, D)

    # --- projection space M via SVD (plain JAX) ------------------------------
    m_proj = _projection_space(prototype_reps, label_reps, no_pad)  # (B, D, D)

    # --- padded label reps for the blend -------------------------------------
    label_reps_pad = jnp.concatenate(
        [jnp.zeros_like(label_reps[:, :1]), label_reps], axis=1)    # (B, NT, D)
    label_reps_pad = jnp.pad(
        label_reps_pad, ((0, 0), (0, nt_pad - num_tags), (0, 0)))   # (B, NTp, D)

    r_eff = tap_proto_r if tap_proto else 0.0

    # --- similarity score (Pallas kernel 2, fused mean/blend) ----------------
    if use_pallas:
        return tapnet_similarity(test_reps, prototype_pad, label_reps_pad,
                                 m_proj, num_tags=num_tags, tap_proto_r=r_eff,
                                 num_batch_blocks=num_batch_blocks)
    return similarity_reference(test_reps, prototype_pad, label_reps_pad,
                                m_proj, num_tags=num_tags, tap_proto_r=r_eff)


# ---------------------------------------------------------------------------
if __name__ == "__main__":
    key = jax.random.PRNGKey(0)
    B, S, T, L, D = 2, 2, 8, 8, 32    # batch, support_size, test_len, support_len, dim
    NT = 5                            # num_tags (incl. pad tag)
    num_anchors = 8

    k1, k2, k3, k4, k5 = jax.random.split(key, 5)
    test_reps = jax.random.normal(k1, (B, S, T, D), jnp.float32)
    support_reps = jax.random.normal(k2, (B, S, L, D), jnp.float32)
    tag_ids = jax.random.randint(k3, (B, S, L), 0, NT)
    support_targets = jax.nn.one_hot(tag_ids, NT, dtype=jnp.float32)
    test_output_mask = jnp.ones((B, T), jnp.float32)        # unused in this scorer
    support_output_mask = jnp.ones((B, S, L), jnp.float32)  # unused in this scorer

    # deterministic parameter init (module __init__: xavier_normal anchors)
    xavier_std = (2.0 / (num_anchors + D)) ** 0.5
    params = {
        "anchor_reps": jax.random.normal(k4, (num_anchors, D), jnp.float32) * xavier_std,
        "anchor_perm": jax.random.permutation(k5, num_anchors),
    }

    fwd = jax.jit(functools.partial(tapnet_forward, use_pallas=True,
                                    tap_proto=True, tap_proto_r=0.5))
    score = fwd(params, test_reps, support_reps,
                test_output_mask, support_output_mask, support_targets)
    score = jax.block_until_ready(score)
    assert score.shape == (B, T, NT), score.shape

    # --- tight kernel-level checks (identical inputs for kernel & reference) --
    NT_pad = _round_up(NT, _LANE)
    targets_padded = jnp.pad(support_targets,
                             ((0, 0), (0, 0), (0, 0), (0, NT_pad - NT)))
    proto_k = jax.block_until_ready(
        compute_prototypes(targets_padded, support_reps))
    proto_r = prototypes_reference(targets_padded, support_reps)
    assert jnp.allclose(proto_k, proto_r, rtol=1e-3, atol=1e-3), (
        float(jnp.max(jnp.abs(proto_k - proto_r))))

    label = _build_label_reps(params, None, B, NT - 1, 1.0)
    m_proj = _projection_space(proto_r[:, :NT, :], label, NT - 1)
    label_pad = jnp.pad(
        jnp.concatenate([jnp.zeros_like(label[:, :1]), label], axis=1),
        ((0, 0), (0, NT_pad - NT), (0, 0)))
    sim_k = jax.block_until_ready(
        tapnet_similarity(test_reps, proto_r, label_pad, m_proj,
                          num_tags=NT, tap_proto_r=0.5))
    sim_r = similarity_reference(test_reps, proto_r, label_pad, m_proj,
                                 num_tags=NT, tap_proto_r=0.5)
    assert jnp.allclose(sim_k, sim_r, rtol=1e-3, atol=1e-3), (
        float(jnp.max(jnp.abs(sim_k - sim_r))))

    # --- end-to-end check vs the pure-JAX reference forward ------------------
    # (looser tolerance: the SVD-derived projection space mildly amplifies the
    #  kernel-vs-XLA accumulation-order differences in the prototypes)
    ref = tapnet_forward(params, test_reps, support_reps,
                         test_output_mask, support_output_mask,
                         support_targets, use_pallas=False,
                         tap_proto=True, tap_proto_r=0.5)
    ref = jax.block_until_ready(ref)
    assert jnp.allclose(score, ref, rtol=1e-2, atol=1e-2), (
        float(jnp.max(jnp.abs(score - ref))))

    print("KERNEL_OK")
</pallas_src>

<mosaic_0001>
module attributes {stable_mosaic.version = 11 : i64} {
  func.func @_prototype_kernel(%arg0: i32, %arg1: memref<1x16x128xbf16, #tpu.memory_space<vmem>>, %arg2: memref<1x16x32xbf16, #tpu.memory_space<vmem>>, %arg3: memref<1x128x1xf32, #tpu.memory_space<vmem>>, %arg4: memref<1x128x32xf32, #tpu.memory_space<vmem>>) attributes {dimension_semantics = [#tpu.dimension_semantics<parallel>], iteration_bounds = array<i64: 2>, scalar_prefetch = 0 : i64, scratch_operands = 0 : i64, tpu.core_type = #tpu.core_type<tc>, window_params = [{transform_indices = @transform_0, window_bounds = array<i64: 1, 16, 128>}, {transform_indices = @transform_1, window_bounds = array<i64: 1, 16, 32>}, {transform_indices = @transform_2, window_bounds = array<i64: 1, 128, 1>}, {transform_indices = @transform_3, window_bounds = array<i64: 1, 128, 32>}]} {
    %c0 = arith.constant 0 : index
    %c0_0 = arith.constant 0 : index
    %c0_1 = arith.constant 0 : index
    %0 = vector.load %arg1[%c0, %c0_0, %c0_1] : memref<1x16x128xbf16, #tpu.memory_space<vmem>>, vector<1x16x128xbf16>
    %c0_2 = arith.constant 0 : index
    %c0_3 = arith.constant 0 : index
    %c0_4 = arith.constant 0 : index
    %1 = vector.load %arg2[%c0_2, %c0_3, %c0_4] : memref<1x16x32xbf16, #tpu.memory_space<vmem>>, vector<1x16x32xbf16>
    %cst = arith.constant dense<0.000000e+00> : vector<1x128x32xf32>
    %2 = tpu.matmul %0, %1, %cst {dimension_numbers = #tpu.dot_dimension_numbers<[1], [1], [2], [2], [0, 0, 0, 2, 1, 2], [0], [0]>} : vector<1x16x128xbf16>, vector<1x16x32xbf16>, vector<1x128x32xf32> -> vector<1x128x32xf32>
    %c0_5 = arith.constant 0 : index
    %c0_6 = arith.constant 0 : index
    %c0_7 = arith.constant 0 : index
    %3 = vector.load %arg3[%c0_5, %c0_6, %c0_7] : memref<1x128x1xf32, #tpu.memory_space<vmem>>, vector<1x128x1xf32>
    %4 = vector.broadcast %3 : vector<1x128x1xf32> to vector<1x128x32xf32>
    %5 = arith.mulf %2, %4 : vector<1x128x32xf32>
    %c0_8 = arith.constant 0 : index
    %c0_9 = arith.constant 0 : index
    %c0_10 = arith.constant 0 : index
    %6 = vector.load %arg4[%c0_8, %c0_9, %c0_10] : memref<1x128x32xf32, #tpu.memory_space<vmem>>, vector<1x128x32xf32>
    tpu.vector_store %arg4[%c0_8, %c0_9, %c0_10], %5 {strides = array<i32>} : memref<1x128x32xf32, #tpu.memory_space<vmem>>, vector<1x128x32xf32>,
    return
  }
  func.func @transform_0(%arg0: i32) -> (i32, i32, i32) {
    %c0_i32 = arith.constant 0 : i32
    %c0_i32_0 = arith.constant 0 : i32
    %c0_i32_1 = arith.constant 0 : i32
    return %arg0, %c0_i32, %c0_i32_0 : i32, i32, i32
  }
  func.func @transform_1(%arg0: i32) -> (i32, i32, i32) {
    %c0_i32 = arith.constant 0 : i32
    %c0_i32_0 = arith.constant 0 : i32
    %c0_i32_1 = arith.constant 0 : i32
    return %arg0, %c0_i32, %c0_i32_0 : i32, i32, i32
  }
  func.func @transform_2(%arg0: i32) -> (i32, i32, i32) {
    %c0_i32 = arith.constant 0 : i32
    %c0_i32_0 = arith.constant 0 : i32
    %c0_i32_1 = arith.constant 0 : i32
    return %arg0, %c0_i32, %c0_i32_0 : i32, i32, i32
  }
  func.func @transform_3(%arg0: i32) -> (i32, i32, i32) {
    %c0_i32 = arith.constant 0 : i32
    %c0_i32_0 = arith.constant 0 : i32
    %c0_i32_1 = arith.constant 0 : i32
    return %arg0, %c0_i32, %c0_i32_0 : i32, i32, i32
  }
}

module attributes {stable_mosaic.version = 11 : i64} {
  func.func @_tapnet_sim_kernel(%arg0: i32, %arg1: memref<1x2x8x32xbf16, #tpu.memory_space<vmem>>, %arg2: memref<1x128x32xf32, #tpu.memory_space<vmem>>, %arg3: memref<1x128x32xf32, #tpu.memory_space<vmem>>, %arg4: memref<1x32x32xf32, #tpu.memory_space<vmem>>, %arg5: memref<1x8x128xf32, #tpu.memory_space<vmem>>) attributes {dimension_semantics = [#tpu.dimension_semantics<parallel>], iteration_bounds = array<i64: 2>, scalar_prefetch = 0 : i64, scratch_operands = 0 : i64, tpu.core_type = #tpu.core_type<tc>, window_params = [{transform_indices = @transform_0, window_bounds = array<i64: 1, 2, 8, 32>}, {transform_indices = @transform_1, window_bounds = array<i64: 1, 128, 32>}, {transform_indices = @transform_2, window_bounds = array<i64: 1, 128, 32>}, {transform_indices = @transform_3, window_bounds = array<i64: 1, 32, 32>}, {transform_indices = @transform_4, window_bounds = array<i64: 1, 8, 128>}]} {
    %c0 = arith.constant 0 : index
    %c0_0 = arith.constant 0 : index
    %c0_1 = arith.constant 0 : index
    %c0_2 = arith.constant 0 : index
    %0 = vector.load %arg1[%c0, %c0_0, %c0_1, %c0_2] : memref<1x2x8x32xbf16, #tpu.memory_space<vmem>>, vector<1x1x8x32xbf16>
    %1 = vector.shape_cast %0 : vector<1x1x8x32xbf16> to vector<1x8x32xbf16>
    %2 = arith.extf %1 : vector<1x8x32xbf16> to vector<1x8x32xf32>
    %c0_3 = arith.constant 0 : index
    %c1 = arith.constant 1 : index
    %c0_4 = arith.constant 0 : index
    %c0_5 = arith.constant 0 : index
    %3 = vector.load %arg1[%c0_3, %c1, %c0_4, %c0_5] : memref<1x2x8x32xbf16, #tpu.memory_space<vmem>>, vector<1x1x8x32xbf16>
    %4 = vector.shape_cast %3 : vector<1x1x8x32xbf16> to vector<1x8x32xbf16>
    %5 = arith.extf %4 : vector<1x8x32xbf16> to vector<1x8x32xf32>
    %6 = arith.addf %2, %5 : vector<1x8x32xf32>
    %cst = arith.constant 5.000000e-01 : f32
    %7 = vector.broadcast %cst : f32 to vector<1x8x32xf32>
    %8 = arith.mulf %6, %7 : vector<1x8x32xf32>
    %c0_6 = arith.constant 0 : index
    %c0_7 = arith.constant 0 : index
    %c0_8 = arith.constant 0 : index
    %9 = vector.load %arg2[%c0_6, %c0_7, %c0_8] : memref<1x128x32xf32, #tpu.memory_space<vmem>>, vector<1x128x32xf32>
    %cst_9 = arith.constant 5.000000e-01 : f32
    %10 = vector.broadcast %cst_9 : f32 to vector<1x128x32xf32>
    %11 = arith.mulf %10, %9 : vector<1x128x32xf32>
    %c0_10 = arith.constant 0 : index
    %c0_11 = arith.constant 0 : index
    %c0_12 = arith.constant 0 : index
    %12 = vector.load %arg3[%c0_10, %c0_11, %c0_12] : memref<1x128x32xf32, #tpu.memory_space<vmem>>, vector<1x128x32xf32>
    %cst_13 = arith.constant 5.000000e-01 : f32
    %13 = vector.broadcast %cst_13 : f32 to vector<1x128x32xf32>
    %14 = arith.mulf %13, %12 : vector<1x128x32xf32>
    %15 = arith.addf %11, %14 : vector<1x128x32xf32>
    %c0_14 = arith.constant 0 : index
    %c0_15 = arith.constant 0 : index
    %c0_16 = arith.constant 0 : index
    %16 = vector.load %arg4[%c0_14, %c0_15, %c0_16] : memref<1x32x32xf32, #tpu.memory_space<vmem>>, vector<1x32x32xf32>
    %17 = arith.truncf %16 : vector<1x32x32xf32> to vector<1x32x32xbf16>
    %18 = arith.truncf %8 : vector<1x8x32xf32> to vector<1x8x32xbf16>
    %cst_17 = arith.constant dense<0.000000e+00> : vector<1x8x32xf32>
    %19 = tpu.matmul %18, %17, %cst_17 {dimension_numbers = #tpu.dot_dimension_numbers<[2], [1], [1], [2], [0, 0, 0, 1, 1, 2], [0], [0]>} : vector<1x8x32xbf16>, vector<1x32x32xbf16>, vector<1x8x32xf32> -> vector<1x8x32xf32>
    %20 = arith.truncf %15 : vector<1x128x32xf32> to vector<1x128x32xbf16>
    %cst_18 = arith.constant dense<0.000000e+00> : vector<1x128x32xf32>
    %21 = tpu.matmul %20, %17, %cst_18 {dimension_numbers = #tpu.dot_dimension_numbers<[2], [1], [1], [2], [0, 0, 0, 1, 1, 2], [0], [0]>} : vector<1x128x32xbf16>, vector<1x32x32xbf16>, vector<1x128x32xf32> -> vector<1x128x32xf32>
    %22 = arith.truncf %19 : vector<1x8x32xf32> to vector<1x8x32xbf16>
    %23 = arith.truncf %21 : vector<1x128x32xf32> to vector<1x128x32xbf16>
    %cst_19 = arith.constant dense<0.000000e+00> : vector<1x8x128xf32>
    %24 = tpu.matmul %22, %23, %cst_19 {dimension_numbers = #tpu.dot_dimension_numbers<[2], [2], [1], [1], [0, 0, 0, 1, 1, 1], [0], [0]>} : vector<1x8x32xbf16>, vector<1x128x32xbf16>, vector<1x8x128xf32> -> vector<1x8x128xf32>
    %25 = tpu.iota {dimensions = array<i32: 2>} : vector<1x8x128xi32>
    %c5_i32 = arith.constant 5 : i32
    %26 = vector.broadcast %c5_i32 : i32 to vector<1x8x128xi32>
    %27 = arith.cmpi slt, %25, %26 : vector<1x8x128xi32>
    %cst_20 = arith.constant 0.000000e+00 : f32
    %28 = vector.broadcast %cst_20 : f32 to vector<1x8x128xf32>
    %29 = arith.subf %28, %24 : vector<1x8x128xf32>
    %cst_21 = arith.constant 0xFF800000 : f32
    %30 = vector.broadcast %cst_21 : f32 to vector<1x8x128xf32>
    %31 = arith.select %27, %29, %30 : vector<1x8x128xi1>, vector<1x8x128xf32>
    %cst_22 = arith.constant dense<0xFF800000> : vector<1x8xf32>
    %32 = vector.multi_reduction <maximumf>, %31, %cst_22 [2] : vector<1x8x128xf32> to vector<1x8xf32>
    %33 = vector.shape_cast %32 : vector<1x8xf32> to vector<1x8x1xf32>
    %34 = vector.broadcast %33 : vector<1x8x1xf32> to vector<1x8x128xf32>
    %35 = arith.subf %31, %34 : vector<1x8x128xf32>
    %36 = math.exp %35 : vector<1x8x128xf32>
    %cst_23 = arith.constant dense<0.000000e+00> : vector<1x8xf32>
    %37 = vector.multi_reduction <add>, %36, %cst_23 [2] : vector<1x8x128xf32> to vector<1x8xf32>
    %38 = vector.shape_cast %37 : vector<1x8xf32> to vector<1x8x1xf32>
    %39 = math.log %38 : vector<1x8x1xf32>
    %40 = arith.addf %33, %39 : vector<1x8x1xf32>
    %cst_24 = arith.constant 2.000000e+00 : f32
    %41 = vector.broadcast %cst_24 : f32 to vector<1x8x128xf32>
    %42 = arith.mulf %41, %24 : vector<1x8x128xf32>
    %43 = vector.broadcast %40 : vector<1x8x1xf32> to vector<1x8x128xf32>
    %44 = arith.addf %42, %43 : vector<1x8x128xf32>
    %c0_25 = arith.constant 0 : index
    %c0_26 = arith.constant 0 : index
    %c0_27 = arith.constant 0 : index
    %45 = vector.load %arg5[%c0_25, %c0_26, %c0_27] : memref<1x8x128xf32, #tpu.memory_space<vmem>>, vector<1x8x128xf32>
    tpu.vector_store %arg5[%c0_25, %c0_26, %c0_27], %44 {strides = array<i32>} : memref<1x8x128xf32, #tpu.memory_space<vmem>>, vector<1x8x128xf32>,
    return
  }
  func.func @transform_0(%arg0: i32) -> (i32, i32, i32, i32) {
    %c0_i32 = arith.constant 0 : i32
    %c0_i32_0 = arith.constant 0 : i32
    %c0_i32_1 = arith.constant 0 : i32
    %c0_i32_2 = arith.constant 0 : i32
    return %arg0, %c0_i32, %c0_i32_0, %c0_i32_1 : i32, i32, i32, i32
  }
  func.func @transform_1(%arg0: i32) -> (i32, i32, i32) {
    %c0_i32 = arith.constant 0 : i32
    %c0_i32_0 = arith.constant 0 : i32
    %c0_i32_1 = arith.constant 0 : i32
    return %arg0, %c0_i32, %c0_i32_0 : i32, i32, i32
  }
  func.func @transform_2(%arg0: i32) -> (i32, i32, i32) {
    %c0_i32 = arith.constant 0 : i32
    %c0_i32_0 = arith.constant 0 : i32
    %c0_i32_1 = arith.constant 0 : i32
    return %arg0, %c0_i32, %c0_i32_0 : i32, i32, i32
  }
  func.func @transform_3(%arg0: i32) -> (i32, i32, i32) {
    %c0_i32 = arith.constant 0 : i32
    %c0_i32_0 = arith.constant 0 : i32
    %c0_i32_1 = arith.constant 0 : i32
    return %arg0, %c0_i32, %c0_i32_0 : i32, i32, i32
  }
  func.func @transform_4(%arg0: i32) -> (i32, i32, i32) {
    %c0_i32 = arith.constant 0 : i32
    %c0_i32_0 = arith.constant 0 : i32
    %c0_i32_1 = arith.constant 0 : i32
    return %arg0, %c0_i32, %c0_i32_0 : i32, i32, i32
  }
}

</mosaic_0001>

<bundles_post_ra>
// kernel: custom-call.31
= control target key start
LH: loop header
LB: loop body
LE: loop exit
PB: predicated region body
PF: predicated region fallthrough
CT: control target
= control target key end

     0   :  { %s896_s9 = smov 0   ;;  %s898_s10 = smov 0   ;;  %s1153_s0 = inlined_call_operand.vmem [shape: f32[2,32,5], index: 0, kind: input, shape index: {}]   ;;  %s1154_s1 = inlined_call_operand.vmem [shape: f32[2,32,5], index: 1, kind: output, shape index: {0}]   ;;  %s1155_s2 = inlined_call_operand.vmem [shape: f32[2,5], index: 2, kind: output, shape index: {1}]  }
   0x1   :  { %s900_s11 = smov 0   ;;  %s902_s12 = smov 0  }
   0x2   :  { %s904_s13 = smov 0  }
   0x3 LB: > { %s28_s14 = sadd.s32 1, %s869_s12  ;;  %s720_s15 = sadd.s32 4294967295, %s873_s13   ;;  %s873_s13 = sphi %s904_s13, %s9_s13   ;;  %s869_s12 = sphi %s902_s12, %s1170_s12   ;;  %s865_s11 = sphi %s900_s11, %s1169_s11   ;;  %s861_s10 = sphi %s898_s10, %s1168_s10   ;;  %s857_s9 = sphi %s896_s9, %s1167_s9  }
   0x4   : > { %p30_p0 = scmp.ge.s32.totalorder %s28_s14, 2  ;;  %s33_s16 = ssub.s32 0, %s869_s12 }
   0x5   : > { %s722_s17 = smin.u32 %s869_s12, %s33_s16  ;;  %p57_p1 = scmp.ne.s32.totalorder %s861_s10, %s857_s9 }
   0x6   : > { %s1172_s14 = smov (%p30_p0, %s28_s14), 0  ;;  %s35_s18 = sshrl.u32 %s722_s17, 3 }
   0x7   : > { %s39_s19 = ssub.s32 0, %s1172_s14  ;;  %p58_p2 = scmp.eq.s32.totalorder %s720_s15, 1 }
   0x8   : > { %s723_s20 = smin.u32 %s39_s19, %s1172_s14  ;;  %s47_s24 = sadd.s32 1, %s861_s10 }
   0x9   : > { %s41_s21 = sshrl.u32 %s723_s20, 3  ;;  %p933_p3 = por %p58_p2, %p57_p1 }
   0xa   : > { %s44_s23 = ssub.s32 %s35_s18, %s41_s21  ;;  %p725_p5 = scmp.ge.s32.totalorder %s873_s13, 2 }
   0xb   : > { %p45_p4 = scmp.eq.s32.totalorder %s44_s23, 0  ;;  %s82_s26 = sand.u32 (!%p725_p5), 1, %s873_s13  }
   0xc   : > { %80 = sbr.rel (%p725_p5) target bundleno = 20 (0x14), region = 16  ;;  %s769_s27 = sshll.u32 (!%p725_p5), %s869_s12, 5 }
   0xd   : > { %s939_s25 = scalar_select %p45_p4, %s861_s10, %s47_s24  }
   0xe   : > { %s726_s28 = sshll.u32 (!%p725_p5), %s82_s26, 5  ;;  %s90_s3 = scalar_lea.vmem (!%p725_p5), %s1153_s0, %s769_s27 }
   0xf   : > { %s84_s4 = scalar_lea.vmem (!%p725_p5), [#allocation0], %s726_s28 }
  0x11   : > { %v125_v0 = vld [vmem:[%s90_s3] sm:$0xff]  ;;  %v127_v1 = vld [vmem:[%s90_s3 + $0x8] sm:$0xff]  ;;  %v129_v2 = vld [vmem:[%s90_s3 + $0x10] sm:$0xff] }
  0x12   : > { %126 = vst [vmem:[%s84_s4] sm:$0xff] %v125_v0  ;;  %128 = vst [vmem:[%s84_s4 + $0x8] sm:$0xff] %v127_v1  ;;  %v131_v3 = vld [vmem:[%s90_s3 + $0x18] sm:$0xff] }
  0x13   : > { %130 = vst [vmem:[%s84_s4 + $0x10] sm:$0xff] %v129_v2  ;;  %132 = vst [vmem:[%s84_s4 + $0x18] sm:$0xff] %v131_v3 }
  0x14 PF: > { %p729_p6 = scmp.ge.s32.totalorder %s873_s13, 1  ;;  %p137_p7 = scmp.lt.s32.totalorder %s873_s13, 3 }
  0x16   : > { %p138_p8 = pnand %p729_p6, %p137_p7 }
  0x18   : > { %141 = sbr.rel (%p138_p8) target bundleno = 356 (0x164), region = 54 }
  0x1d   : > { %s144_s5 = sand.u32 1, %s720_s15   ;;  %s158_s6 = sand.u32 1, %s857_s9   ;;  %v879_v8 = vmov 0.0  }
  0x1e   : > { %s730_s7 = sshll.u32 %s144_s5, 5  ;;  %s952_s8 = sshll.u32 %s158_s6, 1 }
  0x1f   : > { %s169_s16 = sand.u32 7, %s865_s11   ;;  %s146_s17 = scalar_lea.vmem [#allocation0], %s730_s7 }
  0x20   : > { %v171_v4 = vld [vmem:[%s146_s17] sm:$0xff]  ;;  %v733_v5 = vld [vmem:[%s146_s17 + $0x8] sm:$0xff]  ;;  %v735_v6 = vld [vmem:[%s146_s17 + $0x10] sm:$0xff]  ;;  %s955_s18 = scalar_lea.vmem [#allocation1], %s730_s7  ;;  %s961_s9 = scalar_lea.vmem [#allocation2], %s169_s16 }
  0x21   : > { %172 = vst [vmem:[%s955_s18] sm:$0xff] %v171_v4  ;;  %734 = vst [vmem:[%s955_s18 + $0x8] sm:$0xff] %v733_v5  ;;  %v737_v7 = vld [vmem:[%s146_s17 + $0x18] sm:$0xff]  ;;  %s160_s15 = scalar_lea.vmem [#allocation3], %s952_s8  ;;  %s965_s19 = smov 0  }
  0x22   : > { %736 = vst [vmem:[%s955_s18 + $0x10] sm:$0xff] %v735_v6  ;;  %738 = vst [vmem:[%s955_s18 + $0x18] sm:$0xff] %v737_v7 }
  0x23   : > { %185 = vst [vmem:[%s961_s9] sm:$0x1] %v879_v8 }
  0x24 LB: >> { %v193_v9 = vlaneseq  ;;  %v975_v12 = vstv %s877_s19  ;;  %s250_s20 = scalar_lea.vmem %s955_s18, %s877_s19 [#allocation1]  ;;  %s362_s21 = scalar_lea.vmem [#allocation4], %s877_s19  ;;  %s877_s19 = sphi %s965_s19, %s191_s19  }
  0x25   : >> { %s379_s23 = smov [#allocation4] }
  0x26   : >> { %v972_v11 = vshrl.u32 %v193_v9, 7 }
  0x28   : >> { %v192_v10 = vld [vmem:[%s955_s18] sm:$0xff]  ;;  %vm197_vm0 = vcmp.gt.s32.totalorder %v972_v11, %v975_v12  ;;  %v739_v13 = vld [vmem:[%s955_s18 + $0x8] sm:$0xff]  ;;  %v204_v14 = vadd.s32 8, %v972_v11  ;;  %v214_v16 = vadd.s32 16, %v972_v11  ;;  %v224_v18 = vadd.s32 24, %v972_v11 }
  0x29   : >> { %v740_v15 = vld [vmem:[%s955_s18 + $0x10] sm:$0xff]  ;;  %v741_v17 = vld [vmem:[%s955_s18 + $0x18] sm:$0xff]  ;;  %v198_v19 = vsel %vm197_vm0, %v192_v10, 0.0  ;;  %v993_v36 = vld [vmem:[%s250_s20] ss:$0 sm:$0xff]  ;;  %v289_v11 = vmov %v972_v11  ;;  %s286_s18 = smov %s955_s18  ;;  %v1018_v10 = vand.u32 127, %v193_v9 }
  0x2a   : >> { %v199_v20 = vmul.f32 %v198_v19, %v198_v19  ;;  %vm206_vm1 = vcmp.gt.s32.totalorder %v204_v14, %v975_v12  ;;  %vm216_vm2 = vcmp.gt.s32.totalorder %v214_v16, %v975_v12  ;;  %vm226_vm3 = vcmp.gt.s32.totalorder %v224_v18, %v975_v12  ;;  %v744_v5 = vld [vmem:[%s286_s18 + $0x10] sm:$0xff]  ;;  %v290_v6 = vld [vmem:[%s286_s18] sm:$0xff]  ;;  %v745_v7 = vld [vmem:[%s286_s18 + $0x18] sm:$0xff] }
  0x2b   : >> { %v207_v21 = vsel %vm206_vm1, %v739_v13, 0.0  ;;  %v217_v22 = vsel %vm216_vm2, %v740_v15, 0.0  ;;  %v229_v23 = vsel %vm226_vm3, %v741_v17, 0.0  ;;  %v252_v37 = vand.u32 2147483647, %v993_v36  ;;  %v743_v8 = vld [vmem:[%s286_s18 + $0x8] sm:$0xff]  ;;  %s1050_s18 = smov %s955_s18 }
  0x2c   : >> { %v208_v24 = vmul.f32 %v207_v21, %v207_v21  ;;  %v218_v25 = vmul.f32 %v217_v22, %v217_v22  ;;  %v230_v27 = vmul.f32 %v229_v23, %v229_v23  ;;  %vm277_vm9 = vcmp.lt.f32.partialorder %v993_v36, 0.0 }
  0x2d   : >> { %v253_v42 = vmax.f32 %v252_v37, 0.0  ;;  %v344_v2 = vadd.s32 24, %v289_v11  ;;  %v326_v3 = vadd.s32 16, %v289_v11  ;;  %v308_v4 = vadd.s32 8, %v289_v11 }
  0x2e   : >> { %v209_v26 = vadd.f32 %v208_v24, %v199_v20  ;;  %vm293_vm12 = vcmp.gt.s32.totalorder %v289_v11, %v975_v12  ;;  %vm1023_vm0 = vcmp.eq.s32.totalorder %v1018_v10, %v975_v12  ;;  %v382_v11 = vmov %v972_v11 }
  0x2f   : >> { %vm346_vm10 = vcmp.gt.s32.totalorder %v344_v2, %v975_v12  ;;  %vm347_vm11 = vcmp.lt.s32.totalorder %v344_v2, 32  ;;  %vm328_vm13 = vcmp.gt.s32.totalorder %v326_v3, %v975_v12  ;;  %vm310_vm15 = vcmp.gt.s32.totalorder %v308_v4, %v975_v12 }
  0x30   : >> { %v219_v28 = vadd.f32 %v218_v25, %v209_v26  ;;  %vm348_vm14 = vmand %vm346_vm10, %vm347_vm11  ;;  %v294_v13 = vsel %vm293_vm12, %v290_v6, 0.0  ;;  %v329_v14 = vsel %vm328_vm13, %v744_v5, 0.0  ;;  %v311_v16 = vsel %vm310_vm15, %v743_v8, 0.0 }
  0x31   : >> { %v349_v15 = vsel %vm348_vm14, %v745_v7, 0.0 }
  0x32   : >> { %v231_v29 = vadd.f32 %v230_v27, %v219_v28 }
  0x34   : >> { %v232_v30 = vrot.slane %v231_v29, 4 }
  0x36   : >> { %v233_v31 = vadd.f32 %v232_v30, %v231_v29 }
  0x38   : >> { %v234_v32 = vrot.slane %v233_v31, 2 }
  0x3a   : >> { %v235_v33 = vadd.f32 %v234_v32, %v233_v31 }
  0x3c   : >> { %v236_v34 = vrot.slane %v235_v33, 1 }
  0x3e   : >> { %v988_v35 = vadd.f32 %v236_v34, %v235_v33 }
  0x40   : >> { %821 = vrsqrt.f32 %v988_v35  ;;  %vm240_vm4 = vcmp.eq.f32.partialorder %v988_v35, inf  ;;  %v243_v39 = vand.u32 2147483648, %v988_v35  ;;  %vm242_vm5 = vcmp.eq.f32.partialorder %v988_v35, 0.0 }
  0x4d   : >> { %v822_v38 = vpop.eup %821 }
  0x4e   : >> { %v239_v40 = vmul.f32 %v822_v38, %v988_v35 }
  0x50   : >> { %v241_v41 = vsel %vm240_vm4, %v988_v35, %v239_v40  ;;  %v880_v35 = vmov 1.0   ;;  %v375_v40 = vld [vmem:[%s961_s9] ss:$0 sm:$0xff] }
  0x51   : >> { %v244_v43 = vsel %vm242_vm5, %v243_v39, %v241_v41 }
  0x52   : >> { %v254_v44 = vand.u32 2147483647, %v244_v43  ;;  %v385_v43 = vld [vmem:[%s1050_s18] sm:$0xff] }
  0x54   : >> { %v255_v45 = vmax.f32 %v253_v42, %v254_v44 }
  0x56   : >> { %823 = vrcp.f32 %v255_v45  ;;  %vm267_vm8 = vcmp.eq.f32.partialorder %v255_v45, 0.0 }
  0x63   : >> { %v824_v46 = vpop.eup %823 }
  0x64   : >> { %v257_v47 = vmul.f32 %v824_v46, %v252_v37  ;;  %v260_v48 = vmul.f32 0.0, %v824_v46  ;;  %v264_v49 = vmul.f32 %v824_v46, %v254_v44  ;;  %v747_v44 = vld [vmem:[%s1050_s18 + $0x8] sm:$0xff]  ;;  %v401_v46 = vadd.s32 24, %v382_v11 }
  0x65   : >> { %v420_v11 = vmov %v972_v11 }
  0x66   : >> { %v258_v50 = vmul.f32 %v257_v47, %v257_v47  ;;  %v261_v51 = vmul.f32 %v260_v48, %v260_v48  ;;  %v265_v52 = vmul.f32 %v264_v49, %v264_v49  ;;  %v751_v47 = vld [vmem:[%s1050_s18 + $0x18] sm:$0xff]  ;;  %vm407_vm1 = vcmp.lt.s32.totalorder %v401_v46, 32 }
  0x67   : >> { %v462_v3 = vadd.s32 16, %v420_v11  ;;  %vm437_vm2 = vcmp.ge.s32.totalorder %v420_v11, %v975_v12  ;;  %v483_v4 = vadd.s32 24, %v420_v11 }
  0x68   : >> { %v262_v53 = vadd.f32 %v261_v51, %v258_v50  ;;  %vm1071_vm4 = vmand %vm1023_vm0, %vm437_vm2 }
  0x6a   : >> { %v266_v54 = vadd.f32 %v265_v52, %v262_v53 }
  0x6c   : >> { %825 = vrsqrt.f32 %v266_v54  ;;  %vm270_vm6 = vcmp.eq.f32.partialorder %v266_v54, inf  ;;  %v273_v56 = vand.u32 2147483648, %v266_v54  ;;  %vm272_vm7 = vcmp.eq.f32.partialorder %v266_v54, 0.0 }
  0x79   : >> { %v826_v55 = vpop.eup %825 }
  0x7a   : >> { %v269_v57 = vmul.f32 %v826_v55, %v266_v54 }
  0x7c   : >> { %v271_v58 = vsel %vm270_vm6, %v266_v54, %v269_v57  ;;  %vm500_vm6 = vcmp.ge.s32.totalorder %v483_v4, %v975_v12 }
  0x7d   : >> { %v274_v59 = vsel %vm272_vm7, %v273_v56, %v271_v58  ;;  %vm1094_vm10 = vmand %vm1023_vm0, %vm500_vm6 }
  0x7e   : >> { %v275_v60 = vmul.f32 %v274_v59, %v255_v45  ;;  %v749_v45 = vld [vmem:[%s1050_s18 + $0x10] sm:$0xff]  ;;  %s1062_s18 = smov %s1050_s18 }
  0x7f   : >> { %v427_v6 = vld [vmem:[%s1062_s18] sm:$0xff]  ;;  %v753_v7 = vld [vmem:[%s1062_s18 + $0x8] sm:$0xff]  ;;  %v756_v8 = vld [vmem:[%s1062_s18 + $0x10] sm:$0xff]  ;;  %s504_s24 = scalar_lea.vmem %s1062_s18, %s877_s19  ;;  %s191_s19 = sadd.s32 1, %s877_s19  }
  0x80   : >> { %v276_v61 = vsel %vm267_vm8, 0.0, %v275_v60  ;;  %vm429_vm8 = vcmp.gt.s32.totalorder %v1018_v10, %v975_v12  ;;  %p188_p9 = scmp.ge.s32.totalorder %s191_s19, 5  }
  0x81   : >> { %v278_v62 = vxor.u32 2147483648, %v276_v61  ;;  %s770_s26 = sshll.u32 (%p188_p9), %s865_s11, 5 }
  0x82   : > { %s533_s29 = scalar_lea.vmem (%p188_p9), %s1154_s1, %s770_s26 }
  0x83   : >> { %v279_v63 = vsel %vm277_vm9, %v276_v61, %v278_v62 }
  0x84   : >> { %v1007_v0 = vsel %vm242_vm5, %v993_v36, %v279_v63  ;;  %827 = vrcp.f32 %v279_v63  ;;  %v280_v17 = vsub.f32 %v279_v63, %v993_v36 }
  0x85   : >> { %v285_v1 = vsub.f32 %v993_v36, %v1007_v0 }
  0x87   : >> { %829 = vrcp.f32 %v285_v1  ;;  %v441_v1 = vadd.s32 8, %v420_v11 }
  0x89   : >> { %vm458_vm3 = vcmp.ge.s32.totalorder %v441_v1, %v975_v12 }
  0x8a   : >> { %vm1080_vm7 = vmand %vm1023_vm0, %vm458_vm3 }
  0x91   : >> { %v828_v18 = vpop.eup %827 }
  0x92   : >> { %v282_v9 = vmul.f32 %v828_v18, %v280_v17 }
  0x94   : >> { %v830_v19 = vpop.eup %829  ;;  %v284_v33 = vsel %vm242_vm5, 0.0, %v282_v9 }
  0x95   : >> { %v331_v21 = vmul.f32 %v830_v19, %v329_v14  ;;  %v296_v22 = vmul.f32 %v830_v19, %v294_v13  ;;  %v351_v23 = vmul.f32 %v830_v19, %v349_v15  ;;  %v313_v24 = vmul.f32 %v830_v19, %v311_v16  ;;  %v759_v15 = vld [vmem:[%s1062_s18 + $0x18] sm:$0xff] }
  0x96   : >> { %v368_v34 = vsel %vm1023_vm0, %v284_v33, 0.0 }
  0x97   : >> { %v332_v25 = vsel %vm242_vm5, 0.0, %v331_v21  ;;  %v297_v26 = vsel %vm242_vm5, 0.0, %v296_v22  ;;  %v352_v27 = vsel %vm242_vm5, 0.0, %v351_v23  ;;  %v314_v28 = vsel %vm242_vm5, 0.0, %v313_v24 }
  0x98   : >> { %v337_v29 = vsel %vm1023_vm0, %v332_v25, 0.0  ;;  %v302_v30 = vsel %vm1023_vm0, %v297_v26, 0.0  ;;  %v357_v31 = vsel %vm1023_vm0, %v352_v27, 0.0  ;;  %v319_v32 = vsel %vm1023_vm0, %v314_v28, 0.0 }
  0x99   : >> { %338 = vadd.xlane.f32.xlu1 %v337_v29  ;;  %303 = vadd.xlane.f32.xlu0 %v302_v30  ;;  %vm479_vm5 = vcmp.ge.s32.totalorder %v462_v3, %v975_v12 }
  0x9a   : >> { %vm1088_vm9 = vmand %vm1023_vm0, %vm479_vm5 }
  0x9d   : >> { %358 = vadd.xlane.f32.xlu1 %v357_v31  ;;  %320 = vadd.xlane.f32.xlu0 %v319_v32 }
  0xa1   : >> { %369 = vadd.xlane.f32.xlu0 %v368_v34 }
 0x122   : >> { %v339_v36 = vpop.xlane.xlu1 %338  ;;  %v304_v37 = vpop.xlane.xlu0 %303 }
 0x123   : >> { %341 = vst [vmem:[#allocation4 + $0x10] sm:$0xff] %v339_v36  ;;  %305 = vst [vmem:[#allocation4] sm:$0xff] %v304_v37 }
 0x126   : >> { %v359_v38 = vpop.xlane.xlu1 %358  ;;  %v321_v39 = vpop.xlane.xlu0 %320 }
 0x127   : >> { %361 = vst [vmem:[#allocation4 + $0x18] sm:$0xff] %v359_v38  ;;  %323 = vst [vmem:[#allocation4 + $0x8] sm:$0xff] %v321_v39 }
 0x128   : >> { %363 = vst [vmem:[%s362_s21] sm:$0x1] %v880_v35 }
 0x12a   : >> { %v370_v41 = vpop.xlane.xlu0 %369 }
 0x12b   : >> { %v376_v42 = vsel %vm1023_vm0, %v370_v41, %v375_v40 }
 0x12c   : >> { %377 = vst [vmem:[%s961_s9] sm:$0x1] %v376_v42 }
 0x12f   : >> { %v384_v48 = vld [vmem:[%s379_s23] sm:$0xff]  ;;  %v746_v49 = vld [vmem:[%s379_s23 + $0x8] sm:$0xff]  ;;  %v748_v50 = vld [vmem:[%s379_s23 + $0x10] sm:$0xff] }
 0x130   : >> { %v386_v51 = vmul.f32 %v385_v43, %v384_v48  ;;  %v392_v52 = vmul.f32 %v747_v44, %v746_v49  ;;  %v750_v53 = vld [vmem:[%s379_s23 + $0x18] sm:$0xff]  ;;  %v399_v56 = vmul.f32 %v749_v45, %v748_v50  ;;  %s417_s23 = smov %s379_s23 }
 0x131   : >> { %v406_v54 = vmul.f32 %v751_v47, %v750_v53  ;;  %v425_v13 = vld [vmem:[%s417_s23] sm:$0xff]  ;;  %v752_v17 = vld [vmem:[%s417_s23 + $0x8] sm:$0xff]  ;;  %v755_v18 = vld [vmem:[%s417_s23 + $0x10] sm:$0xff] }
 0x132   : >> { %v393_v55 = vadd.f32 %v392_v52, %v386_v51  ;;  %v758_v11 = vld [vmem:[%s417_s23 + $0x18] sm:$0xff] }
 0x133   : >> { %v408_v58 = vsel %vm407_vm1, %v406_v54, 0.0  ;;  %v516_v39 = vld [vmem:[#allocation2] sm:$0x3] (%p188_p9) }
 0x134   : >> { %v400_v57 = vadd.f32 %v399_v56, %v393_v55  ;;  %519 = vst [vmem:[%s160_s15] sm:$0x3] (%p188_p9), %v516_v39 }
 0x136   : >> { %v409_v59 = vadd.f32 %v408_v58, %v400_v57 }
 0x138   : >> { %v410_v60 = vrot.slane %v409_v59, 4 }
 0x13a   : >> { %v411_v61 = vadd.f32 %v410_v60, %v409_v59 }
 0x13c   : >> { %v412_v62 = vrot.slane %v411_v61, 2 }
 0x13e   : >> { %v413_v63 = vadd.f32 %v412_v62, %v411_v61 }
 0x140   : >> { %v414_v2 = vrot.slane %v413_v63, 1 }
 0x142   : >> { %v415_v5 = vadd.f32 %v414_v2, %v413_v63 }
 0x144   : >> { %v421_v16 = vmul.f32 %v415_v5, %v370_v41 }
 0x146   : >> { %v426_v21 = vmul.f32 %v425_v13, %v421_v16  ;;  %v446_v22 = vmul.f32 %v752_v17, %v421_v16  ;;  %v467_v23 = vmul.f32 %v755_v18, %v421_v16  ;;  %v488_v24 = vmul.f32 %v758_v11, %v421_v16 }
 0x148   : >> { %v430_v26 = vsub.f32 %v427_v6, %v426_v21  ;;  %v451_v27 = vsub.f32 %v753_v7, %v446_v22  ;;  %v472_v12 = vsub.f32 %v756_v8, %v467_v23  ;;  %v493_v10 = vsub.f32 %v759_v15, %v488_v24 }
 0x14a   : >> { %v431_v28 = vsel %vm429_vm8, %v430_v26, %v427_v6  ;;  %v452_v29 = vsel %vm429_vm8, %v451_v27, %v753_v7  ;;  %v473_v30 = vsel %vm429_vm8, %v472_v12, %v756_v8  ;;  %v494_v31 = vsel %vm429_vm8, %v493_v10, %v759_v15 }
 0x14b   : >> { %v439_v32 = vsel %vm1071_vm4, %v425_v13, %v431_v28  ;;  %v460_v33 = vsel %vm1080_vm7, %v752_v17, %v452_v29  ;;  %v481_v34 = vsel %vm1088_vm9, %v755_v18, %v473_v30  ;;  %v502_v36 = vsel %vm1094_vm10, %v758_v11, %v494_v31 }
 0x14c   : >> { %440 = vst [vmem:[%s1062_s18] sm:$0xff] %v439_v32  ;;  %754 = vst [vmem:[%s1062_s18 + $0x8] sm:$0xff] %v460_v33 }
 0x14d   : >> { %757 = vst [vmem:[%s1062_s18 + $0x10] sm:$0xff] %v481_v34  ;;  %760 = vst [vmem:[%s1062_s18 + $0x18] sm:$0xff] %v502_v36 }
 0x152   : > { %190 = sbr.rel (!%p188_p9) target bundleno = 36 (0x24), region = 202 }
 0x154   : >> { %v505_v37 = vld [vmem:[%s504_s24] ss:$0 sm:$0xff] }
 0x155   : >> { %v510_v38 = vsel %vm1023_vm0, %v1007_v0, %v505_v37 }
 0x156   : >> { %511 = vst [vmem:[%s504_s24] sm:$0x1] %v510_v38 }
 0x157   : > { %p582_p10 = scmp.lt.s32.totalorder (%p933_p3), %s865_s11, 0  ;;  %s583_s30 = ssub.s32 (%p933_p3), 0, %s865_s11  ;;  %v606_v41 = vld [vmem:[%s160_s15] sm:$0x3] (%p933_p3) }
 0x158   : > { %s765_s3 = smin.u32 (%p933_p3), %s865_s11, %s583_s30 }
 0x159   : > { %s585_s4 = sshrl.u32 (%p933_p3), %s765_s3, 3 }
 0x15a   : > { %s586_s5 = ssub.s32 (%p933_p3), 0, %s585_s4 }
 0x15b   : > { %581 = sbr.rel (!%p933_p3) target bundleno = 356 (0x164), region = 99 }
 0x15d   : > { %v568_v35 = vld [vmem:[%s955_s18] sm:$0xff]  ;;  %v570_v40 = vld [vmem:[%s955_s18 + $0x8] sm:$0xff]  ;;  %v572_v0 = vld [vmem:[%s955_s18 + $0x10] sm:$0xff] }
 0x15e   : > { %v574_v20 = vld [vmem:[%s955_s18 + $0x18] sm:$0xff]  ;;  %569 = vst [vmem:[%s533_s29] sm:$0xff] %v568_v35  ;;  %571 = vst [vmem:[%s533_s29 + $0x8] sm:$0xff] %v570_v40 }
 0x15f   : > { %573 = vst [vmem:[%s533_s29 + $0x10] sm:$0xff] %v572_v0  ;;  %575 = vst [vmem:[%s533_s29 + $0x18] sm:$0xff] %v574_v20 }
 0x160   : > { %s1174_s5 = smov (!%p582_p10, %s586_s5), %s585_s4 }
 0x161   : > { %s766_s6 = sshll.u32 %s1174_s5, 1 }
 0x162   : > { %s589_s17 = scalar_lea.vmem %s1155_s2, %s766_s6 }
 0x163   : > { %607 = vst [vmem:[%s589_s17] sm:$0x3] %v606_v41 }
 0x164 PF: > { %s9_s13 = sadd.s32 1, %s873_s13   ;;  %s1167_s9 = smov %s861_s10 }
 0x165   : > { %p6_p11 = scmp.ge.s32.totalorder %s9_s13, 4   ;;  %s1168_s10 = smov %s939_s25 }
 0x166   : > { %s1169_s11 = smov %s869_s12  ;;  %s1170_s12 = smov %s1172_s14 }
 0x167   :  { %8 = sbr.rel (!%p6_p11) target bundleno = 3 (0x3), region = 213 }

// kernel: custom-call.71
= control target key start
LH: loop header
LB: loop body
LE: loop exit
PB: predicated region body
PF: predicated region fallthrough
CT: control target
= control target key end

     0   :  { %s742_s9 = smov 0   ;;  %s744_s10 = smov 0   ;;  %s924_s0 = inlined_call_operand.vmem [shape: f32[2,10,5], index: 0, kind: input, shape index: {}]   ;;  %s925_s1 = inlined_call_operand.vmem [shape: f32[2,10,5], index: 1, kind: output, shape index: {0}]   ;;  %s926_s2 = inlined_call_operand.vmem [shape: f32[2,5], index: 2, kind: output, shape index: {1}]  }
   0x1   :  { %s746_s11 = smov 0   ;;  %s748_s12 = smov 0  }
   0x2   :  { %s750_s13 = smov 0  }
   0x3 LB: > { %s28_s14 = sadd.s32 1, %s715_s12  ;;  %s584_s15 = sadd.s32 4294967295, %s719_s13   ;;  %s719_s13 = sphi %s750_s13, %s9_s13   ;;  %s715_s12 = sphi %s748_s12, %s933_s12   ;;  %s711_s11 = sphi %s746_s11, %s932_s11   ;;  %s707_s10 = sphi %s744_s10, %s931_s10   ;;  %s703_s9 = sphi %s742_s9, %s930_s9  }
   0x4   : > { %p30_p0 = scmp.ge.s32.totalorder %s28_s14, 2  ;;  %s33_s16 = ssub.s32 0, %s715_s12 }
   0x5   : > { %s586_s17 = smin.u32 %s715_s12, %s33_s16  ;;  %p57_p1 = scmp.ne.s32.totalorder %s707_s10, %s703_s9 }
   0x6   : > { %s935_s14 = smov (%p30_p0, %s28_s14), 0  ;;  %s35_s18 = sshrl.u32 %s586_s17, 3 }
   0x7   : > { %s39_s19 = ssub.s32 0, %s935_s14  ;;  %p58_p2 = scmp.eq.s32.totalorder %s584_s15, 1 }
   0x8   : > { %s587_s20 = smin.u32 %s39_s19, %s935_s14  ;;  %s47_s24 = sadd.s32 1, %s707_s10 }
   0x9   : > { %s41_s21 = sshrl.u32 %s587_s20, 3  ;;  %p779_p3 = por %p58_p2, %p57_p1 }
   0xa   : > { %s44_s23 = ssub.s32 %s35_s18, %s41_s21  ;;  %p589_p5 = scmp.ge.s32.totalorder %s719_s13, 2 }
   0xb   : > { %p45_p4 = scmp.eq.s32.totalorder %s44_s23, 0  ;;  %s82_s26 = sand.u32 (!%p589_p5), 1, %s719_s13  }
   0xc   : > { %80 = sbr.rel (%p589_p5) target bundleno = 19 (0x13), region = 16  ;;  %s615_s27 = sshll.u32 (!%p589_p5), %s715_s12, 4 }
   0xd   : > { %s785_s25 = scalar_select %p45_p4, %s707_s10, %s47_s24  }
   0xe   : > { %s590_s28 = sshll.u32 (!%p589_p5), %s82_s26, 4  ;;  %s90_s3 = scalar_lea.vmem (!%p589_p5), %s924_s0, %s615_s27 }
   0xf   : > { %s84_s4 = scalar_lea.vmem (!%p589_p5), [#allocation0], %s590_s28 }
  0x11   : > { %v121_v0 = vld [vmem:[%s90_s3] sm:$0xff]  ;;  %v123_v1 = vld [vmem:[%s90_s3 + $0x8] sm:$0xff] }
  0x12   : > { %122 = vst [vmem:[%s84_s4] sm:$0xff] %v121_v0  ;;  %124 = vst [vmem:[%s84_s4 + $0x8] sm:$0xff] %v123_v1 }
  0x13 PF: > { %p593_p6 = scmp.ge.s32.totalorder %s719_s13, 1  ;;  %p129_p7 = scmp.lt.s32.totalorder %s719_s13, 3 }
  0x15   : > { %p130_p8 = pnand %p593_p6, %p129_p7 }
  0x17   : > { %133 = sbr.rel (%p130_p8) target bundleno = 346 (0x15a), region = 54 }
  0x1c   : > { %s136_s5 = sand.u32 1, %s584_s15   ;;  %s150_s6 = sand.u32 1, %s703_s9   ;;  %v725_v4 = vmov 0.0  }
  0x1d   : > { %s594_s7 = sshll.u32 %s136_s5, 4  ;;  %s798_s8 = sshll.u32 %s150_s6, 1 }
  0x1e   : > { %s161_s16 = sand.u32 7, %s711_s11   ;;  %s138_s17 = scalar_lea.vmem [#allocation0], %s594_s7 }
  0x1f   : > { %v163_v2 = vld [vmem:[%s138_s17] sm:$0xff]  ;;  %v597_v3 = vld [vmem:[%s138_s17 + $0x8] sm:$0xff]  ;;  %s801_s18 = scalar_lea.vmem [#allocation1], %s594_s7  ;;  %s805_s19 = scalar_lea.vmem [#allocation2], %s161_s16 }
  0x20   : > { %164 = vst [vmem:[%s801_s18] sm:$0xff] %v163_v2  ;;  %598 = vst [vmem:[%s801_s18 + $0x8] sm:$0xff] %v597_v3  ;;  %s152_s9 = scalar_lea.vmem [#allocation3], %s798_s8  ;;  %s809_s15 = smov 0  }
  0x21   : > { %169 = vst [vmem:[%s805_s19] sm:$0x1] %v725_v4 }
  0x22 LB: >> { %v177_v5 = vlaneseq  ;;  %v819_v8 = vstv %s723_s15  ;;  %s214_s20 = scalar_lea.vmem %s801_s18, %s723_s15 [#allocation1]  ;;  %s290_s21 = scalar_lea.vmem [#allocation4], %s723_s15  ;;  %s723_s15 = sphi %s809_s15, %s175_s15  }
  0x23   : >> { %s307_s23 = smov [#allocation4] }
  0x24   : >> { %v816_v7 = vshrl.u32 %v177_v5, 7  ;;  %v848_v56 = vand.u32 127, %v177_v5 }
  0x26   : >> { %vm181_vm0 = vcmp.gt.s32.totalorder %v816_v7, %v819_v8  ;;  %v188_v9 = vadd.s32 8, %v816_v7  ;;  %v253_v7 = vmov %v816_v7  ;;  %vm852_vm14 = vcmp.eq.s32.totalorder %v848_v56, %v819_v8 }
  0x27   : >> { %v176_v6 = vld [vmem:[%s801_s18] sm:$0xff]  ;;  %v599_v11 = vld [vmem:[%s801_s18 + $0x8] sm:$0xff]  ;;  %v272_v52 = vadd.s32 8, %v253_v7  ;;  %s250_s18 = smov %s801_s18  ;;  %vm257_vm12 = vcmp.gt.s32.totalorder %v253_v7, %v819_v8  ;;  %v310_v7 = vmov %v816_v7 }
  0x28   : >> { %v182_v10 = vsel %vm181_vm0, %v176_v6, 0.0  ;;  %vm190_vm1 = vcmp.gt.s32.totalorder %v188_v9, %v819_v8  ;;  %vm191_vm2 = vcmp.lt.s32.totalorder %v188_v9, 10  ;;  %v215_v22 = vld [vmem:[%s214_s20] ss:$0 sm:$0xff]  ;;  %v601_v55 = vld [vmem:[%s250_s18 + $0x8] sm:$0xff] }
  0x29   : >> { %v183_v12 = vmul.f32 %v182_v10, %v182_v10  ;;  %vm192_vm3 = vmand %vm190_vm1, %vm191_vm2  ;;  %v216_v23 = vand.u32 2147483647, %v215_v22  ;;  %vm241_vm9 = vcmp.lt.f32.partialorder %v215_v22, 0.0  ;;  %vm274_vm10 = vcmp.gt.s32.totalorder %v272_v52, %v819_v8  ;;  %v254_v54 = vld [vmem:[%s250_s18] sm:$0xff]  ;;  %s306_s18 = smov %s801_s18 }
  0x2a   : >> { %v193_v13 = vsel %vm192_vm3, %v599_v11, 0.0  ;;  %vm275_vm11 = vcmp.lt.s32.totalorder %v272_v52, 10  ;;  %v258_v58 = vsel %vm257_vm12, %v254_v54, 0.0  ;;  %v303_v9 = vld [vmem:[%s805_s19] ss:$0 sm:$0xff]  ;;  %vm343_vm2 = vcmp.gt.s32.totalorder %v848_v56, %v819_v8 }
  0x2b   : >> { %v194_v14 = vmul.f32 %v193_v13, %v193_v13  ;;  %v217_v28 = vmax.f32 %v216_v23, 0.0  ;;  %vm276_vm13 = vmand %vm274_vm10, %vm275_vm11 }
  0x2c   : >> { %v277_v59 = vsel %vm276_vm13, %v601_v55, 0.0 }
  0x2d   : >> { %v195_v15 = vadd.f32 %v194_v14, %v183_v12  ;;  %v726_v14 = vmov 1.0  }
  0x2f   : >> { %v196_v16 = vrot.slane %v195_v15, 4 }
  0x31   : >> { %v197_v17 = vadd.f32 %v196_v16, %v195_v15  ;;  %v315_v15 = vadd.s32 8, %v310_v7  ;;  %v313_v16 = vld [vmem:[%s306_s18] sm:$0xff]  ;;  %v334_v7 = vmov %v816_v7 }
  0x32   : >> { %vm351_vm0 = vcmp.ge.s32.totalorder %v334_v7, %v819_v8 }
  0x33   : >> { %v198_v18 = vrot.slane %v197_v17, 2  ;;  %vm321_vm15 = vcmp.lt.s32.totalorder %v315_v15, 10  ;;  %vm352_vm3 = vmand %vm852_vm14, %vm351_vm0 }
  0x35   : >> { %v199_v19 = vadd.f32 %v198_v18, %v197_v17  ;;  %v603_v17 = vld [vmem:[%s306_s18 + $0x8] sm:$0xff]  ;;  %s330_s18 = smov %s306_s18 }
  0x36   : >> { %s376_s24 = scalar_lea.vmem %s330_s18, %s723_s15  ;;  %s175_s15 = sadd.s32 1, %s723_s15  }
  0x37   : >> { %v200_v20 = vrot.slane %v199_v19, 1  ;;  %p172_p9 = scmp.ge.s32.totalorder %s175_s15, 5  }
  0x38   : > { %s616_s26 = sshll.u32 (%p172_p9), %s711_s11, 4 }
  0x39   : >> { %v826_v21 = vadd.f32 %v200_v20, %v199_v19  ;;  %s405_s29 = scalar_lea.vmem (%p172_p9), %s925_s1, %s616_s26 }
  0x3b   : >> { %667 = vrsqrt.f32 %v826_v21  ;;  %vm204_vm4 = vcmp.eq.f32.partialorder %v826_v21, inf  ;;  %v207_v25 = vand.u32 2147483648, %v826_v21  ;;  %vm206_vm5 = vcmp.eq.f32.partialorder %v826_v21, 0.0 }
  0x48   : >> { %v668_v24 = vpop.eup %667 }
  0x49   : >> { %v203_v26 = vmul.f32 %v668_v24, %v826_v21 }
  0x4b   : >> { %v205_v27 = vsel %vm204_vm4, %v826_v21, %v203_v26 }
  0x4c   : >> { %v208_v29 = vsel %vm206_vm5, %v207_v25, %v205_v27 }
  0x4d   : >> { %v218_v30 = vand.u32 2147483647, %v208_v29  ;;  %v355_v29 = vadd.s32 8, %v334_v7 }
  0x4f   : >> { %v219_v31 = vmax.f32 %v217_v28, %v218_v30  ;;  %vm372_vm1 = vcmp.ge.s32.totalorder %v355_v29, %v819_v8 }
  0x50   : >> { %vm373_vm4 = vmand %vm852_vm14, %vm372_vm1 }
  0x51   : >> { %669 = vrcp.f32 %v219_v31  ;;  %vm231_vm8 = vcmp.eq.f32.partialorder %v219_v31, 0.0 }
  0x5e   : >> { %v670_v32 = vpop.eup %669 }
  0x5f   : >> { %v221_v33 = vmul.f32 %v670_v32, %v216_v23  ;;  %v224_v34 = vmul.f32 0.0, %v670_v32  ;;  %v228_v35 = vmul.f32 %v670_v32, %v218_v30 }
  0x61   : >> { %v222_v36 = vmul.f32 %v221_v33, %v221_v33  ;;  %v225_v37 = vmul.f32 %v224_v34, %v224_v34  ;;  %v229_v38 = vmul.f32 %v228_v35, %v228_v35  ;;  %v605_v35 = vld [vmem:[%s330_s18 + $0x8] sm:$0xff] }
  0x63   : >> { %v226_v39 = vadd.f32 %v225_v37, %v222_v36 }
  0x65   : >> { %v230_v40 = vadd.f32 %v229_v38, %v226_v39 }
  0x67   : >> { %671 = vrsqrt.f32 %v230_v40  ;;  %vm234_vm6 = vcmp.eq.f32.partialorder %v230_v40, inf  ;;  %v237_v42 = vand.u32 2147483648, %v230_v40  ;;  %vm236_vm7 = vcmp.eq.f32.partialorder %v230_v40, 0.0 }
  0x74   : >> { %v672_v41 = vpop.eup %671 }
  0x75   : >> { %v233_v43 = vmul.f32 %v672_v41, %v230_v40 }
  0x77   : >> { %v235_v44 = vsel %vm234_vm6, %v230_v40, %v233_v43 }
  0x78   : >> { %v238_v45 = vsel %vm236_vm7, %v237_v42, %v235_v44 }
  0x79   : >> { %v239_v46 = vmul.f32 %v238_v45, %v219_v31  ;;  %v341_v31 = vld [vmem:[%s330_s18] sm:$0xff] }
  0x7b   : >> { %v240_v47 = vsel %vm231_vm8, 0.0, %v239_v46 }
  0x7c   : >> { %v242_v48 = vxor.u32 2147483648, %v240_v47 }
  0x7e   : >> { %v243_v49 = vsel %vm241_vm9, %v240_v47, %v242_v48 }
  0x7f   : >> { %v840_v50 = vsel %vm206_vm5, %v215_v22, %v243_v49  ;;  %673 = vrcp.f32 %v243_v49  ;;  %v244_v53 = vsub.f32 %v243_v49, %v215_v22 }
  0x80   : >> { %v249_v51 = vsub.f32 %v215_v22, %v840_v50 }
  0x82   : >> { %675 = vrcp.f32 %v249_v51 }
  0x8c   : >> { %v674_v57 = vpop.eup %673 }
  0x8d   : >> { %v246_v60 = vmul.f32 %v674_v57, %v244_v53 }
  0x8f   : >> { %v676_v61 = vpop.eup %675  ;;  %v248_v63 = vsel %vm206_vm5, 0.0, %v246_v60 }
  0x90   : >> { %v260_v0 = vmul.f32 %v676_v61, %v258_v58  ;;  %v279_v1 = vmul.f32 %v676_v61, %v277_v59  ;;  %v296_v2 = vsel %vm852_vm14, %v248_v63, 0.0 }
  0x91   : >> { %297 = vadd.xlane.f32.xlu1 %v296_v2 }
  0x92   : >> { %v261_v3 = vsel %vm206_vm5, 0.0, %v260_v0  ;;  %v280_v4 = vsel %vm206_vm5, 0.0, %v279_v1 }
  0x93   : >> { %v266_v5 = vsel %vm852_vm14, %v261_v3, 0.0  ;;  %v285_v6 = vsel %vm852_vm14, %v280_v4, 0.0 }
  0x94   : >> { %267 = vadd.xlane.f32.xlu0 %v266_v5 }
  0x98   : >> { %286 = vadd.xlane.f32.xlu0 %v285_v6 }
 0x11a   : >> { %v298_v10 = vpop.xlane.xlu1 %297 }
 0x11b   : >> { %v304_v11 = vsel %vm852_vm14, %v298_v10, %v303_v9 }
 0x11c   : >> { %305 = vst [vmem:[%s805_s19] sm:$0x1] %v304_v11 }
 0x11d   : >> { %v268_v12 = vpop.xlane.xlu0 %267 }
 0x11e   : >> { %269 = vst [vmem:[#allocation4] sm:$0xff] %v268_v12 }
 0x121   : >> { %v287_v13 = vpop.xlane.xlu0 %286 }
 0x122   : >> { %289 = vst [vmem:[#allocation4 + $0x8] sm:$0xff] %v287_v13 }
 0x123   : >> { %291 = vst [vmem:[%s290_s21] sm:$0x1] %v726_v14  ;;  %v388_v44 = vld [vmem:[#allocation2] sm:$0x3] (%p172_p9) }
 0x124   : > { %391 = vst [vmem:[%s152_s9] sm:$0x3] (%p172_p9), %v388_v44 }
 0x12a   : >> { %v312_v18 = vld [vmem:[%s307_s23] sm:$0xff]  ;;  %v602_v19 = vld [vmem:[%s307_s23 + $0x8] sm:$0xff]  ;;  %s331_s23 = smov %s307_s23 }
 0x12b   : >> { %v314_v20 = vmul.f32 %v313_v16, %v312_v18  ;;  %v320_v21 = vmul.f32 %v603_v17, %v602_v19  ;;  %v339_v33 = vld [vmem:[%s331_s23] sm:$0xff]  ;;  %v604_v34 = vld [vmem:[%s331_s23 + $0x8] sm:$0xff] }
 0x12d   : >> { %v322_v22 = vsel %vm321_vm15, %v320_v21, 0.0 }
 0x12e   : >> { %v323_v23 = vadd.f32 %v322_v22, %v314_v20 }
 0x130   : >> { %v324_v24 = vrot.slane %v323_v23, 4 }
 0x132   : >> { %v325_v25 = vadd.f32 %v324_v24, %v323_v23 }
 0x134   : >> { %v326_v26 = vrot.slane %v325_v25, 2 }
 0x136   : >> { %v327_v27 = vadd.f32 %v326_v26, %v325_v25 }
 0x138   : >> { %v328_v28 = vrot.slane %v327_v27, 1 }
 0x13a   : >> { %v329_v30 = vadd.f32 %v328_v28, %v327_v27 }
 0x13c   : >> { %v335_v32 = vmul.f32 %v329_v30, %v298_v10 }
 0x13e   : >> { %v340_v36 = vmul.f32 %v339_v33, %v335_v32  ;;  %v360_v37 = vmul.f32 %v604_v34, %v335_v32 }
 0x140   : >> { %v344_v38 = vsub.f32 %v341_v31, %v340_v36  ;;  %v365_v7 = vsub.f32 %v605_v35, %v360_v37 }
 0x142   : >> { %v345_v39 = vsel %vm343_vm2, %v344_v38, %v341_v31  ;;  %v366_v40 = vsel %vm343_vm2, %v365_v7, %v605_v35 }
 0x143   : >> { %v353_v41 = vsel %vm352_vm3, %v339_v33, %v345_v39  ;;  %v374_v42 = vsel %vm373_vm4, %v604_v34, %v366_v40 }
 0x144   : >> { %354 = vst [vmem:[%s330_s18] sm:$0xff] %v353_v41  ;;  %606 = vst [vmem:[%s330_s18 + $0x8] sm:$0xff] %v374_v42 }
 0x149   : > { %174 = sbr.rel (!%p172_p9) target bundleno = 34 (0x22), region = 184 }
 0x14b   : >> { %v377_v43 = vld [vmem:[%s376_s24] ss:$0 sm:$0xff] }
 0x14c   : >> { %v382_v8 = vsel %vm852_vm14, %v840_v50, %v377_v43 }
 0x14d   : >> { %383 = vst [vmem:[%s376_s24] sm:$0x1] %v382_v8 }
 0x14e   : > { %p446_p10 = scmp.lt.s32.totalorder (%p779_p3), %s711_s11, 0  ;;  %s447_s30 = ssub.s32 (%p779_p3), 0, %s711_s11  ;;  %v470_v47 = vld [vmem:[%s152_s9] sm:$0x3] (%p779_p3) }
 0x14f   : > { %s611_s3 = smin.u32 (%p779_p3), %s711_s11, %s447_s30 }
 0x150   : > { %s449_s4 = sshrl.u32 (%p779_p3), %s611_s3, 3 }
 0x151   : > { %445 = sbr.rel (!%p779_p3) target bundleno = 346 (0x15a), region = 99  ;;  %s450_s5 = ssub.s32 (%p779_p3), 0, %s449_s4 }
 0x154   : > { %v436_v45 = vld [vmem:[%s801_s18] sm:$0xff]  ;;  %v438_v46 = vld [vmem:[%s801_s18 + $0x8] sm:$0xff] }
 0x155   : > { %437 = vst [vmem:[%s405_s29] sm:$0xff] %v436_v45  ;;  %439 = vst [vmem:[%s405_s29 + $0x8] sm:$0xff] %v438_v46 }
 0x156   : > { %s937_s5 = smov (!%p446_p10, %s450_s5), %s449_s4 }
 0x157   : > { %s612_s6 = sshll.u32 %s937_s5, 1 }
 0x158   : > { %s453_s17 = scalar_lea.vmem %s926_s2, %s612_s6 }
 0x159   : > { %471 = vst [vmem:[%s453_s17] sm:$0x3] %v470_v47 }
 0x15a PF: > { %s9_s13 = sadd.s32 1, %s719_s13   ;;  %s930_s9 = smov %s707_s10 }
 0x15b   : > { %p6_p11 = scmp.ge.s32.totalorder %s9_s13, 4   ;;  %s931_s10 = smov %s785_s25 }
 0x15c   : > { %s932_s11 = smov %s715_s12  ;;  %s933_s12 = smov %s935_s14 }
 0x15d   :  { %8 = sbr.rel (!%p6_p11) target bundleno = 3 (0x3), region = 195 }

// kernel: custom-call.72
= control target key start
LH: loop header
LB: loop body
LE: loop exit
PB: predicated region body
PF: predicated region fallthrough
CT: control target
= control target key end

     0   :  { %s256_s6 = smov 0   ;;  %s284_s0 = inlined_call_operand.vmem [shape: f32[2,5,5], index: 0, kind: input, shape index: {}]   ;;  %s285_s1 = inlined_call_operand.vmem [shape: f32[2,5,5], index: 1, kind: output, shape index: {}]  }
   0x1 LB: > { %s214_s7 = sadd.s32 4294967295, %s244_s6   ;;  %p216_p0 = scmp.ge.s32.totalorder %s244_s6, 2  ;;  %s244_s6 = sphi %s256_s6, %s7_s6  }
   0x2   : > { %s23_s8 = sand.u32 (!%p216_p0), 1, %s244_s6   ;;  %s218_s9 = sshll.u32 (!%p216_p0), %s244_s6, 3 }
   0x3   : > { %21 = sbr.rel (%p216_p0) target bundleno = 10 (0xa), region = 16  ;;  %s217_s10 = sshll.u32 (!%p216_p0), %s23_s8, 3 }
   0x4   : > { %s27_s13 = scalar_lea.vmem (!%p216_p0), %s284_s0, %s218_s9  ;;  %s25_s14 = scalar_lea.vmem (!%p216_p0), [#allocation0], %s217_s10 }
   0x8   : > { %v56_v0 = vld [vmem:[%s27_s13] sm:$0xff] }
   0x9   : > { %57 = vst [vmem:[%s25_s14] sm:$0xff] %v56_v0 }
   0xa PF: > { %p219_p1 = scmp.ge.s32.totalorder %s244_s6, 1  ;;  %p62_p2 = scmp.lt.s32.totalorder %s244_s6, 3 }
   0xc   : > { %p63_p3 = pnand %p219_p1, %p62_p2 }
   0xd   : > { %s69_s15 = sand.u32 (!%p63_p3), 1, %s214_s7   ;;  %s227_s18 = sshll.u32 (!%p63_p3), %s214_s7, 3 }
   0xe   : > { %66 = sbr.rel (%p63_p3) target bundleno = 591 (0x24f), region = 54  ;;  %s220_s16 = sshll.u32 (!%p63_p3), %s69_s15, 3 }
   0xf   : > { %s71_s17 = scalar_lea.vmem (!%p63_p3), [#allocation0], %s220_s16  ;;  %s142_s21 = scalar_lea.vmem (!%p63_p3), %s285_s1, %s227_s18 }
  0x13   : > { %v80_v1 = vlaneseq  ;;  %vm94_vm0 = vcmask 39936   ;;  %v86_v4 = vld [vmem:[%s71_s17] sm:$0xff] }
  0x14   : > { %v222_v5 = vld [vmem:[%s71_s17 + $0x1] ss:$0 sm:$0xff]  ;;  %v223_v10 = vld [vmem:[%s71_s17 + $0x2] ss:$0 sm:$0xff]  ;;  %v224_v15 = vld [vmem:[%s71_s17 + $0x3] ss:$0 sm:$0xff] }
  0x15   : > { %v81_v2 = vand.u32 127, %v80_v1  ;;  %v83_v3 = vshrl.u32 %v80_v1, 7  ;;  %v95_v6 = vsel %vm94_vm0, %v222_v5, 0.0  ;;  %v106_v11 = vsel %vm94_vm0, %v223_v10, 0.0  ;;  %v225_v20 = vld [vmem:[%s71_s17 + $0x4] ss:$0 sm:$0xff] }
  0x16   : > { %v117_v16 = vsel %vm94_vm0, %v224_v15, 0.0  ;;  %v128_v21 = vsel %vm94_vm0, %v225_v20, 0.0 }
  0x17   : > { %vm85_vm1 = vcmp.eq.s32.totalorder %v81_v2, %v83_v3  ;;  %vm89_vm2 = vcmp.eq.s32.totalorder %v81_v2, 0  ;;  %vm98_vm3 = vcmp.eq.s32.totalorder %v81_v2, 1  ;;  %vm109_vm4 = vcmp.eq.s32.totalorder %v81_v2, 2 }
  0x18   : > { %v90_v7 = vsel %vm89_vm2, %v86_v4, 1.0  ;;  %vm120_vm5 = vcmp.eq.s32.totalorder %v81_v2, 3  ;;  %vm131_vm6 = vcmp.eq.s32.totalorder %v81_v2, 4 }
  0x19   : > { %v91_v8 = vsel %vm85_vm1, %v90_v7, 0.0 }
  0x1a   : > { %v99_v9 = vmul.f32 %v95_v6, %v91_v8 }
  0x1c   : > { %100 = vadd.xlane.f32.xlu0 %v99_v9 }
  0xa5   : > { %v101_v12 = vpop.xlane.xlu0 %100 }
  0xa6   : > { %v102_v13 = vsel %vm98_vm3, %v101_v12, %v91_v8 }
  0xa7   : > { %v110_v14 = vmul.f32 %v106_v11, %v102_v13 }
  0xa9   : > { %111 = vadd.xlane.f32.xlu0 %v110_v14 }
 0x132   : > { %v112_v17 = vpop.xlane.xlu0 %111 }
 0x133   : > { %v113_v18 = vsel %vm109_vm4, %v112_v17, %v102_v13 }
 0x134   : > { %v121_v19 = vmul.f32 %v117_v16, %v113_v18 }
 0x136   : > { %122 = vadd.xlane.f32.xlu1 %v121_v19 }
 0x1bf   : > { %v123_v22 = vpop.xlane.xlu1 %122 }
 0x1c0   : > { %v124_v23 = vsel %vm120_vm5, %v123_v22, %v113_v18 }
 0x1c1   : > { %v132_v24 = vmul.f32 %v128_v21, %v124_v23 }
 0x1c3   : > { %133 = vadd.xlane.f32.xlu1 %v132_v24 }
 0x24c   : > { %v134_v25 = vpop.xlane.xlu1 %133 }
 0x24d   : > { %v135_v26 = vsel %vm131_vm6, %v134_v25, %v124_v23 }
 0x24e   : > { %172 = vst [vmem:[%s142_s21] sm:$0xff] %v135_v26 }
 0x24f PF: > { %s7_s6 = sadd.s32 1, %s244_s6  }
 0x250   : > { %p4_p4 = scmp.ge.s32.totalorder %s7_s6, 4  }
 0x252   :  { %6 = sbr.rel (!%p4_p4) target bundleno = 1 (0x1), region = 122 }

// kernel: tapnet_forward.2
= control target key start
LH: loop header
LB: loop body
LE: loop exit
PB: predicated region body
PF: predicated region fallthrough
CT: control target
= control target key end

     0   :  { %s674_s12 = smov 0   ;;  %s765_s0 = inlined_call_operand.vmem [shape: bf16[2,16,128], index: 0, kind: input, shape index: {}]   ;;  %s766_s1 = inlined_call_operand.vmem [shape: bf16[2,16,32], index: 1, kind: input, shape index: {}]   ;;  %s767_s2 = inlined_call_operand.vmem [shape: f32[2,128,1], index: 2, kind: input, shape index: {}]   ;;  %s768_s3 = inlined_call_operand.vmem [shape: f32[2,128,32], index: 3, kind: output, shape index: {}]  }
   0x1 LB: > { %s574_s13 = sadd.s32 4294967295, %s651_s12   ;;  %p578_p0 = scmp.ge.s32.totalorder %s651_s12, 1  ;;  %s651_s12 = sphi %s674_s12, %s13_s12  }
   0x2   : > { %p157_p1 = scmp.lt.s32.totalorder %s651_s12, 3 }
   0x4   : > { %p158_p2 = pnand %p578_p0, %p157_p1 }
   0x5   : > { %p191_p3 = scmp.lt.s32.totalorder (!%p158_p2), %s574_s13, 1 }
   0x6   : > { %161 = sbr.rel (%p158_p2) target bundleno = 344 (0x158), region = 32 }
   0xb   : > { %v653_v0 = vmov 0   ;;  %s770_s13 = smov (!%p191_p3, %s574_s13), 1  ;;  %vm244_vm0 = vcmask 130048   ;;  %vm478_vm1 = vcmask 261120  }
   0xc   : > { %642 = vset.pattern.permute.xlu1 %v653_v0  ;;  %s599_s14 = sshll.u32 %s770_s13, 3  ;;  %s601_s15 = sshll.u32 %s770_s13, 7 }
   0xd   : > { %s195_s18 = scalar_lea.vmem %s765_s0, %s599_s14  ;;  %s200_s21 = scalar_lea.vmem %s766_s1, %s599_s14 }
   0xe   : > { %s697_s24 = scalar_lea.vmem %s767_s2, %s601_s15  ;;  %v643_v1 = vld [vmem:[%s195_s18] sm:$0xff]   ;;  %s728_s27 = scalar_lea.vmem %s768_s3, %s601_s15 }
   0xf   : > { %v644_v2 = vld [vmem:[%s200_s21] sm:$0xff]   ;;  %v367_v3 = vld [vmem:[%s697_s24 + $0x8] sm:$0xff]  ;;  %222 = vxpose.xlu0.c.b16.start.end [1/1] (short) %v643_v1, 128  ;;  %v368_v4 = vld [vmem:[%s697_s24 + $0x10] sm:$0xff] }
  0x10   : > { %612 = vmatprep.subr.bf16.mxu0 %v644_v2  ;;  %389 = vperm.xlu1 %642, %v367_v3   ;;  %v369_v5 = vld [vmem:[%s697_s24 + $0x18] sm:$0xff]  ;;  %v370_v6 = vld [vmem:[%s697_s24 + $0x20] sm:$0xff]  ;;  %v371_v7 = vld [vmem:[%s697_s24 + $0x28] sm:$0xff] }
  0x11   : > { %613 = vmatpush3.bf16.msra.mxu0 %v644_v2  ;;  %630 = vmatprep.subr.bf16.mxu1 %v644_v2  ;;  %v372_v8 = vld [vmem:[%s697_s24 + $0x30] sm:$0xff]  ;;  %v373_v9 = vld [vmem:[%s697_s24 + $0x38] sm:$0xff]  ;;  %v374_v10 = vld [vmem:[%s697_s24 + $0x40] sm:$0xff] }
  0x12   : > { %631 = vmatpush3.bf16.msra.mxu1 %v644_v2  ;;  %v375_v11 = vld [vmem:[%s697_s24 + $0x48] sm:$0xff]  ;;  %v376_v12 = vld [vmem:[%s697_s24 + $0x50] sm:$0xff]  ;;  %v366_v13 = vld [vmem:[%s697_s24] sm:$0xff] }
  0x13   : > { %v377_v14 = vld [vmem:[%s697_s24 + $0x58] sm:$0xff]  ;;  %v378_v15 = vld [vmem:[%s697_s24 + $0x60] sm:$0xff]  ;;  %v379_v16 = vld [vmem:[%s697_s24 + $0x68] sm:$0xff] }
  0x14   : > { %394 = vperm.xlu1 %642, %v368_v4   ;;  %v380_v17 = vld [vmem:[%s697_s24 + $0x70] sm:$0xff]  ;;  %v381_v18 = vld [vmem:[%s697_s24 + $0x78] sm:$0xff] }
  0x18   : > { %399 = vperm.xlu1 %642, %v369_v5   ;;  %641 = vset.pattern.permute.xlu0 %v653_v0 }
  0x1c   : > { %404 = vperm.xlu1 %642, %v370_v6  }
  0x20   : > { %409 = vperm.xlu1 %642, %v371_v7  }
  0x24   : > { %414 = vperm.xlu1 %642, %v372_v8  }
  0x28   : > { %419 = vperm.xlu1 %642, %v373_v9  }
  0x2c   : > { %424 = vperm.xlu1 %642, %v374_v10  }
  0x30   : > { %429 = vperm.xlu1 %642, %v375_v11  }
  0x34   : > { %434 = vperm.xlu1 %642, %v376_v12   ;;  %384 = vperm.xlu0 %641, %v366_v13  }
  0x38   : > { %439 = vperm.xlu1 %642, %v377_v14   ;;  %444 = vperm.xlu0 %641, %v378_v15  }
  0x3c   : > { %449 = vperm.xlu1 %642, %v379_v16   ;;  %454 = vperm.xlu0 %641, %v380_v17  }
  0x40   : > { %459 = vperm.xlu1 %642, %v381_v18  }
  0x71   : > { %v230_v19 = vpop.trf.xlu0 }
  0x72   : > { %614 = vmatprep.mubr.msk.bf16.mxu0 %vm244_vm0, %v230_v19 }
  0x75   : > { %v231_v20 = vpop.trf.xlu0 }
  0x76   : > { %615 = vmatmul.mubr.msk.bf16.vlgmr.msra.gmra.mxu0 %vm244_vm0, %v231_v20 }
  0x79   : > { %v232_v21 = vpop.trf.xlu0 }
  0x7a   : > { %618 = vmatprep.mubr.msk.bf16.mxu0 %vm244_vm0, %v232_v21 }
  0x7d   : > { %v233_v22 = vpop.trf.xlu0 }
  0x7e   : > { %619 = vmatmul.mubr.msk.bf16.gmra.mxu0 %vm244_vm0, %v233_v22 }
  0x81   : > { %v234_v23 = vpop.trf.xlu0 }
  0x82   : > { %622 = vmatprep.mubr.msk.bf16.mxu1 %vm244_vm0, %v234_v23 }
  0x85   : > { %v235_v24 = vpop.trf.xlu0 }
  0x86   : > { %623 = vmatmul.mubr.msk.bf16.vlgmr.msra.gmra.mxu1 %vm244_vm0, %v235_v24 }
  0x89   : > { %v236_v25 = vpop.trf.xlu0 }
  0x8a   : > { %626 = vmatprep.mubr.msk.bf16.mxu1 %vm244_vm0, %v236_v25 }
  0x8b   : > { %v390_v27 = vpop.permute.xlu1 %389 }
  0x8d   : > { %v237_v26 = vpop.trf.xlu0 }
  0x8e   : > { %627 = vmatmul.mubr.msk.bf16.gmra.mxu1 %vm244_vm0, %v237_v26 }
  0x8f   : > { %v395_v28 = vpop.permute.xlu1 %394 }
  0x93   : > { %v400_v29 = vpop.permute.xlu1 %399 }
  0x97   : > { %v405_v30 = vpop.permute.xlu1 %404 }
  0x9b   : > { %v410_v31 = vpop.permute.xlu1 %409 }
  0x9f   : > { %v415_v32 = vpop.permute.xlu1 %414 }
  0xa3   : > { %v420_v33 = vpop.permute.xlu1 %419 }
  0xa7   : > { %v425_v34 = vpop.permute.xlu1 %424 }
  0xab   : > { %v430_v40 = vpop.permute.xlu1 %429 }
  0xaf   : > { %v385_v36 = vpop.permute.xlu0 %384  ;;  %v435_v47 = vpop.permute.xlu1 %434 }
  0xb3   : > { %v440_v54 = vpop.permute.xlu1 %439  ;;  %v445_v58 = vpop.permute.xlu0 %444 }
  0xb7   : > { %v450_v62 = vpop.permute.xlu1 %449  ;;  %v455_v1 = vpop.permute.xlu0 %454 }
  0xbb   : > { %v460_v6 = vpop.permute.xlu1 %459 }
 0x136   : > { %v616_v35 = vpop.f32.mrf.mxu0 }
 0x137   : > { %v464_v37 = vmul.f32 %v616_v35, %v395_v28 }
 0x138   : > { %v303_v38 = vpop.f32.mrf.mxu0 }
 0x139   : > { %481 = vst.msk [vmem:[%s728_s27 + $0x10] sm:$0xff] %vm478_vm1, %v464_v37  ;;  %v462_v39 = vmul.f32 %v385_v36, %v303_v38 }
 0x13a   : > { %v617_v41 = vpop.f32.mrf.mxu0 }
 0x13b   : > { %479 = vst.msk [vmem:[%s728_s27] sm:$0xff] %vm478_vm1, %v462_v39  ;;  %v465_v42 = vmul.f32 %v617_v41, %v400_v29 }
 0x13c   : > { %v306_v43 = vpop.f32.mrf.mxu0 }
 0x13d   : > { %482 = vst.msk [vmem:[%s728_s27 + $0x18] sm:$0xff] %vm478_vm1, %v465_v42  ;;  %v463_v44 = vmul.f32 %v390_v27, %v306_v43 }
 0x13e   : > { %v620_v45 = vpop.f32.mrf.mxu0 }
 0x13f   : > { %480 = vst.msk [vmem:[%s728_s27 + $0x8] sm:$0xff] %vm478_vm1, %v463_v44  ;;  %v468_v46 = vmul.f32 %v620_v45, %v415_v32 }
 0x140   : > { %v319_v48 = vpop.f32.mrf.mxu0 }
 0x141   : > { %485 = vst.msk [vmem:[%s728_s27 + $0x30] sm:$0xff] %vm478_vm1, %v468_v46  ;;  %v466_v49 = vmul.f32 %v405_v30, %v319_v48 }
 0x142   : > { %v621_v50 = vpop.f32.mrf.mxu0 }
 0x143   : > { %483 = vst.msk [vmem:[%s728_s27 + $0x20] sm:$0xff] %vm478_vm1, %v466_v49  ;;  %v469_v51 = vmul.f32 %v621_v50, %v420_v33 }
 0x144   : > { %v322_v52 = vpop.f32.mrf.mxu0 }
 0x145   : > { %486 = vst.msk [vmem:[%s728_s27 + $0x38] sm:$0xff] %vm478_vm1, %v469_v51  ;;  %v467_v53 = vmul.f32 %v410_v31, %v322_v52 }
 0x146   : > { %v624_v55 = vpop.f32.mrf.mxu1 }
 0x147   : > { %484 = vst.msk [vmem:[%s728_s27 + $0x28] sm:$0xff] %vm478_vm1, %v467_v53  ;;  %v472_v56 = vmul.f32 %v624_v55, %v435_v47 }
 0x148   : > { %v335_v57 = vpop.f32.mrf.mxu1 }
 0x149   : > { %489 = vst.msk [vmem:[%s728_s27 + $0x50] sm:$0xff] %vm478_vm1, %v472_v56  ;;  %v470_v59 = vmul.f32 %v425_v34, %v335_v57 }
 0x14a   : > { %v625_v60 = vpop.f32.mrf.mxu1 }
 0x14b   : > { %487 = vst.msk [vmem:[%s728_s27 + $0x40] sm:$0xff] %vm478_vm1, %v470_v59  ;;  %v473_v61 = vmul.f32 %v625_v60, %v440_v54 }
 0x14c   : > { %v338_v63 = vpop.f32.mrf.mxu1 }
 0x14d   : > { %490 = vst.msk [vmem:[%s728_s27 + $0x58] sm:$0xff] %vm478_vm1, %v473_v61  ;;  %v471_v0 = vmul.f32 %v430_v40, %v338_v63 }
 0x14e   : > { %v628_v2 = vpop.f32.mrf.mxu1 }
 0x14f   : > { %488 = vst.msk [vmem:[%s728_s27 + $0x48] sm:$0xff] %vm478_vm1, %v471_v0  ;;  %v476_v3 = vmul.f32 %v628_v2, %v455_v1 }
 0x150   : > { %v351_v4 = vpop.f32.mrf.mxu1 }
 0x151   : > { %493 = vst.msk [vmem:[%s728_s27 + $0x70] sm:$0xff] %vm478_vm1, %v476_v3  ;;  %v474_v5 = vmul.f32 %v445_v58, %v351_v4 }
 0x152   : > { %v629_v7 = vpop.f32.mrf.mxu1 }
 0x153   : > { %491 = vst.msk [vmem:[%s728_s27 + $0x60] sm:$0xff] %vm478_vm1, %v474_v5  ;;  %v477_v8 = vmul.f32 %v629_v7, %v460_v6 }
 0x154   : > { %v354_v9 = vpop.f32.mrf.mxu1 }
 0x155   : > { %494 = vst.msk [vmem:[%s728_s27 + $0x78] sm:$0xff] %vm478_vm1, %v477_v8  ;;  %v475_v10 = vmul.f32 %v450_v62, %v354_v9 }
 0x157   : > { %492 = vst.msk [vmem:[%s728_s27 + $0x68] sm:$0xff] %vm478_vm1, %v475_v10 }
 0x158 PF: > { %s13_s12 = sadd.s32 1, %s651_s12  }
 0x159   : > { %p10_p4 = scmp.ge.s32.totalorder %s13_s12, 4  }
 0x15b   :  { %12 = sbr.rel (!%p10_p4) target bundleno = 1 (0x1), region = 68 }

// kernel: custom-call.64
= control target key start
LH: loop header
LB: loop body
LE: loop exit
PB: predicated region body
PF: predicated region fallthrough
CT: control target
= control target key end

     0   :  { %s6_s0 = inlined_call_operand.hbm [shape: pred[2], index: 0, kind: output, shape index: {}]  }

// kernel: custom-call.69
= control target key start
LH: loop header
LB: loop body
LE: loop exit
PB: predicated region body
PF: predicated region fallthrough
CT: control target
= control target key end

     0   :  { %s393_s6 = smov 0   ;;  %s395_s7 = smov 0   ;;  %s461_s0 = inlined_call_operand.vmem [shape: f32[2,5,5], index: 0, kind: input, shape index: {}]   ;;  %s462_s1 = inlined_call_operand.vmem [shape: f32[2,5,5], index: 1, kind: output, shape index: {}]  }
   0x1   :  { %s397_s8 = smov 0  }
   0x2 LB: > { %s303_s9 = sadd.s32 4294967295, %s380_s8   ;;  %s26_s10 = sadd.s32 1, %s376_s7  ;;  %s380_s8 = sphi %s397_s8, %s7_s8   ;;  %s376_s7 = sphi %s395_s7, %s464_s7   ;;  %s372_s6 = sphi %s393_s6, %s463_s6  }
   0x3   : > { %p28_p0 = scmp.ge.s32.totalorder %s26_s10, 2  ;;  %p305_p1 = scmp.ge.s32.totalorder %s380_s8, 2 }
   0x4   : > { %s42_s11 = sand.u32 (!%p305_p1), 1, %s380_s8   ;;  %s307_s12 = sshll.u32 (!%p305_p1), %s376_s7, 3 }
   0x5   : > { %s466_s10 = smov (%p28_p0, %s26_s10), 0  ;;  %40 = sbr.rel (%p305_p1) target bundleno = 12 (0xc), region = 16 }
   0x6   : > { %s306_s13 = sshll.u32 (!%p305_p1), %s42_s11, 3  ;;  %s48_s16 = scalar_lea.vmem (!%p305_p1), %s461_s0, %s307_s12 }
   0x7   : > { %s44_s17 = scalar_lea.vmem (!%p305_p1), [#allocation0], %s306_s13 }
   0xa   : > { %v77_v0 = vld [vmem:[%s48_s16] sm:$0xff] }
   0xb   : > { %78 = vst [vmem:[%s44_s17] sm:$0xff] %v77_v0 }
   0xc PF: > { %p308_p2 = scmp.ge.s32.totalorder %s380_s8, 1  ;;  %p83_p3 = scmp.lt.s32.totalorder %s380_s8, 3 }
   0xe   : > { %p84_p4 = pnand %p308_p2, %p83_p3 }
   0xf   : > { %s90_s18 = sand.u32 (!%p84_p4), 1, %s303_s9   ;;  %s320_s22 = sshll.u32 (!%p84_p4), %s372_s6, 3 }
  0x10   : > { %87 = sbr.rel (%p84_p4) target bundleno = 866 (0x362), region = 54  ;;  %s309_s19 = sshll.u32 (!%p84_p4), %s90_s18, 3 }
  0x11   : > { %s420_s20 = scalar_lea.vmem (!%p84_p4), [#allocation1], %s309_s19  ;;  %s424_s21 = scalar_lea.vmem (!%p84_p4), [#allocation0], %s309_s19 }
  0x12   : > { %s215_s25 = scalar_lea.vmem (!%p84_p4), %s462_s1, %s320_s22 }
  0x15   : > { %v382_v1 = vmov 0.0   ;;  %v104_v5 = vld [vmem:[%s424_s21] ss:$0 sm:$0xff]  ;;  %vm102_vm0 = vcmask 7168   ;;  %v312_v17 = vld [vmem:[%s424_s21 + $0x1] ss:$0 sm:$0xff] }
  0x16   : > { %101 = vst [vmem:[%s420_s20] sm:$0xff] %v382_v1  ;;  %v428_v9 = vld [vmem:[%s424_s21] sm:$0xff]  ;;  %vm120_vm1 = vcmask 15368   ;;  %vm137_vm2 = vcmask 1047553   ;;  %vm142_vm4 = vcmask 23568   ;;  %vm159_vm5 = vcmask 1047554  }
  0x17   : > { %vm138_vm3 = vmand %vm120_vm1, %vm137_vm2  ;;  %v314_v29 = vld [vmem:[%s424_s21 + $0x2] ss:$0 sm:$0xff]  ;;  %v316_v41 = vld [vmem:[%s424_s21 + $0x3] ss:$0 sm:$0xff]  ;;  %vm164_vm7 = vcmask 31768   ;;  %vm181_vm8 = vcmask 1047555  }
  0x18   : > { %vm160_vm6 = vmand %vm142_vm4, %vm159_vm5  ;;  %v318_v53 = vld [vmem:[%s424_s21 + $0x4] ss:$0 sm:$0xff]  ;;  %vm186_vm10 = vcmask 39968   ;;  %vm203_vm11 = vcmask 1047556  }
  0x19   : > { %vm182_vm9 = vmand %vm164_vm7, %vm181_vm8 }
  0x1a   : > { %vm204_vm12 = vmand %vm186_vm10, %vm203_vm11 }
  0x1d   : > { %v103_v2 = vld [vmem:[%s420_s20] ss:$0 sm:$0xff] }
  0x1e   : > { %v105_v3 = vmul.f32 %v103_v2, %v103_v2  ;;  %v112_v4 = vmul.f32 0.0, %v103_v2 }
  0x20   : > { %106 = vadd.xlane.f32.xlu0 %v105_v3 }
  0x24   : > { %113 = vadd.xlane.f32.xlu0 %v112_v4 }
  0xa9   : > { %v107_v6 = vpop.xlane.xlu0 %106 }
  0xaa   : > { %v108_v7 = vsub.f32 %v104_v5, %v107_v6 }
  0xac   : > { %348 = vrsqrt.f32 %v108_v7 }
  0xad   : > { %v114_v8 = vpop.xlane.xlu0 %113 }
  0xae   : > { %v115_v10 = vsub.f32 %v428_v9, %v114_v8 }
  0xb9   : > { %v349_v11 = vpop.eup %348 }
  0xba   : > { %v116_v12 = vmul.f32 %v349_v11, %v115_v10 }
  0xbc   : > { %v117_v13 = vsel %vm102_vm0, %v116_v12, 0.0 }
  0xbd   : > { %119 = vst [vmem:[%s420_s20] sm:$0xff] %v117_v13 }
  0xc4   : > { %v311_v14 = vld [vmem:[%s420_s20 + $0x1] ss:$0 sm:$0xff] }
  0xc5   : > { %v125_v15 = vmul.f32 %v311_v14, %v311_v14  ;;  %v132_v16 = vmul.f32 %v311_v14, %v117_v13 }
  0xc7   : > { %126 = vadd.xlane.f32.xlu1 %v125_v15 }
  0xcb   : > { %133 = vadd.xlane.f32.xlu1 %v132_v16 }
 0x150   : > { %v127_v18 = vpop.xlane.xlu1 %126 }
 0x151   : > { %v128_v19 = vsub.f32 %v312_v17, %v127_v18 }
 0x153   : > { %350 = vrsqrt.f32 %v128_v19 }
 0x154   : > { %v134_v20 = vpop.xlane.xlu1 %133 }
 0x155   : > { %v135_v21 = vsub.f32 %v428_v9, %v134_v20 }
 0x160   : > { %v351_v22 = vpop.eup %350 }
 0x161   : > { %v136_v23 = vmul.f32 %v351_v22, %v135_v21 }
 0x163   : > { %v139_v24 = vsel %vm138_vm3, %v136_v23, 0.0 }
 0x164   : > { %v140_v25 = vadd.f32 %v139_v24, %v117_v13 }
 0x166   : > { %141 = vst [vmem:[%s420_s20] sm:$0xff] %v140_v25 }
 0x16d   : > { %v313_v26 = vld [vmem:[%s420_s20 + $0x2] ss:$0 sm:$0xff] }
 0x16e   : > { %v154_v27 = vmul.f32 %v313_v26, %v140_v25  ;;  %v147_v28 = vmul.f32 %v313_v26, %v313_v26 }
 0x170   : > { %155 = vadd.xlane.f32.xlu1 %v154_v27  ;;  %148 = vadd.xlane.f32.xlu0 %v147_v28 }
 0x1f9   : > { %v149_v30 = vpop.xlane.xlu0 %148  ;;  %v156_v32 = vpop.xlane.xlu1 %155 }
 0x1fa   : > { %v150_v31 = vsub.f32 %v314_v29, %v149_v30  ;;  %v157_v33 = vsub.f32 %v428_v9, %v156_v32 }
 0x1fc   : > { %352 = vrsqrt.f32 %v150_v31 }
 0x209   : > { %v353_v34 = vpop.eup %352 }
 0x20a   : > { %v158_v35 = vmul.f32 %v353_v34, %v157_v33 }
 0x20c   : > { %v161_v36 = vsel %vm160_vm6, %v158_v35, 0.0 }
 0x20d   : > { %v162_v37 = vadd.f32 %v161_v36, %v140_v25 }
 0x20f   : > { %163 = vst [vmem:[%s420_s20] sm:$0xff] %v162_v37 }
 0x216   : > { %v315_v38 = vld [vmem:[%s420_s20 + $0x3] ss:$0 sm:$0xff] }
 0x217   : > { %v176_v39 = vmul.f32 %v315_v38, %v162_v37  ;;  %v169_v40 = vmul.f32 %v315_v38, %v315_v38 }
 0x219   : > { %177 = vadd.xlane.f32.xlu1 %v176_v39  ;;  %170 = vadd.xlane.f32.xlu0 %v169_v40 }
 0x2a2   : > { %v171_v42 = vpop.xlane.xlu0 %170  ;;  %v178_v44 = vpop.xlane.xlu1 %177 }
 0x2a3   : > { %v172_v43 = vsub.f32 %v316_v41, %v171_v42  ;;  %v179_v45 = vsub.f32 %v428_v9, %v178_v44 }
 0x2a5   : > { %354 = vrsqrt.f32 %v172_v43 }
 0x2b2   : > { %v355_v46 = vpop.eup %354 }
 0x2b3   : > { %v180_v47 = vmul.f32 %v355_v46, %v179_v45 }
 0x2b5   : > { %v183_v48 = vsel %vm182_vm9, %v180_v47, 0.0 }
 0x2b6   : > { %v184_v49 = vadd.f32 %v183_v48, %v162_v37 }
 0x2b8   : > { %185 = vst [vmem:[%s420_s20] sm:$0xff] %v184_v49 }
 0x2bf   : > { %v317_v50 = vld [vmem:[%s420_s20 + $0x4] ss:$0 sm:$0xff] }
 0x2c0   : > { %v198_v51 = vmul.f32 %v317_v50, %v184_v49  ;;  %v191_v52 = vmul.f32 %v317_v50, %v317_v50 }
 0x2c2   : > { %199 = vadd.xlane.f32.xlu1 %v198_v51  ;;  %192 = vadd.xlane.f32.xlu0 %v191_v52 }
 0x34b   : > { %v193_v54 = vpop.xlane.xlu0 %192  ;;  %v200_v56 = vpop.xlane.xlu1 %199 }
 0x34c   : > { %v194_v55 = vsub.f32 %v318_v53, %v193_v54  ;;  %v201_v57 = vsub.f32 %v428_v9, %v200_v56 }
 0x34e   : > { %356 = vrsqrt.f32 %v194_v55 }
 0x35b   : > { %v357_v58 = vpop.eup %356 }
 0x35c   : > { %v202_v59 = vmul.f32 %v357_v58, %v201_v57 }
 0x35e   : > { %v205_v60 = vsel %vm204_vm12, %v202_v59, 0.0 }
 0x35f   : > { %v206_v61 = vadd.f32 %v205_v60, %v184_v49 }
 0x361   : > { %207 = vst [vmem:[%s420_s20] sm:$0xff] %v206_v61  ;;  %245 = vst [vmem:[%s215_s25] sm:$0xff] %v206_v61 }
 0x362 PF: > { %s7_s8 = sadd.s32 1, %s380_s8   ;;  %s463_s6 = smov %s376_s7 }
 0x363   : > { %p4_p5 = scmp.ge.s32.totalorder %s7_s8, 4   ;;  %s464_s7 = smov %s466_s10 }
 0x365   :  { %6 = sbr.rel (!%p4_p5) target bundleno = 2 (0x2), region = 126 }

// kernel: custom-call.70
= control target key start
LH: loop header
LB: loop body
LE: loop exit
PB: predicated region body
PF: predicated region fallthrough
CT: control target
= control target key end

     0   :  { %s357_s6 = smov 0   ;;  %s359_s7 = smov 0   ;;  %s397_s0 = inlined_call_operand.vmem [shape: f32[2,1,5,5], index: 0, kind: input, shape index: {}]   ;;  %s398_s1 = inlined_call_operand.vmem [shape: f32[2,1,5,5], index: 1, kind: output, shape index: {}]  }
   0x1   :  { %s361_s8 = smov 0  }
   0x2 LB: > { %s283_s9 = sadd.s32 4294967295, %s344_s8   ;;  %s33_s10 = sadd.s32 1, %s340_s7  ;;  %s344_s8 = sphi %s361_s8, %s7_s8   ;;  %s340_s7 = sphi %s359_s7, %s400_s7   ;;  %s336_s6 = sphi %s357_s6, %s399_s6  }
   0x3   : > { %p35_p0 = scmp.ge.s32.totalorder %s33_s10, 2  ;;  %p285_p1 = scmp.ge.s32.totalorder %s344_s8, 2 }
   0x4   : > { %s49_s11 = sand.u32 (!%p285_p1), 1, %s344_s8   ;;  %s287_s12 = sshll.u32 (!%p285_p1), %s340_s7, 3 }
   0x5   : > { %s402_s10 = smov (%p35_p0, %s33_s10), 0  ;;  %47 = sbr.rel (%p285_p1) target bundleno = 12 (0xc), region = 16 }
   0x6   : > { %s286_s13 = sshll.u32 (!%p285_p1), %s49_s11, 3  ;;  %s56_s16 = scalar_lea.vmem (!%p285_p1), %s397_s0, %s287_s12 }
   0x7   : > { %s51_s17 = scalar_lea.vmem (!%p285_p1), [#allocation0], %s286_s13 }
   0xa   : > { %v85_v0 = vld [vmem:[%s56_s16] sm:$0xff] }
   0xb   : > { %86 = vst [vmem:[%s51_s17] sm:$0xff] %v85_v0 }
   0xc PF: > { %p288_p2 = scmp.ge.s32.totalorder %s344_s8, 1  ;;  %p91_p3 = scmp.lt.s32.totalorder %s344_s8, 3 }
   0xe   : > { %p92_p4 = pnand %p288_p2, %p91_p3 }
  0x10   : > { %95 = sbr.rel (%p92_p4) target bundleno = 759 (0x2f7), region = 54 }
  0x15   : > { %s98_s18 = sand.u32 1, %s283_s9   ;;  %v109_v1 = vlaneseq  ;;  %v346_v10 = vmov -1.0   ;;  %s292_s21 = sshll.u32 %s336_s6, 3 }
  0x16   : > { %s289_s19 = sshll.u32 %s98_s18, 3  ;;  %s190_s24 = scalar_lea.vmem %s398_s1, %s292_s21 }
  0x17   : > { %v110_v2 = vand.u32 127, %v109_v1  ;;  %v113_v3 = vshrl.u32 %v109_v1, 7  ;;  %s100_s20 = scalar_lea.vmem [#allocation0], %s289_s19 }
  0x18   : > { %v116_v4 = vld [vmem:[%s100_s20] sm:$0xff] }
  0x19   : > { %vm111_vm0 = vcmp.lt.s32.totalorder %v110_v2, 5  ;;  %vm115_vm1 = vcmp.eq.s32.totalorder %v113_v3, %v110_v2  ;;  %vm120_vm2 = vcmp.ge.s32.totalorder %v113_v3, %v110_v2  ;;  %vm134_vm4 = vcmp.eq.s32.totalorder %v110_v2, 0 }
  0x1a   : > { %v117_v5 = vsel %vm115_vm1, %v116_v4, 0.0  ;;  %vm121_vm3 = vmand %vm120_vm2, %vm111_vm0  ;;  %vm131_vm5 = vcmp.eq.s32.totalorder %v110_v2, %v113_v3  ;;  %v135_v11 = vsel %vm134_vm4, 1.0, %v346_v10  ;;  %vm142_vm6 = vcmp.eq.s32.totalorder %v110_v2, 1 }
  0x1b   : > { %v122_v6 = vsel %vm121_vm3, %v116_v4, 0.0  ;;  %118 = vadd.xlane.f32.xlu0 %v117_v5  ;;  %v136_v12 = vsel %vm131_vm5, %v135_v11, 0.0  ;;  %vm152_vm7 = vcmp.eq.s32.totalorder %v110_v2, 2  ;;  %vm162_vm8 = vcmp.eq.s32.totalorder %v110_v2, 3 }
  0x1c   : > { %vm172_vm9 = vcmp.eq.s32.totalorder %v110_v2, 4 }
  0xa4   : > { %v119_v7 = vpop.xlane.xlu0 %118 }
  0xa5   : > { %320 = vrcp.f32 %v119_v7  ;;  %vm179_vm10 = vweird.f32 %v119_v7 }
  0xb2   : > { %v321_v8 = vpop.eup %320 }
  0xb3   : > { %v124_v9 = vmul.f32 %v321_v8, %v122_v6 }
  0xb5   : > { %125 = vst [vmem:[#allocation2] sm:$0xff] %v124_v9 }
  0xbc   : > { %v138_v13 = vld [vmem:[#allocation2 + $0x1] ss:$0 sm:$0xff]  ;;  %v148_v16 = vld [vmem:[#allocation2 + $0x2] ss:$0 sm:$0xff]  ;;  %v158_v21 = vld [vmem:[#allocation2 + $0x3] ss:$0 sm:$0xff] }
  0xbd   : > { %v139_v14 = vxor.u32 2147483648, %v138_v13  ;;  %v149_v18 = vxor.u32 2147483648, %v148_v16  ;;  %v159_v23 = vxor.u32 2147483648, %v158_v21  ;;  %v168_v26 = vld [vmem:[#allocation2 + $0x4] ss:$0 sm:$0xff] }
  0xbe   : > { %v169_v28 = vxor.u32 2147483648, %v168_v26 }
  0xbf   : > { %v143_v15 = vmul.f32 %v139_v14, %v136_v12 }
  0xc1   : > { %144 = vadd.xlane.f32.xlu0 %v143_v15 }
 0x14a   : > { %v145_v17 = vpop.xlane.xlu0 %144 }
 0x14b   : > { %v146_v19 = vsel %vm142_vm6, %v145_v17, %v136_v12 }
 0x14c   : > { %v153_v20 = vmul.f32 %v149_v18, %v146_v19 }
 0x14e   : > { %154 = vadd.xlane.f32.xlu1 %v153_v20 }
 0x1d7   : > { %v155_v22 = vpop.xlane.xlu1 %154 }
 0x1d8   : > { %v156_v24 = vsel %vm152_vm7, %v155_v22, %v146_v19 }
 0x1d9   : > { %v163_v25 = vmul.f32 %v159_v23, %v156_v24 }
 0x1db   : > { %164 = vadd.xlane.f32.xlu1 %v163_v25 }
 0x264   : > { %v165_v27 = vpop.xlane.xlu1 %164 }
 0x265   : > { %v166_v29 = vsel %vm162_vm8, %v165_v27, %v156_v24 }
 0x266   : > { %v173_v30 = vmul.f32 %v169_v28, %v166_v29 }
 0x268   : > { %174 = vadd.xlane.f32.xlu0 %v173_v30 }
 0x2f1   : > { %v175_v31 = vpop.xlane.xlu0 %174 }
 0x2f2   : > { %v176_v32 = vsel %vm172_vm9, %v175_v31, %v166_v29 }
 0x2f3   : > { %v178_v33 = vmul.f32 %v321_v8, %v176_v32 }
 0x2f5   : > { %v180_v34 = vsel %vm179_vm10, %v176_v32, %v178_v33 }
 0x2f6   : > { %220 = vst [vmem:[%s190_s24] sm:$0xff] %v180_v34 }
 0x2f7 PF: > { %s7_s8 = sadd.s32 1, %s344_s8   ;;  %s399_s6 = smov %s340_s7 }
 0x2f8   : > { %p4_p5 = scmp.ge.s32.totalorder %s7_s8, 4   ;;  %s400_s7 = smov %s402_s10 }
 0x2fa   :  { %6 = sbr.rel (!%p4_p5) target bundleno = 2 (0x2), region = 122 }

// kernel: custom-call.34
= control target key start
LH: loop header
LB: loop body
LE: loop exit
PB: predicated region body
PF: predicated region fallthrough
CT: control target
= control target key end

     0   :  { %s1740_s30 = smov 0   ;;  %s1742_s10 = smov 0   ;;  %s2067_s0 = inlined_call_operand.vmem [shape: f32[2,3,3], index: 0, kind: input, shape index: {}]   ;;  %s2068_s1 = inlined_call_operand.vmem [shape: f32[2,3,3], index: 1, kind: input, shape index: {}]   ;;  %s2069_s2 = inlined_call_operand.vmem [shape: f32[2,3,3], index: 2, kind: input, shape index: {}]   ;;  %s2070_s3 = inlined_call_operand.vmem [shape: f32[2,3,3], index: 3, kind: input, shape index: {}]   ;;  %s2071_s4 = inlined_call_operand.vmem [shape: f32[2,3], index: 4, kind: output, shape index: {0}]   ;;  %s2072_s5 = inlined_call_operand.vmem [shape: f32[2,3], index: 5, kind: output, shape index: {1}]   ;;  %s2073_s6 = inlined_call_operand.vmem [shape: f32[2,3,3], index: 6, kind: output, shape index: {2}]   ;;  %s2074_s7 = inlined_call_operand.vmem [shape: f32[2,3,3], index: 7, kind: output, shape index: {3}]   ;;  %s2075_s8 = inlined_call_operand.vmem [shape: f32[2,3,3], index: 8, kind: output, shape index: {4}]   ;;  %s2076_s9 = inlined_call_operand.vmem [shape: f32[2,3,3], index: 9, kind: output, shape index: {5}]  }
   0x1   :  { %s1744_s11 = smov 0  }
   0x2 LB: > { %s1756_s12 = sadd.s32 4294967295, %s1677_s11   ;;  %s1759_s13 = sadd.s32 1, %s1677_s11   ;;  %s1677_s11 = sphi %s1744_s11, %s2095_s11   ;;  %s1673_s10 = sphi %s1742_s10, %s2094_s10   ;;  %s1669_s30 = sphi %s1740_s30, %s2093_s30  }
   0x3   : > { %s20_s14 = sshrl.u32 %s1677_s11, 3  ;;  %s21_s15 = sshrl.u32 %s1759_s13, 3 }
   0x4   : > { %s22_s16 = ssub.s32 %s20_s14, %s21_s15  ;;  %s25_s17 = sadd.s32 1, %s1673_s10 }
   0x5   : > { %p23_p0 = scmp.eq.s32.totalorder %s22_s16, 0  ;;  %p35_p1 = scmp.ne.s32.totalorder %s1673_s10, %s1669_s30 }
   0x6   : > { %p36_p2 = scmp.eq.s32.totalorder %s1756_s12, 1  ;;  %p1538_p4 = scmp.ge.s32.totalorder %s1677_s11, 2 }
   0x7   : > { %s1768_s18 = scalar_select %p23_p0, %s1673_s10, %s25_s17  }
   0x8   : > { %p1770_p3 = por %p36_p2, %p35_p1  ;;  %86 = sbr.rel (%p1538_p4) target bundleno = 18 (0x12), region = 16 }
   0x9   : > { %2077 = sst [smem:[#allocation33_spill]] %s1768_s18  ;;  %s88_s20 = sand.u32 (!%p1538_p4), 1, %s1677_s11  }
   0xa   : > { %s1540_s21 = sshll.u32 (!%p1538_p4), %s1677_s11, 2  ;;  %s1539_s22 = sshll.u32 (!%p1538_p4), %s88_s20, 2 }
   0xb   : > { %s92_s25 = scalar_lea.vmem (!%p1538_p4), %s2067_s0, %s1540_s21  ;;  %s90_s26 = scalar_lea.vmem (!%p1538_p4), [#allocation1], %s1539_s22 }
   0xc   : > { %s131_s29 = scalar_lea.vmem (!%p1538_p4), %s2068_s1, %s1540_s21  ;;  %s170_s16 = scalar_lea.vmem (!%p1538_p4), %s2069_s2, %s1540_s21 }
   0xd   : > { %v109_v0 = vld [vmem:[%s92_s25] sm:$0xf]  ;;  %s129_s17 = scalar_lea.vmem [#allocation3], %s1539_s22  ;;  %s209_s23 = scalar_lea.vmem %s2070_s3, %s1540_s21 }
   0xe   : > { %110 = vst [vmem:[%s90_s26] sm:$0xf] %v109_v0  ;;  %v148_v1 = vld [vmem:[%s131_s29] sm:$0xf]  ;;  %s168_s24 = scalar_lea.vmem [#allocation5], %s1539_s22  ;;  %s207_s25 = scalar_lea.vmem [#allocation7], %s1539_s22 }
   0xf   : > { %149 = vst [vmem:[%s129_s17] sm:$0xf] %v148_v1  ;;  %v187_v2 = vld [vmem:[%s170_s16] sm:$0xf] }
  0x10   : > { %188 = vst [vmem:[%s168_s24] sm:$0xf] %v187_v2  ;;  %v226_v3 = vld [vmem:[%s209_s23] sm:$0xf] }
  0x11   : > { %227 = vst [vmem:[%s207_s25] sm:$0xf] %v226_v3 }
  0x12 PF: > { %p1547_p5 = scmp.ge.s32.totalorder %s1677_s11, 1  ;;  %p244_p6 = scmp.lt.s32.totalorder %s1677_s11, 3 }
  0x14   : > { %p245_p7 = pnand %p1547_p5, %p244_p6 }
  0x16   : > { %248 = sbr.rel (%p245_p7) target bundleno = 994 (0x3e2), region = 140 }
  0x1b   : > { %s267_s26 = sand.u32 1, %s1756_s12   ;;  %s285_s27 = sand.u32 1, %s1669_s30   ;;  %v349_v4 = vlaneseq  ;;  %v1687_v5 = vmov 0.0  }
  0x1c   : > { %s1793_s28 = sshll.u32 %s267_s26, 2  ;;  %s1795_s18 = sshll.u32 %s285_s27, 1  ;;  %344 = vst [vmem:[#allocation12] sm:$0xff] %v1687_v5  ;;  %345 = vst [vmem:[#allocation14] sm:$0xff] %v1687_v5 }
  0x1d   : > { %346 = vst [vmem:[#allocation16] sm:$0xff] %v1687_v5  ;;  %347 = vst [vmem:[#allocation18] sm:$0xff] %v1687_v5  ;;  %v1797_v6 = vand.u32 127, %v349_v4  ;;  %v1799_v7 = vshrl.u32 %v349_v4, 7  ;;  %s269_s11 = scalar_lea.vmem [#allocation1], %s1793_s28  ;;  %s273_s30 = scalar_lea.vmem [#allocation3], %s1793_s28 }
  0x1e   : > { %v313_v8 = vld [vmem:[%s269_s11] sm:$0xf]  ;;  %v318_v9 = vld [vmem:[%s273_s30] sm:$0xf]  ;;  %s277_s21 = scalar_lea.vmem [#allocation5], %s1793_s28  ;;  %s281_s22 = scalar_lea.vmem [#allocation7], %s1793_s28 }
  0x1f   : > { %314 = vst [vmem:[#allocation0] sm:$0xf] %v313_v8  ;;  %319 = vst [vmem:[#allocation2] sm:$0xf] %v318_v9  ;;  %v323_v10 = vld [vmem:[%s277_s21] sm:$0xf]  ;;  %v351_v6 = vmov %v1797_v6  ;;  %v354_v7 = vmov %v1799_v7 }
  0x20   : > { %v328_v11 = vld [vmem:[%s281_s22] sm:$0xf]  ;;  %324 = vst [vmem:[#allocation4] sm:$0xf] %v323_v10  ;;  %v364_v6 = vmov %v1797_v6  ;;  %v367_v7 = vmov %v1799_v7  ;;  %s332_s29 = smov [#allocation20]  ;;  %s335_s14 = smov [#allocation21]  ;;  %vm358_vm0 = vcmp.eq.s32.totalorder %v354_v7, %v351_v6 }
  0x21   : > { %329 = vst [vmem:[#allocation6] sm:$0xf] %v328_v11  ;;  %vm371_vm1 = vcmp.eq.s32.totalorder %v367_v7, %v364_v6  ;;  %s348_s15 = smov [#allocation12]  ;;  %s361_s16 = smov [#allocation18]  ;;  %vm1427_vm2 = vcmp.lt.s32.totalorder %v1797_v6, 3  ;;  %v1419_v6 = vmov %v1797_v6  ;;  %v1422_v7 = vmov %v1799_v7 }
  0x22   : > { %s338_s17 = smov [#allocation22]  ;;  %s341_s20 = smov [#allocation23]  ;;  %vm1432_vm3 = vcmp.eq.s32.totalorder %v1422_v7, %v1419_v6  ;;  %v1470_v6 = vmov %v1797_v6  ;;  %v1439_v7 = vmov %v1799_v7 }
  0x23   : > { %v355_v12 = vld [vmem:[%s348_s15] sm:$0x7]  ;;  %s1423_s30 = smov [#allocation20]  ;;  %s1440_s21 = smov [#allocation21]  ;;  %v1436_v6 = vmov %v1797_v6  ;;  %v1473_v7 = vmov %v1799_v7 }
  0x24   : > { %v368_v13 = vld [vmem:[%s361_s16] sm:$0x7]  ;;  %v359_v16 = vsel %vm358_vm0, 1.0, %v355_v12  ;;  %s1457_s22 = smov [#allocation22]  ;;  %v1453_v6 = vmov %v1797_v6  ;;  %v1456_v7 = vmov %v1799_v7  ;;  %vm1483_vm4 = vcmp.eq.s32.totalorder %v1473_v7, %v1470_v6 }
  0x25   : > { %v372_v17 = vsel %vm371_vm1, 1.0, %v368_v13  ;;  %360 = vst [vmem:[%s348_s15] sm:$0x7] %v359_v16 }
  0x26   : > { %v333_v14 = vld [vmem:[#allocation0] sm:$0xff]  ;;  %v336_v15 = vld [vmem:[#allocation2] sm:$0xff]  ;;  %373 = vst [vmem:[%s361_s16] sm:$0x7] %v372_v17 }
  0x27   : > { %334 = vst [vmem:[%s332_s29] sm:$0xff] %v333_v14  ;;  %337 = vst [vmem:[%s335_s14] sm:$0xff] %v336_v15  ;;  %v339_v18 = vld [vmem:[#allocation4] sm:$0xff]  ;;  %s1474_s29 = smov [#allocation23] }
  0x28   : > { %v342_v19 = vld [vmem:[#allocation6] sm:$0xff]  ;;  %340 = vst [vmem:[%s338_s17] sm:$0xff] %v339_v18 }
  0x29   : > { %343 = vst [vmem:[%s341_s20] sm:$0xff] %v342_v19 }
  0x2e   : > { %v1429_v20 = vld [vmem:[%s1423_s30] sm:$0x7] }
  0x2f   : > { %v1446_v21 = vld [vmem:[%s1440_s21] sm:$0x7]  ;;  %v1430_v22 = vsel %vm1427_vm2, %v1429_v20, 0.0 }
  0x30   : > { %v1447_v23 = vsel %vm1427_vm2, %v1446_v21, 0.0  ;;  %v1463_v24 = vld [vmem:[%s1457_s22] sm:$0x7]  ;;  %v1431_v26 = vmul.f32 %v1430_v22, %v1430_v22 }
  0x31   : > { %v1480_v25 = vld [vmem:[%s1474_s29] sm:$0x7]  ;;  %v1448_v27 = vmul.f32 %v1447_v23, %v1447_v23  ;;  %v1464_v28 = vsel %vm1427_vm2, %v1463_v24, 0.0 }
  0x32   : > { %v1481_v29 = vsel %vm1427_vm2, %v1480_v25, 0.0  ;;  %v1465_v30 = vmul.f32 %v1464_v28, %v1464_v28  ;;  %v1433_v33 = vsel %vm1432_vm3, 0.0, %v1431_v26 }
  0x33   : > { %v1450_v31 = vadd.f32 %v1448_v27, %v1431_v26  ;;  %v1482_v32 = vmul.f32 %v1481_v29, %v1481_v29  ;;  %v1449_v34 = vadd.f32 %v1448_v27, %v1433_v33 }
  0x35   : > { %v1467_v35 = vadd.f32 %v1465_v30, %v1450_v31  ;;  %v1466_v36 = vadd.f32 %v1465_v30, %v1449_v34  ;;  %v1484_v37 = vsel %vm1483_vm4, 0.0, %v1482_v32 }
  0x37   : > { %v1486_v38 = vadd.f32 %v1482_v32, %v1467_v35  ;;  %v1485_v39 = vadd.f32 %v1484_v37, %v1466_v36 }
  0x39   : > { %1487 = vadd.xlane.f32.xlu0 %v1486_v38 }
  0x3d   : > { %1495 = vadd.xlane.f32.xlu0 %v1485_v39 }
  0xc2   : > { %v1488_v40 = vpop.xlane.xlu0 %1487 }
  0xc3   : > { %v1489_v41 = vrot.slane %v1488_v40, 4 }
  0xc5   : > { %v1490_v42 = vadd.f32 %v1489_v41, %v1488_v40 }
  0xc6   : > { %v1496_v43 = vpop.xlane.xlu0 %1495 }
  0xc7   : > { %v1491_v44 = vrot.slane %v1490_v42, 2  ;;  %v1497_v45 = vrot.slane %v1496_v43, 4 }
  0xc9   : > { %v1498_v46 = vadd.f32 %v1497_v45, %v1496_v43  ;;  %v1492_v47 = vadd.f32 %v1491_v44, %v1490_v42 }
  0xcb   : > { %v1499_v48 = vrot.slane %v1498_v46, 2  ;;  %v1493_v50 = vrot.slane %v1492_v47, 1 }
  0xcd   : > { %v1500_v49 = vadd.f32 %v1499_v48, %v1498_v46  ;;  %v1494_v53 = vadd.f32 %v1493_v50, %v1492_v47 }
  0xcf   : > { %v1501_v51 = vrot.slane %v1500_v49, 1 }
  0xd1   : > { %v1502_v52 = vadd.f32 %v1501_v51, %v1500_v49 }
  0xd3   : > { %1588 = vpush %v1502_v52 }
  0xd4   : > { %1590 = vpush %v1494_v53 }
 0x104   : > { %s1589_s14 = spop %1588 }
 0x105   : > { %s1591_s15 = spop %1590 }
 0x106   : > { %s1505_s16 = smul.f32 1e-10, %s1591_s15 }
 0x108   : > { %p1506_p8 = scmp.le.f32.partialorder %s1589_s14, %s1505_s16 }
 0x109   : > { %s1833_s17 = smov (!%p1506_p8), 0  }
 0x10a   : > { %1509 = sbr.rel (%p1506_p8) target bundleno = 948 (0x3b4), region = 467 }
 0x10f LB: >> { %s1838_s20 = smov 0   ;;  %s1681_s17 = sphi %s1833_s17, %s2079_s17  }
 0x110 LB: >>> { %s478_s30 = smov [#allocation20]  ;;  %v482_v6 = vmov %v1797_v6  ;;  %v485_v7 = vmov %v1799_v7  ;;  %s498_s21 = smov [#allocation21]  ;;  %vm801_vm14 = vcmp.eq.s32.totalorder %v1799_v7, 0  ;;  %vm813_vm15 = vcmp.eq.s32.totalorder %v1799_v7, 2  ;;  %s1685_s20 = sphi %s1838_s20, %s477_s20  }
 0x111   : >>> { %v502_v6 = vmov %v1797_v6  ;;  %v505_v7 = vmov %v1799_v7  ;;  %v486_v54 = vld [vmem:[%s478_s30] sm:$0x7]  ;;  %vm489_vm5 = vcmp.eq.s32.totalorder %v485_v7, %v482_v6  ;;  %s518_s22 = smov [#allocation23]  ;;  %s479_s29 = smov [#allocation24] }
 0x112   : >>> { %vm509_vm6 = vcmp.eq.s32.totalorder %v505_v7, %v502_v6  ;;  %v522_v6 = vmov %v1797_v6  ;;  %v525_v7 = vmov %v1799_v7  ;;  %v490_v55 = vsel %vm489_vm5, %v486_v54, 0.0  ;;  %v506_v56 = vld [vmem:[%s498_s21] sm:$0x7]  ;;  %s499_s14 = smov [#allocation25]  ;;  %s519_s15 = smov [#allocation26] }
 0x113   : >>> { %vm529_vm7 = vcmp.eq.s32.totalorder %v525_v7, %v522_v6  ;;  %v491_v57 = vrot.slane %v490_v55, 4  ;;  %v510_v58 = vsel %vm509_vm6, %v506_v56, 0.0  ;;  %v526_v59 = vld [vmem:[%s518_s22] sm:$0x7]  ;;  %s542_s16 = smov [#allocation25]  ;;  %s540_s30 = smov [#allocation24]  ;;  %v591_v6 = vmov %v1797_v6 }
 0x114   : >>> { %v511_v60 = vrot.slane %v510_v58, 4  ;;  %v530_v61 = vsel %vm529_vm7, %v526_v59, 0.0  ;;  %s544_s21 = smov [#allocation26]  ;;  %s579_s22 = smov [#allocation27]  ;;  %v594_v7 = vmov %v1799_v7  ;;  %v606_v6 = vmov %v1797_v6 }
 0x115   : >>> { %v492_v62 = vadd.f32 %v491_v57, %v490_v55  ;;  %v531_v63 = vrot.slane %v530_v61, 4  ;;  %v609_v7 = vmov %v1799_v7  ;;  %vm596_vm12 = vcmp.eq.s32.totalorder %v594_v7, %v591_v6  ;;  %s1857_s24 = smov [#allocation22]  ;;  %s1863_s23 = smov [#allocation14] }
 0x116   : >>> { %v512_v0 = vadd.f32 %v511_v60, %v510_v58  ;;  %vm611_vm13 = vcmp.eq.s32.totalorder %v609_v7, %v606_v6  ;;  %s841_s11 = smov [#allocation31]  ;;  %s1869_s27 = smov [#allocation18]  ;;  %v627_v55 = vld [vmem:[%s1857_s24] sm:$0x7]  ;;  %v704_v6 = vmov %v1797_v6  ;;  %v707_v7 = vmov %v1799_v7 }
 0x117   : >>> { %v493_v1 = vrot.slane %v492_v62, 2  ;;  %v532_v2 = vadd.f32 %v531_v63, %v530_v61  ;;  %v850_v58 = vld [vmem:[%s1863_s23] sm:$0x7]  ;;  %s619_s26 = smov [#allocation32]  ;;  %s843_s25 = smov [#allocation32]  ;;  %v718_v6 = vmov %v1797_v6  ;;  %v721_v7 = vmov %v1799_v7 }
 0x118   : >>> { %v513_v3 = vrot.slane %v512_v0, 2  ;;  %v852_v61 = vld [vmem:[%s1869_s27] sm:$0x7]  ;;  %vm711_vm0 = vcmp.eq.s32.totalorder %v707_v7, %v704_v6  ;;  %v677_v6 = vmov %v1797_v6  ;;  %v680_v7 = vmov %v1799_v7  ;;  %s477_s20 = sadd.s32 1, %s1685_s20  }
 0x119   : >>> { %v494_v4 = vadd.f32 %v493_v1, %v492_v62  ;;  %v533_v5 = vrot.slane %v532_v2, 2  ;;  %v691_v6 = vmov %v1797_v6  ;;  %v694_v7 = vmov %v1799_v7  ;;  %p474_p9 = scmp.ge.s32.totalorder %s477_s20, 5  }
 0x11a   : >>> { %v514_v8 = vadd.f32 %v513_v3, %v512_v0  ;;  %vm726_vm1 = vcmp.eq.s32.totalorder %v721_v7, %v718_v6  ;;  %vm685_vm3 = vcmp.eq.s32.totalorder %v680_v7, %v677_v6  ;;  %vm698_vm4 = vcmp.eq.s32.totalorder %v694_v7, %v691_v6 }
 0x11b   : >>> { %v495_v9 = vrot.slane %v494_v4, 1  ;;  %v534_v10 = vadd.f32 %v533_v5, %v532_v2  ;;  %vm740_vm5 = vcmp.eq.s32.totalorder %v1797_v6, 0  ;;  %vm744_vm6 = vcmp.eq.s32.totalorder %v1797_v6, 1 }
 0x11c   : >>> { %v515_v11 = vrot.slane %v514_v8, 1  ;;  %vm757_vm7 = vcmp.eq.s32.totalorder %v1797_v6, 2  ;;  %v378_v6 = vmov (%p474_p9), %v1797_v6  ;;  %v381_v7 = vmov (%p474_p9), %v1799_v7 }
 0x11d   : >>> { %v496_v12 = vadd.f32 %v495_v9, %v494_v4  ;;  %v535_v13 = vrot.slane %v534_v10, 1  ;;  %v431_v6 = vmov (%p474_p9), %v1797_v6 }
 0x11e   : >>> { %v516_v14 = vadd.f32 %v515_v11, %v514_v8 }
 0x11f   : >>> { %497 = vst [vmem:[%s479_s29] sm:$0x1] %v496_v12  ;;  %v536_v15 = vadd.f32 %v535_v13, %v534_v10  ;;  %s581_s29 = smov [#allocation28] }
 0x120   : >>> { %517 = vst [vmem:[%s499_s14] sm:$0x1] %v516_v14  ;;  %s538_s14 = smov [#allocation29] }
 0x121   : >>> { %537 = vst [vmem:[%s519_s15] sm:$0x1] %v536_v15  ;;  %s539_s15 = smov [#allocation30]  ;;  %s583_s14 = smov %s538_s14 }
 0x122   : >>> { %s585_s15 = smov %s539_s15 }
 0x126   : >>> { %v541_v18 = vld [vmem:[%s540_s30] sm:$0xff]  ;;  %s602_s30 = smov [#allocation30] }
 0x127   : >>> { %v543_v16 = vld [vmem:[%s542_s16] sm:$0xff]  ;;  %v564_v33 = vand.u32 2147483647, %v541_v18  ;;  %s587_s16 = smov [#allocation29] }
 0x128   : >>> { %v547_v17 = vmul.f32 2.0, %v543_v16  ;;  %v545_v19 = vld [vmem:[%s544_s21] sm:$0xff]  ;;  %v565_v36 = vand.u32 2147483647, %v543_v16  ;;  %s600_s21 = smov [#allocation31] }
 0x129   : >>> { %v546_v20 = vsub.f32 %v545_v19, %v541_v18  ;;  %v566_v34 = vand.u32 2147483647, %v545_v19 }
 0x12a   : >>> { %1639 = vrcp.f32 %v547_v17 }
 0x12b   : >>> { %v567_v35 = vmin.f32 %v564_v33, %v566_v34 }
 0x12d   : >>> { %v568_v37 = vmul.f32 1.1920929e-08, %v567_v35 }
 0x12f   : >>> { %vm569_vm11 = vcmp.le.f32.partialorder %v565_v36, %v568_v37 }
 0x137   : >>> { %v1640_v21 = vpop.eup %1639 }
 0x138   : >>> { %v549_v22 = vmul.f32 %v1640_v21, %v546_v20 }
 0x13a   : >>> { %v551_v23 = vmul.f32 %v549_v22, %v549_v22  ;;  %vm550_vm10 = vcmp.ge.f32.partialorder %v549_v22, 0.0 }
 0x13c   : >>> { %v552_v24 = vadd.f32 1.0, %v551_v23 }
 0x13e   : >>> { %1641 = vrsqrt.f32 %v552_v24  ;;  %vm555_vm8 = vcmp.eq.f32.partialorder %v552_v24, inf  ;;  %v558_v26 = vand.u32 2147483648, %v552_v24  ;;  %vm557_vm9 = vcmp.eq.f32.partialorder %v552_v24, 0.0 }
 0x14b   : >>> { %v1642_v25 = vpop.eup %1641 }
 0x14c   : >>> { %v554_v27 = vmul.f32 %v1642_v25, %v552_v24 }
 0x14e   : >>> { %v556_v28 = vsel %vm555_vm8, %v552_v24, %v554_v27  ;;  %vm393_vm8 = vcmp.eq.s32.totalorder (%p474_p9), %v381_v7, %v378_v6  ;;  %v434_v7 = vmov (%p474_p9), %v1799_v7  ;;  %v397_v6 = vmov (%p474_p9), %v1797_v6 }
 0x14f   : >>> { %v559_v29 = vsel %vm557_vm9, %v558_v26, %v556_v28  ;;  %v400_v7 = vmov (%p474_p9), %v1799_v7  ;;  %v414_v6 = vmov (%p474_p9), %v1797_v6  ;;  %vm446_vm9 = vcmp.eq.s32.totalorder (%p474_p9), %v434_v7, %v431_v6 }
 0x150   : >>> { %v560_v30 = vxor.u32 2147483648, %v559_v29  ;;  %v417_v7 = vmov (%p474_p9), %v1799_v7 }
 0x152   : >>> { %v561_v31 = vsel %vm550_vm10, %v559_v29, %v560_v30 }
 0x153   : >>> { %v562_v32 = vadd.f32 %v561_v31, %v549_v22 }
 0x155   : >>> { %1643 = vrcp.f32 %v562_v32 }
 0x162   : >>> { %v1644_v38 = vpop.eup %1643 }
 0x163   : >>> { %v570_v39 = vsel %vm569_vm11, 0.0, %v1644_v38 }
 0x164   : >>> { %v571_v40 = vmul.f32 %v570_v39, %v570_v39  ;;  %v575_v41 = vmul.f32 %v570_v39, %v543_v16 }
 0x166   : >>> { %v572_v42 = vadd.f32 1.0, %v571_v40  ;;  %v576_v43 = vsub.f32 %v541_v18, %v575_v41  ;;  %v578_v44 = vadd.f32 %v575_v41, %v545_v19 }
 0x168   : >>> { %1645 = vrsqrt.f32 %v572_v42  ;;  %580 = vst [vmem:[%s579_s22] sm:$0xff] %v576_v43  ;;  %582 = vst [vmem:[%s581_s29] sm:$0xff] %v578_v44  ;;  %s617_s22 = smov [#allocation31]  ;;  %s1853_s29 = smov [#allocation20] }
 0x169   : >>> { %v625_v53 = vld [vmem:[%s1853_s29] sm:$0x7] }
 0x175   : >>> { %v1646_v45 = vpop.eup %1645 }
 0x176   : >>> { %584 = vst [vmem:[%s583_s14] sm:$0xff] %v1646_v45  ;;  %v574_v46 = vmul.f32 %v1646_v45, %v570_v39  ;;  %s615_s14 = smov [#allocation32] }
 0x178   : >>> { %586 = vst [vmem:[%s585_s15] sm:$0xff] %v574_v46  ;;  %s1855_s15 = smov [#allocation21] }
 0x179   : >>> { %v626_v54 = vld [vmem:[%s1855_s15] sm:$0x7] }
 0x17d   : >>> { %v588_v47 = vld [vmem:[%s587_s16] ss:$0 sm:$0xff]  ;;  %s1859_s16 = smov [#allocation23] }
 0x17e   : >>> { %v597_v48 = vsel %vm596_vm12, %v588_v47, 0.0  ;;  %v628_v56 = vld [vmem:[%s1859_s16] sm:$0x7] }
 0x17f   : >>> { %598 = vadd.xlane.f32.xlu0 %v597_v48  ;;  %v603_v49 = vld [vmem:[%s602_s30] ss:$0 sm:$0xff]  ;;  %s1861_s30 = smov [#allocation12] }
 0x180   : >>> { %v612_v50 = vsel %vm611_vm13, %v603_v49, 0.0  ;;  %v849_v57 = vld [vmem:[%s1861_s30] sm:$0x7] }
 0x183   : >>> { %613 = vadd.xlane.f32.xlu0 %v612_v50 }
 0x208   : >>> { %v599_v51 = vpop.xlane.xlu0 %598 }
 0x209   : >>> { %601 = vst [vmem:[%s600_s21] sm:$0xff] %v599_v51  ;;  %s1865_s21 = smov [#allocation16] }
 0x20a   : >>> { %v851_v59 = vld [vmem:[%s1865_s21] sm:$0x7] }
 0x20c   : >>> { %v614_v52 = vpop.xlane.xlu0 %613 }
 0x20d   : >>> { %616 = vst [vmem:[%s615_s14] sm:$0xff] %v614_v52  ;;  %s1889_s14 = smov [#allocation23] }
 0x210   : >>> { %v618_v60 = vld [vmem:[%s617_s22] sm:$0xff]  ;;  %s1887_s22 = smov [#allocation22] }
 0x211   : >>> { %v842_v62 = vld [vmem:[%s841_s11] sm:$0xff]  ;;  %v629_v63 = vmul.f32 %v625_v53, %v618_v60  ;;  %v632_v0 = vmul.f32 %v626_v54, %v618_v60  ;;  %v636_v1 = vmul.f32 %v627_v55, %v618_v60  ;;  %v639_v2 = vmul.f32 %v628_v56, %v618_v60  ;;  %s1885_s11 = smov [#allocation12] }
 0x212   : >>> { %v853_v3 = vmul.f32 %v849_v57, %v842_v62  ;;  %v856_v4 = vmul.f32 %v850_v58, %v842_v62  ;;  %v860_v5 = vmul.f32 %v851_v59, %v842_v62  ;;  %v863_v8 = vmul.f32 %v852_v61, %v842_v62 }
 0x214   : >>> { %v620_v9 = vld [vmem:[%s619_s26] sm:$0xff]  ;;  %s647_s26 = smov [#allocation30] }
 0x215   : >>> { %v844_v10 = vld [vmem:[%s843_s25] sm:$0xff]  ;;  %v630_v11 = vmul.f32 %v627_v55, %v620_v9  ;;  %v633_v12 = vmul.f32 %v628_v56, %v620_v9  ;;  %v635_v13 = vmul.f32 %v625_v53, %v620_v9  ;;  %v638_v14 = vmul.f32 %v626_v54, %v620_v9  ;;  %s645_s25 = smov [#allocation29] }
 0x216   : >>> { %v854_v15 = vmul.f32 %v851_v59, %v844_v10  ;;  %v857_v16 = vmul.f32 %v852_v61, %v844_v10  ;;  %v859_v17 = vmul.f32 %v849_v57, %v844_v10  ;;  %v862_v18 = vmul.f32 %v850_v58, %v844_v10  ;;  %v646_v27 = vld [vmem:[%s645_s25] ss:$0 sm:$0xff]  ;;  %s674_s25 = smov [#allocation27] }
 0x217   : >>> { %v631_v19 = vsub.f32 %v629_v63, %v630_v11  ;;  %v634_v20 = vsub.f32 %v632_v0, %v633_v12  ;;  %v637_v21 = vadd.f32 %v636_v1, %v635_v13  ;;  %v640_v22 = vadd.f32 %v639_v2, %v638_v14  ;;  %v648_v28 = vld [vmem:[%s647_s26] ss:$0 sm:$0xff]  ;;  %s673_s26 = smov [#allocation20] }
 0x218   : >>> { %v855_v23 = vsub.f32 %v853_v3, %v854_v15  ;;  %v858_v24 = vsub.f32 %v856_v4, %v857_v16  ;;  %v861_v25 = vadd.f32 %v860_v5, %v859_v17  ;;  %v864_v26 = vadd.f32 %v863_v8, %v862_v18  ;;  %v681_v63 = vld [vmem:[%s674_s25] ss:$0 sm:$0xff]  ;;  %s917_s25 = sadd.s32 (%p474_p9), 1, %s1681_s17  }
 0x219   : >>> { %642 = vst [vmem:[%s1855_s15] sm:$0x7] %v634_v20  ;;  %644 = vst [vmem:[%s1859_s16] sm:$0x7] %v640_v22  ;;  %s1891_s15 = smov [#allocation20]  ;;  %s715_s16 = smov [#allocation28] }
 0x21a   : >>> { %641 = vst [vmem:[%s1853_s29] sm:$0x7] %v631_v19  ;;  %643 = vst [vmem:[%s1857_s24] sm:$0x7] %v637_v21  ;;  %s1893_s24 = smov [#allocation16]  ;;  %s1901_s29 = smov [#allocation21]  ;;  %v722_v59 = vld [vmem:[%s715_s16] ss:$0 sm:$0xff] }
 0x21b   : >>> { %865 = vst [vmem:[%s1861_s30] sm:$0x7] %v855_v23  ;;  %866 = vst [vmem:[%s1863_s23] sm:$0x7] %v858_v24  ;;  %s1895_s23 = smov [#allocation14]  ;;  %s701_s30 = smov [#allocation22] }
 0x21c   : >>> { %867 = vst [vmem:[%s1865_s21] sm:$0x7] %v861_v25  ;;  %868 = vst [vmem:[%s1869_s27] sm:$0x7] %v864_v26  ;;  %s1899_s27 = smov [#allocation18]  ;;  %s714_s21 = smov [#allocation23] }
 0x21d   : >>> { %s817_s16 = smov [#allocation21]  ;;  %p470_p10 = scmp.ge.s32.totalorder (%p474_p9), %s917_s25, 15 }
 0x21e   : >> { %s2079_s17 = smov (%p474_p9), %s917_s25 }
 0x220   : >>> { %v656_v30 = vld [vmem:[%s1889_s14] sm:$0x7] }
 0x221   : >>> { %v655_v29 = vld [vmem:[%s1887_s22] sm:$0x7]  ;;  %v664_v36 = vmul.f32 %v656_v30, %v648_v28  ;;  %v667_v42 = vmul.f32 %v656_v30, %v646_v27 }
 0x222   : >>> { %v653_v31 = vld [vmem:[%s1891_s15] sm:$0x7]  ;;  %v663_v35 = vmul.f32 %v655_v29, %v646_v27  ;;  %v666_v37 = vmul.f32 %v655_v29, %v648_v28 }
 0x223   : >>> { %v871_v32 = vld [vmem:[%s1885_s11] ss:$0 sm:$0xff]  ;;  %v1567_v34 = vld [vmem:[%s1885_s11 + $0x2] ss:$0 sm:$0xff]  ;;  %v657_v48 = vmul.f32 %v653_v31, %v646_v27  ;;  %v660_v49 = vmul.f32 %v653_v31, %v648_v28 }
 0x224   : >>> { %v1566_v33 = vld [vmem:[%s1885_s11 - $0x1] sm:$0x6]  ;;  %v1571_v45 = vld [vmem:[%s1895_s23 + $0x2] ss:$0 sm:$0xff]  ;;  %v665_v47 = vsub.f32 %v663_v35, %v664_v36  ;;  %v668_v53 = vadd.f32 %v667_v42, %v666_v37 }
 0x225   : >>> { %v878_v38 = vsel %vm801_vm14, %v871_v32, %v1566_v33  ;;  %v882_v39 = vld [vmem:[%s1893_s24] ss:$0 sm:$0xff]  ;;  %v1569_v40 = vld [vmem:[%s1893_s24 + $0x1] sm:$0x3] }
 0x226   : >>> { %v895_v41 = vld [vmem:[%s1895_s23] ss:$0 sm:$0xff]  ;;  %881 = vst [vmem:[%s1885_s11] sm:$0x7] %v878_v38  ;;  %v890_v43 = vsel %vm813_vm15, %v1567_v34, %v1569_v40  ;;  %v1573_v51 = vld [vmem:[%s1899_s27 + $0x1] sm:$0x3]  ;;  %671 = vst [vmem:[%s1887_s22] sm:$0x7] %v665_v47 }
 0x227   : >>> { %v1570_v44 = vld [vmem:[%s1895_s23 - $0x1] sm:$0x6]  ;;  %1568 = vst [vmem:[%s1885_s11 + $0x1] sm:$0x1] %v882_v39  ;;  %892 = vst [vmem:[%s1893_s24] sm:$0x7] %v890_v43  ;;  %v914_v54 = vsel %vm813_vm15, %v1571_v45, %v1573_v51  ;;  %s688_s11 = smov [#allocation21] }
 0x228   : >>> { %v906_v46 = vld [vmem:[%s1899_s27] ss:$0 sm:$0xff]  ;;  %v902_v50 = vsel %vm801_vm14, %v895_v41, %v1570_v44  ;;  %672 = vst [vmem:[%s1889_s14] sm:$0x7] %v668_v53  ;;  %s1943_s22 = smov [#allocation22]  ;;  %s1688_s14 = smov 1  }
 0x229   : >>> { %v654_v52 = vld [vmem:[%s1901_s29] sm:$0x7]  ;;  %905 = vst [vmem:[%s1895_s23] sm:$0x7] %v902_v50  ;;  %916 = vst [vmem:[%s1899_s27] sm:$0x7] %v914_v54  ;;  %s730_s24 = smov [#allocation21]  ;;  %s1946_s27 = smov [#allocation23] }
 0x22a   : >>> { %v658_v55 = vmul.f32 %v654_v52, %v648_v28  ;;  %v661_v56 = vmul.f32 %v654_v52, %v646_v27  ;;  %1572 = vst [vmem:[%s1895_s23 + $0x1] sm:$0x1] %v906_v46  ;;  %s1689_s23 = smov 127  }
 0x22c   : >>> { %v659_v57 = vsub.f32 %v657_v48, %v658_v55  ;;  %v662_v58 = vadd.f32 %v661_v56, %v660_v49 }
 0x22d   : >>> { %v708_v60 = vld [vmem:[%s701_s30] sm:$0x7] }
 0x22e   : >>> { %669 = vst [vmem:[%s1891_s15] sm:$0x7] %v659_v57  ;;  %670 = vst [vmem:[%s1901_s29] sm:$0x7] %v662_v58  ;;  %v712_v61 = vsel %vm711_vm0, 0.0, %v708_v60  ;;  %s729_s15 = smov [#allocation20]  ;;  %s793_s29 = smov [#allocation20] }
 0x22f   : >>> { %v723_v62 = vld [vmem:[%s714_s21] sm:$0x7]  ;;  %713 = vst [vmem:[%s701_s30] sm:$0x7] %v712_v61  ;;  %s794_s30 = smov [#allocation22] }
 0x230   : >>> { %v727_v0 = vsel %vm726_vm1, %v722_v59, %v723_v62 }
 0x231   : >>> { %728 = vst [vmem:[%s714_s21] sm:$0x7] %v727_v0  ;;  %s818_s21 = smov [#allocation23] }
 0x235   : >>> { %v682_v1 = vld [vmem:[%s673_s26] sm:$0x7] }
 0x236   : >>> { %v695_v2 = vld [vmem:[%s688_s11] sm:$0x7]  ;;  %v686_v3 = vsel %vm685_vm3, %v681_v63, %v682_v1 }
 0x237   : >>> { %v699_v4 = vsel %vm698_vm4, 0.0, %v695_v2  ;;  %687 = vst [vmem:[%s673_s26] sm:$0x7] %v686_v3  ;;  %v767_v5 = vld [vmem:[%s1943_s22] sm:$0x7]  ;;  %s382_s26 = smov (%p474_p9), [#allocation20] }
 0x238   : >>> { %700 = vst [vmem:[%s688_s11] sm:$0x7] %v699_v4  ;;  %768 = vrot.lane.b32.xlu0 %v767_v5, %s1688_s14  ;;  %v763_v11 = vld [vmem:[%s1946_s27] sm:$0x7]  ;;  %s401_s11 = smov (%p474_p9), [#allocation21] }
 0x239   : >>> { %v784_v12 = vld [vmem:[%s1946_s27] sm:$0x7] }
 0x23a   : >>> { %v766_v30 = vld [vmem:[%s1943_s22] sm:$0x7] }
 0x23e   : >>> { %v735_v8 = vld [vmem:[%s729_s15] sm:$0x7] }
 0x23f   : >>> { %736 = vrot.lane.b32.xlu1 %v735_v8, %s1688_s14  ;;  %v731_v9 = vld [vmem:[%s730_s24] sm:$0x7] }
 0x240   : >>> { %v752_v10 = vld [vmem:[%s730_s24] sm:$0x7] }
 0x241   : >>> { %v734_v18 = vld [vmem:[%s729_s15] sm:$0x7] }
 0x243   : >>> { %732 = vrot.lane.b32.xlu1 %v731_v9, %s1688_s14 }
 0x247   : >>> { %753 = vrot.lane.b32.xlu1 %v752_v10, %s1689_s23 }
 0x24b   : >>> { %764 = vrot.lane.b32.xlu1 %v763_v11, %s1688_s14  ;;  %s435_s14 = smov (%p474_p9), [#allocation23] }
 0x24f   : >>> { %785 = vrot.lane.b32.xlu1 %v784_v12, %s1689_s23 }
 0x2aa   : >>> { %v769_v20 = vpop.permute.xlu0 %768 }
 0x2ab   : >>> { %v773_v22 = vsel %vm740_vm5, %v767_v5, %v769_v20 }
 0x2b1   : >>> { %v737_v13 = vpop.permute.xlu1 %736 }
 0x2b2   : >>> { %v741_v14 = vsel %vm740_vm5, %v735_v8, %v737_v13 }
 0x2b5   : >>> { %v733_v15 = vpop.permute.xlu1 %732 }
 0x2b6   : >>> { %v745_v16 = vsel %vm744_vm6, %v733_v15, %v741_v14 }
 0x2b7   : >>> { %v751_v17 = vsel %vm1427_vm2, %v745_v16, 0.0 }
 0x2b8   : >>> { %759 = vst [vmem:[%s729_s15] sm:$0x7] %v751_v17 }
 0x2b9   : >>> { %v754_v19 = vpop.permute.xlu1 %753 }
 0x2ba   : >>> { %v758_v21 = vsel %vm757_vm7, %v734_v18, %v754_v19 }
 0x2bb   : >>> { %760 = vst [vmem:[%s730_s24] sm:$0x7] %v758_v21 }
 0x2bd   : >>> { %v765_v23 = vpop.permute.xlu1 %764 }
 0x2be   : >>> { %v777_v24 = vsel %vm744_vm6, %v765_v23, %v773_v22 }
 0x2bf   : >>> { %v795_v25 = vld [vmem:[%s793_s29] ss:$0 sm:$0xff]  ;;  %v1559_v27 = vld [vmem:[%s793_s29 + $0x2] ss:$0 sm:$0xff]  ;;  %v783_v29 = vsel %vm1427_vm2, %v777_v24, 0.0 }
 0x2c0   : >>> { %v1558_v26 = vld [vmem:[%s793_s29 - $0x1] sm:$0x6]  ;;  %791 = vst [vmem:[%s1943_s22] sm:$0x7] %v783_v29  ;;  %s418_s22 = smov (%p474_p9), [#allocation22] }
 0x2c1   : >>> { %v802_v28 = vsel %vm801_vm14, %v795_v25, %v1558_v26  ;;  %v786_v31 = vpop.permute.xlu1 %785 }
 0x2c2   : >>> { %805 = vst [vmem:[%s793_s29] sm:$0x7] %v802_v28  ;;  %v819_v32 = vld [vmem:[%s817_s16] ss:$0 sm:$0xff]  ;;  %v1563_v34 = vld [vmem:[%s817_s16 + $0x2] ss:$0 sm:$0xff]  ;;  %v790_v35 = vsel %vm757_vm7, %v766_v30, %v786_v31 }
 0x2c3   : >>> { %v1562_v33 = vld [vmem:[%s817_s16 - $0x1] sm:$0x6]  ;;  %792 = vst [vmem:[%s1946_s27] sm:$0x7] %v790_v35 }
 0x2c4   : >>> { %v826_v36 = vsel %vm801_vm14, %v819_v32, %v1562_v33 }
 0x2c5   : >>> { %829 = vst [vmem:[%s817_s16] sm:$0x7] %v826_v36 }
 0x2c7   : >>> { %v806_v37 = vld [vmem:[%s794_s30] ss:$0 sm:$0xff]  ;;  %v1561_v38 = vld [vmem:[%s794_s30 + $0x1] sm:$0x3] }
 0x2c8   : >>> { %1560 = vst [vmem:[%s793_s29 + $0x1] sm:$0x1] %v806_v37  ;;  %v814_v39 = vsel %vm813_vm15, %v1559_v27, %v1561_v38 }
 0x2c9   : >>> { %816 = vst [vmem:[%s794_s30] sm:$0x7] %v814_v39 }
 0x2ca   : >>> { %v830_v40 = vld [vmem:[%s818_s21] ss:$0 sm:$0xff]  ;;  %v1565_v41 = vld [vmem:[%s818_s21 + $0x1] sm:$0x3] }
 0x2cb   : >>> { %1564 = vst [vmem:[%s817_s16 + $0x1] sm:$0x1] %v830_v40  ;;  %v838_v42 = vsel %vm813_vm15, %v1563_v34, %v1565_v41 }
 0x2cc   : >>> { %840 = vst [vmem:[%s818_s21] sm:$0x7] %v838_v42  ;;  %476 = sbr.rel (!%p474_p9) target bundleno = 272 (0x110), region = 462 }
 0x2cf   : >> { %v388_v43 = vld [vmem:[%s382_s26] sm:$0x7] (%p474_p9) }
 0x2d0   : >> { %v389_v45 = vsel (%p474_p9), %vm1427_vm2, %v388_v43, 0.0  ;;  %v424_v47 = vld [vmem:[%s418_s22] sm:$0x7] (%p474_p9) }
 0x2d1   : >> { %v390_v49 = vmul.f32 %v389_v45, %v389_v45  ;;  %v425_v51 = vsel %vm1427_vm2, %v424_v47, 0.0 }
 0x2d2   : >> { %v407_v44 = vld [vmem:[%s401_s11] sm:$0x7]  ;;  %v426_v53 = vmul.f32 %v425_v51, %v425_v51 }
 0x2d3   : >> { %v408_v46 = vsel %vm1427_vm2, %v407_v44, 0.0  ;;  %v441_v48 = vld [vmem:[%s435_s14] sm:$0x7]  ;;  %v394_v56 = vsel %vm393_vm8, 0.0, %v390_v49 }
 0x2d4   : >> { %v409_v50 = vmul.f32 %v408_v46, %v408_v46  ;;  %v442_v52 = vsel %vm1427_vm2, %v441_v48, 0.0 }
 0x2d5   : >> { %v443_v55 = vmul.f32 %v442_v52, %v442_v52 }
 0x2d6   : >> { %v411_v54 = vadd.f32 %v409_v50, %v390_v49  ;;  %v410_v57 = vadd.f32 %v409_v50, %v394_v56 }
 0x2d7   : >> { %v447_v60 = vsel %vm446_vm9, 0.0, %v443_v55 }
 0x2d8   : >> { %v428_v58 = vadd.f32 %v426_v53, %v411_v54  ;;  %v427_v59 = vadd.f32 %v426_v53, %v410_v57 }
 0x2da   : >> { %v449_v61 = vadd.f32 %v443_v55, %v428_v58  ;;  %v448_v62 = vadd.f32 %v447_v60, %v427_v59 }
 0x2dc   : >> { %450 = vadd.xlane.f32.xlu0 %v449_v61 }
 0x2e0   : >> { %458 = vadd.xlane.f32.xlu0 %v448_v62 }
 0x365   : >> { %v451_v63 = vpop.xlane.xlu0 %450 }
 0x366   : >> { %v452_v0 = vrot.slane %v451_v63, 4 }
 0x368   : >> { %v453_v1 = vadd.f32 %v452_v0, %v451_v63 }
 0x369   : >> { %v459_v2 = vpop.xlane.xlu0 %458 }
 0x36a   : >> { %v454_v3 = vrot.slane %v453_v1, 2  ;;  %v460_v4 = vrot.slane %v459_v2, 4 }
 0x36c   : >> { %v461_v5 = vadd.f32 %v460_v4, %v459_v2  ;;  %v455_v8 = vadd.f32 %v454_v3, %v453_v1 }
 0x36e   : >> { %v462_v9 = vrot.slane %v461_v5, 2  ;;  %v456_v11 = vrot.slane %v455_v8, 1 }
 0x370   : >> { %v463_v10 = vadd.f32 %v462_v9, %v461_v5  ;;  %v457_v14 = vadd.f32 %v456_v11, %v455_v8 }
 0x372   : >> { %v464_v12 = vrot.slane %v463_v10, 1 }
 0x374   : >> { %v465_v13 = vadd.f32 %v464_v12, %v463_v10 }
 0x376   : >> { %1592 = vpush %v465_v13 }
 0x377   : >> { %1594 = vpush %v457_v14 }
 0x3a7   : >> { %s1593_s20 = spop %1592 }
 0x3a8   : >> { %s1595_s15 = spop %1594 }
 0x3a9   : >> { %s468_s24 = smul.f32 1e-10, %s1595_s15 }
 0x3ab   : >> { %p469_p11 = scmp.le.f32.partialorder %s1593_s20, %s468_s24 }
 0x3ad   : >> { %p471_p12 = por %p470_p10, %p469_p11 }
 0x3af   : > { %919 = sbr.rel (!%p471_p12) target bundleno = 271 (0x10f), region = 473 }
 0x3b4 PF: > { %s924_s23 = smov [#allocation20]  ;;  %v928_v6 = vmov %v1797_v6  ;;  %v931_v7 = vmov %v1799_v7  ;;  %v984_v15 = vld [vmem:[#allocation12] sm:$0xf]  ;;  %v992_v16 = vld [vmem:[#allocation14] sm:$0xf]  ;;  %s2080_s17 = scalar_lea.vmem [#allocation13], %s1793_s28 }
 0x3b5   : > { %v948_v6 = vmov %v1797_v6  ;;  %v951_v7 = vmov %v1799_v7  ;;  %v932_v17 = vld [vmem:[%s924_s23] sm:$0x7]  ;;  %vm935_vm10 = vcmp.eq.s32.totalorder %v931_v7, %v928_v6  ;;  %987 = vst [vmem:[%s2080_s17] sm:$0xf] %v984_v15  ;;  %s2081_s27 = scalar_lea.vmem [#allocation15], %s1793_s28  ;;  %v1000_v18 = vld [vmem:[#allocation16] sm:$0xf] }
 0x3b6   : > { %vm955_vm11 = vcmp.eq.s32.totalorder %v951_v7, %v948_v6  ;;  %995 = vst [vmem:[%s2081_s27] sm:$0xf] %v992_v16  ;;  %v936_v19 = vsel %vm935_vm10, %v932_v17, 0.0  ;;  %s944_s29 = smov [#allocation23]  ;;  %s2082_s16 = scalar_lea.vmem [#allocation17], %s1793_s28  ;;  %v1008_v20 = vld [vmem:[#allocation18] sm:$0xf] }
 0x3b7   : > { %1003 = vst [vmem:[%s2082_s16] sm:$0xf] %v1000_v18  ;;  %v937_v21 = vrot.slane %v936_v19, 4  ;;  %v952_v22 = vld [vmem:[%s944_s29] sm:$0x7]  ;;  %s2083_s30 = scalar_lea.vmem [#allocation19], %s1793_s28  ;;  %s920_s21 = sand.u32 7, %s1756_s12  }
 0x3b8   : > { %1011 = vst [vmem:[%s2083_s30] sm:$0xf] %v1008_v20  ;;  %v956_v23 = vsel %vm955_vm11, %v952_v22, 0.0  ;;  %s921_s25 = scalar_lea.vmem [#allocation8], %s920_s21  ;;  %s923_s26 = scalar_lea.vmem [#allocation10], %s920_s21 }
 0x3b9   : > { %v938_v24 = vadd.f32 %v937_v21, %v936_v19  ;;  %v957_v25 = vrot.slane %v956_v23, 4  ;;  %s925_s25 = smov %s921_s25  ;;  %s945_s26 = smov %s923_s26 }
 0x3ba   : > { %s2084_s11 = scalar_lea.vmem [#allocation9], %s1795_s18  ;;  %s2085_s22 = scalar_lea.vmem [#allocation11], %s1795_s18 }
 0x3bb   : > { %v939_v26 = vrot.slane %v938_v24, 2  ;;  %v958_v6 = vadd.f32 %v957_v25, %v956_v23  ;;  %s1039_s14 = sshrl.u32 (%p1770_p3), %s1756_s12, 3  ;;  %s2086_s20 = scalar_lea.vmem (%p1770_p3), [#allocation9], %s1795_s18 }
 0x3bc   : > { %s1580_s15 = sshll.u32 (%p1770_p3), %s1039_s14, 1 }
 0x3bd   : > { %v940_v7 = vadd.f32 %v939_v26, %v938_v24  ;;  %v959_v27 = vrot.slane %v958_v6, 2  ;;  %s1041_s17 = scalar_lea.vmem (%p1770_p3), %s2071_s4, %s1580_s15 }
 0x3bf   : > { %v941_v28 = vrot.slane %v940_v7, 1  ;;  %v960_v29 = vadd.f32 %v959_v27, %v958_v6 }
 0x3c1   : > { %v942_v30 = vadd.f32 %v941_v28, %v940_v7  ;;  %v961_v31 = vrot.slane %v960_v29, 1 }
 0x3c3   : > { %943 = vst [vmem:[%s925_s25] sm:$0x1] %v942_v30  ;;  %v962_v32 = vadd.f32 %v961_v31, %v960_v29 }
 0x3c5   : > { %963 = vst [vmem:[%s945_s26] sm:$0x1] %v962_v32 }
 0x3c9   : > { %1038 = sbr.rel (!%p1770_p3) target bundleno = 980 (0x3d4), region = 158 }
 0x3ca   : > { %v968_v33 = vld [vmem:[#allocation8] sm:$0x3] }
 0x3cb   : > { %971 = vst [vmem:[%s2084_s11] sm:$0x3] %v968_v33 }
 0x3cc   : > { %v976_v34 = vld [vmem:[#allocation10] sm:$0x3] }
 0x3cd   : > { %979 = vst [vmem:[%s2085_s22] sm:$0x3] %v976_v34 }
 0x3d2   : > { %v1058_v35 = vld [vmem:[%s2086_s20] sm:$0x3] }
 0x3d3   : > { %1059 = vst [vmem:[%s1041_s17] sm:$0x3] %v1058_v35 }
 0x3d4 PF: > { %1077 = sbr.rel (!%p1770_p3) target bundleno = 988 (0x3dc), region = 192  ;;  %s1078_s27 = sshrl.u32 (%p1770_p3), %s1756_s12, 3 }
 0x3d5   : > { %s2087_s29 = scalar_lea.vmem (%p1770_p3), [#allocation11], %s1795_s18  ;;  %s1581_s16 = sshll.u32 (%p1770_p3), %s1078_s27, 1 }
 0x3d6   : > { %s1080_s25 = scalar_lea.vmem (%p1770_p3), %s2072_s5, %s1581_s16 }
 0x3da   : > { %v1097_v36 = vld [vmem:[%s2087_s29] sm:$0x3] }
 0x3db   : > { %1098 = vst [vmem:[%s1080_s25] sm:$0x3] %v1097_v36 }
 0x3dc PF: > { %s1582_s26 = sshll.u32 %s1756_s12, 2  ;;  %s2088_s19 = scalar_lea.vmem [#allocation13], %s1793_s28 }
 0x3dd   : > { %v1132_v37 = vld [vmem:[%s2088_s19] sm:$0xf]  ;;  %s2089_s11 = scalar_lea.vmem [#allocation15], %s1793_s28  ;;  %s1115_s14 = scalar_lea.vmem %s2073_s6, %s1582_s26 }
 0x3de   : > { %v1167_v38 = vld [vmem:[%s2089_s11] sm:$0xf]  ;;  %s1150_s24 = scalar_lea.vmem %s2074_s7, %s1582_s26  ;;  %s2090_s23 = scalar_lea.vmem [#allocation17], %s1793_s28  ;;  %1133 = vst [vmem:[%s1115_s14] sm:$0xf] %v1132_v37 }
 0x3df   : > { %v1202_v39 = vld [vmem:[%s2090_s23] sm:$0xf]  ;;  %s2091_s17 = scalar_lea.vmem [#allocation19], %s1793_s28  ;;  %1168 = vst [vmem:[%s1150_s24] sm:$0xf] %v1167_v38  ;;  %s1185_s29 = scalar_lea.vmem %s2075_s8, %s1582_s26 }
 0x3e0   : > { %v1237_v40 = vld [vmem:[%s2091_s17] sm:$0xf]  ;;  %s1220_s21 = scalar_lea.vmem %s2076_s9, %s1582_s26  ;;  %1203 = vst [vmem:[%s1185_s29] sm:$0xf] %v1202_v39 }
 0x3e1   : > { %1238 = vst [vmem:[%s1220_s21] sm:$0xf] %v1237_v40 }
 0x3e2 PF: > { %s2092_s25 = sld [smem:[#allocation33_spill]]  ;;  %p13_p13 = scmp.ge.s32.totalorder %s1759_s13, 4  }
 0x3e3   : > { %s2093_s30 = smov %s1673_s10  ;;  %s2095_s11 = smov %s1759_s13 }
 0x3e4   :  { %15 = sbr.rel (!%p13_p13) target bundleno = 2 (0x2), region = 484 }
 0x3e8   : > { %s2094_s10 = smov %s2092_s25 }

// kernel: reverse
= control target key start
LH: loop header
LB: loop body
LE: loop exit
PB: predicated region body
PF: predicated region fallthrough
CT: control target
= control target key end

     0   :  { %v2_v0 = vlaneseq  ;;  %s112_s0 = inlined_call_operand.vmem [shape: f32[2,5], index: 0, kind: input, shape index: {}]   ;;  %s113_s1 = inlined_call_operand.vmem [shape: f32[2,5], index: 1, kind: output, shape index: {}]  }
   0x2   :  { %v3_v1 = vsub.s32 4, %v2_v0 }
   0x4   :  { %4 = vset.pattern.permute.xlu0 %v3_v1 }
   0x5   :  { %v21_v2 = vld [vmem:[%s112_s0] sm:$0x3] }
   0x6   :  { %22 = vst [vmem:[#allocation1] sm:$0x3] %v21_v2 }
   0xd   :  { %v41_v3 = vld [vmem:[#allocation1] sm:$0x3] }
   0xe   :  { %42 = vst [vmem:[#allocation0] sm:$0x3] %v41_v3 }
  0x15   :  { %v43_v4 = vld [vmem:[#allocation0] sm:$0xff] }
  0x16   :  { %44 = vperm.xlu0 %4, %v43_v4  }
  0x91   :  { %v45_v5 = vpop.permute.xlu0 %44 }
  0x92   :  { %46 = vst [vmem:[#allocation2] sm:$0xff] %v45_v5 }
  0x99   :  { %v51_v6 = vld [vmem:[#allocation2] sm:$0x3] }
  0x9a   :  { %54 = vst [vmem:[#allocation3] sm:$0x3] %v51_v6 }
  0xa1   :  { %v71_v7 = vld [vmem:[#allocation3] sm:$0x3] }
  0xa2   :  { %72 = vst [vmem:[%s113_s1] sm:$0x3] %v71_v7 }

// kernel: custom-call.19
= control target key start
LH: loop header
LB: loop body
LE: loop exit
PB: predicated region body
PF: predicated region fallthrough
CT: control target
= control target key end

     0   :  { %s651_s9 = smov 0   ;;  %s653_s10 = smov 0   ;;  %s801_s0 = inlined_call_operand.vmem [shape: f32[2,5,5], index: 0, kind: input, shape index: {}]   ;;  %s802_s1 = inlined_call_operand.vmem [shape: f32[2,5,5], index: 1, kind: output, shape index: {0}]   ;;  %s803_s2 = inlined_call_operand.vmem [shape: f32[2,5], index: 2, kind: output, shape index: {1}]  }
   0x1   :  { %s655_s11 = smov 0   ;;  %s657_s12 = smov 0  }
   0x2   :  { %s659_s13 = smov 0  }
   0x3 LB: > { %s28_s14 = sadd.s32 1, %s624_s12  ;;  %s506_s15 = sadd.s32 4294967295, %s628_s13   ;;  %s628_s13 = sphi %s659_s13, %s9_s13   ;;  %s624_s12 = sphi %s657_s12, %s810_s12   ;;  %s620_s11 = sphi %s655_s11, %s809_s11   ;;  %s616_s10 = sphi %s653_s10, %s808_s10   ;;  %s612_s9 = sphi %s651_s9, %s807_s9  }
   0x4   : > { %p30_p0 = scmp.ge.s32.totalorder %s28_s14, 2  ;;  %s33_s16 = ssub.s32 0, %s624_s12 }
   0x5   : > { %s508_s17 = smin.u32 %s624_s12, %s33_s16  ;;  %p57_p1 = scmp.ne.s32.totalorder %s616_s10, %s612_s9 }
   0x6   : > { %s812_s14 = smov (%p30_p0, %s28_s14), 0  ;;  %s35_s18 = sshrl.u32 %s508_s17, 3 }
   0x7   : > { %s39_s19 = ssub.s32 0, %s812_s14  ;;  %p58_p2 = scmp.eq.s32.totalorder %s506_s15, 1 }
   0x8   : > { %s509_s20 = smin.u32 %s39_s19, %s812_s14  ;;  %s47_s24 = sadd.s32 1, %s616_s10 }
   0x9   : > { %s41_s21 = sshrl.u32 %s509_s20, 3  ;;  %p686_p3 = por %p58_p2, %p57_p1 }
   0xa   : > { %s44_s23 = ssub.s32 %s35_s18, %s41_s21  ;;  %p511_p5 = scmp.ge.s32.totalorder %s628_s13, 2 }
   0xb   : > { %p45_p4 = scmp.eq.s32.totalorder %s44_s23, 0  ;;  %s82_s26 = sand.u32 (!%p511_p5), 1, %s628_s13  }
   0xc   : > { %80 = sbr.rel (%p511_p5) target bundleno = 19 (0x13), region = 16  ;;  %s513_s27 = sshll.u32 (!%p511_p5), %s624_s12, 3 }
   0xd   : > { %s692_s25 = scalar_select %p45_p4, %s616_s10, %s47_s24  }
   0xe   : > { %s512_s28 = sshll.u32 (!%p511_p5), %s82_s26, 3  ;;  %s88_s3 = scalar_lea.vmem (!%p511_p5), %s801_s0, %s513_s27 }
   0xf   : > { %s84_s4 = scalar_lea.vmem (!%p511_p5), [#allocation0], %s512_s28 }
  0x11   : > { %v117_v0 = vld [vmem:[%s88_s3] sm:$0xff] }
  0x12   : > { %118 = vst [vmem:[%s84_s4] sm:$0xff] %v117_v0 }
  0x13 PF: > { %p514_p6 = scmp.ge.s32.totalorder %s628_s13, 1  ;;  %p123_p7 = scmp.lt.s32.totalorder %s628_s13, 3 }
  0x15   : > { %p124_p8 = pnand %p514_p6, %p123_p7 }
  0x17   : > { %127 = sbr.rel (%p124_p8) target bundleno = 336 (0x150), region = 54 }
  0x1c   : > { %s130_s5 = sand.u32 1, %s506_s15   ;;  %s144_s6 = sand.u32 1, %s612_s9   ;;  %v634_v2 = vmov 0.0  }
  0x1d   : > { %s515_s7 = sshll.u32 %s130_s5, 3  ;;  %s703_s8 = sshll.u32 %s144_s6, 1 }
  0x1e   : > { %s153_s16 = sand.u32 7, %s620_s11   ;;  %s132_s17 = scalar_lea.vmem [#allocation0], %s515_s7 }
  0x1f   : > { %v155_v1 = vld [vmem:[%s132_s17] sm:$0xff]  ;;  %s706_s18 = scalar_lea.vmem [#allocation1], %s515_s7  ;;  %s709_s19 = scalar_lea.vmem [#allocation2], %s153_s16 }
  0x20   : > { %156 = vst [vmem:[%s706_s18] sm:$0xff] %v155_v1  ;;  %157 = vst [vmem:[%s709_s19] sm:$0x1] %v634_v2  ;;  %s146_s15 = scalar_lea.vmem [#allocation3], %s703_s8  ;;  %s713_s20 = smov 0  }
  0x21 LB: >> { %v165_v3 = vlaneseq  ;;  %v722_v5 = vstv %s632_s20  ;;  %s192_s9 = scalar_lea.vmem %s706_s18, %s632_s20 [#allocation1]  ;;  %s250_s21 = scalar_lea.vmem [#allocation4], %s632_s20  ;;  %v635_v59 = vmov 1.0   ;;  %s632_s20 = sphi %s713_s20, %s163_s20  }
  0x22   : >> { %s267_s23 = smov [#allocation4] }
  0x23   : >> { %v719_v4 = vshrl.u32 %v165_v3, 7  ;;  %v244_v48 = vand.u32 127, %v165_v3 }
  0x25   : >> { %vm169_vm0 = vcmp.gt.s32.totalorder %v719_v4, %v722_v5  ;;  %vm170_vm1 = vcmp.lt.s32.totalorder %v719_v4, 5  ;;  %v231_v4 = vmov %v719_v4  ;;  %vm740_vm12 = vcmp.eq.s32.totalorder %v244_v48, %v722_v5 }
  0x26   : >> { %vm171_vm2 = vmand %vm169_vm0, %vm170_vm1  ;;  %vm235_vm9 = vcmp.gt.s32.totalorder %v231_v4, %v722_v5  ;;  %vm236_vm10 = vcmp.lt.s32.totalorder %v231_v4, 5  ;;  %v270_v4 = vmov %v719_v4  ;;  %vm296_vm15 = vcmp.gt.s32.totalorder %v244_v48, %v722_v5 }
  0x27   : >> { %v164_v6 = vld [vmem:[%s706_s18] sm:$0xff]  ;;  %v193_v15 = vld [vmem:[%s192_s9] ss:$0 sm:$0xff]  ;;  %s228_s18 = smov %s706_s18  ;;  %vm237_vm11 = vmand %vm235_vm9, %vm236_vm10  ;;  %vm275_vm13 = vcmp.lt.s32.totalorder %v270_v4, 5  ;;  %v287_v4 = vmov %v719_v4 }
  0x28   : >> { %v172_v7 = vsel %vm171_vm2, %v164_v6, 0.0  ;;  %v194_v16 = vand.u32 2147483647, %v193_v15  ;;  %vm219_vm8 = vcmp.lt.f32.partialorder %v193_v15, 0.0  ;;  %v232_v45 = vld [vmem:[%s228_s18] sm:$0xff]  ;;  %s266_s18 = smov %s706_s18  ;;  %vm304_vm14 = vcmp.ge.s32.totalorder %v287_v4, %v722_v5 }
  0x29   : >> { %v173_v8 = vmul.f32 %v172_v7, %v172_v7  ;;  %v238_v49 = vsel %vm237_vm11, %v232_v45, 0.0  ;;  %v263_v60 = vld [vmem:[%s709_s19] ss:$0 sm:$0xff]  ;;  %vm305_vm0 = vmand %vm740_vm12, %vm304_vm14 }
  0x2a   : >> { %v195_v21 = vmax.f32 %v194_v16, 0.0  ;;  %v273_v63 = vld [vmem:[%s266_s18] sm:$0xff]  ;;  %s283_s18 = smov %s266_s18 }
  0x2b   : >> { %v174_v9 = vrot.slane %v173_v8, 4  ;;  %s308_s24 = scalar_lea.vmem %s283_s18, %s632_s20  ;;  %s163_s20 = sadd.s32 1, %s632_s20  }
  0x2c   : >> { %p160_p9 = scmp.ge.s32.totalorder %s163_s20, 5  }
  0x2d   : >> { %v175_v10 = vadd.f32 %v174_v9, %v173_v8  ;;  %s521_s26 = sshll.u32 (%p160_p9), %s620_s11, 3 }
  0x2e   : > { %s335_s29 = scalar_lea.vmem (%p160_p9), %s802_s1, %s521_s26 }
  0x2f   : >> { %v176_v11 = vrot.slane %v175_v10, 2 }
  0x31   : >> { %v177_v12 = vadd.f32 %v176_v11, %v175_v10 }
  0x33   : >> { %v178_v13 = vrot.slane %v177_v12, 1 }
  0x35   : >> { %v179_v14 = vadd.f32 %v178_v13, %v177_v12  ;;  %v294_v13 = vld [vmem:[%s283_s18] sm:$0xff] }
  0x37   : >> { %576 = vrsqrt.f32 %v179_v14  ;;  %vm182_vm3 = vcmp.eq.f32.partialorder %v179_v14, inf  ;;  %v185_v18 = vand.u32 2147483648, %v179_v14  ;;  %vm184_vm4 = vcmp.eq.f32.partialorder %v179_v14, 0.0 }
  0x44   : >> { %v577_v17 = vpop.eup %576 }
  0x45   : >> { %v181_v19 = vmul.f32 %v577_v17, %v179_v14 }
  0x47   : >> { %v183_v20 = vsel %vm182_vm3, %v179_v14, %v181_v19 }
  0x48   : >> { %v186_v22 = vsel %vm184_vm4, %v185_v18, %v183_v20 }
  0x49   : >> { %v196_v23 = vand.u32 2147483647, %v186_v22 }
  0x4b   : >> { %v197_v24 = vmax.f32 %v195_v21, %v196_v23 }
  0x4d   : >> { %578 = vrcp.f32 %v197_v24  ;;  %vm209_vm7 = vcmp.eq.f32.partialorder %v197_v24, 0.0 }
  0x5a   : >> { %v579_v25 = vpop.eup %578 }
  0x5b   : >> { %v199_v26 = vmul.f32 %v579_v25, %v194_v16  ;;  %v202_v27 = vmul.f32 0.0, %v579_v25  ;;  %v206_v28 = vmul.f32 %v579_v25, %v196_v23 }
  0x5d   : >> { %v200_v29 = vmul.f32 %v199_v26, %v199_v26  ;;  %v203_v30 = vmul.f32 %v202_v27, %v202_v27  ;;  %v207_v31 = vmul.f32 %v206_v28, %v206_v28 }
  0x5f   : >> { %v204_v32 = vadd.f32 %v203_v30, %v200_v29 }
  0x61   : >> { %v208_v33 = vadd.f32 %v207_v31, %v204_v32 }
  0x63   : >> { %580 = vrsqrt.f32 %v208_v33  ;;  %vm212_vm5 = vcmp.eq.f32.partialorder %v208_v33, inf  ;;  %v215_v35 = vand.u32 2147483648, %v208_v33  ;;  %vm214_vm6 = vcmp.eq.f32.partialorder %v208_v33, 0.0 }
  0x70   : >> { %v581_v34 = vpop.eup %580 }
  0x71   : >> { %v211_v36 = vmul.f32 %v581_v34, %v208_v33 }
  0x73   : >> { %v213_v37 = vsel %vm212_vm5, %v208_v33, %v211_v36 }
  0x74   : >> { %v216_v38 = vsel %vm214_vm6, %v215_v35, %v213_v37 }
  0x75   : >> { %v217_v39 = vmul.f32 %v216_v38, %v197_v24 }
  0x77   : >> { %v218_v40 = vsel %vm209_vm7, 0.0, %v217_v39 }
  0x78   : >> { %v220_v41 = vxor.u32 2147483648, %v218_v40 }
  0x7a   : >> { %v221_v42 = vsel %vm219_vm8, %v218_v40, %v220_v41 }
  0x7b   : >> { %v732_v43 = vsel %vm184_vm4, %v193_v15, %v221_v42  ;;  %582 = vrcp.f32 %v221_v42  ;;  %v222_v46 = vsub.f32 %v221_v42, %v193_v15 }
  0x7c   : >> { %v227_v44 = vsub.f32 %v193_v15, %v732_v43 }
  0x7e   : >> { %584 = vrcp.f32 %v227_v44 }
  0x88   : >> { %v583_v47 = vpop.eup %582 }
  0x89   : >> { %v224_v50 = vmul.f32 %v583_v47, %v222_v46 }
  0x8b   : >> { %v585_v51 = vpop.eup %584  ;;  %v226_v55 = vsel %vm184_vm4, 0.0, %v224_v50 }
  0x8c   : >> { %v240_v52 = vmul.f32 %v585_v51, %v238_v49  ;;  %v256_v57 = vsel %vm740_vm12, %v226_v55, 0.0 }
  0x8e   : >> { %v241_v54 = vsel %vm184_vm4, 0.0, %v240_v52 }
  0x8f   : >> { %v246_v56 = vsel %vm740_vm12, %v241_v54, 0.0 }
  0x90   : >> { %247 = vadd.xlane.f32.xlu0 %v246_v56 }
  0x94   : >> { %257 = vadd.xlane.f32.xlu0 %v256_v57 }
 0x119   : >> { %v248_v58 = vpop.xlane.xlu0 %247 }
 0x11a   : >> { %249 = vst [vmem:[#allocation4] sm:$0xff] %v248_v58 }
 0x11b   : >> { %251 = vst [vmem:[%s250_s21] sm:$0x1] %v635_v59 }
 0x11d   : >> { %v258_v61 = vpop.xlane.xlu0 %257 }
 0x11e   : >> { %v264_v62 = vsel %vm740_vm12, %v258_v61, %v263_v60 }
 0x11f   : >> { %265 = vst [vmem:[%s709_s19] sm:$0x1] %v264_v62 }
 0x122   : >> { %v272_v0 = vld [vmem:[%s267_s23] sm:$0xff]  ;;  %s284_s23 = smov %s267_s23 }
 0x123   : >> { %v274_v1 = vmul.f32 %v273_v63, %v272_v0  ;;  %v292_v12 = vld [vmem:[%s284_s23] sm:$0xff] }
 0x125   : >> { %v276_v2 = vsel %vm275_vm13, %v274_v1, 0.0 }
 0x126   : >> { %v277_v3 = vrot.slane %v276_v2, 4  ;;  %v320_v4 = vld [vmem:[#allocation2] sm:$0x3] (%p160_p9) }
 0x127   : > { %323 = vst [vmem:[%s146_s15] sm:$0x3] (%p160_p9), %v320_v4 }
 0x128   : >> { %v278_v6 = vadd.f32 %v277_v3, %v276_v2 }
 0x12a   : >> { %v279_v7 = vrot.slane %v278_v6, 2 }
 0x12c   : >> { %v280_v8 = vadd.f32 %v279_v7, %v278_v6 }
 0x12e   : >> { %v281_v9 = vrot.slane %v280_v8, 1 }
 0x130   : >> { %v282_v10 = vadd.f32 %v281_v9, %v280_v8 }
 0x132   : >> { %v288_v11 = vmul.f32 %v282_v10, %v258_v61 }
 0x134   : >> { %v293_v14 = vmul.f32 %v292_v12, %v288_v11 }
 0x136   : >> { %v297_v15 = vsub.f32 %v294_v13, %v293_v14 }
 0x138   : >> { %v298_v16 = vsel %vm296_vm15, %v297_v15, %v294_v13 }
 0x139   : >> { %v306_v17 = vsel %vm305_vm0, %v292_v12, %v298_v16 }
 0x13a   : >> { %307 = vst [vmem:[%s283_s18] sm:$0xff] %v306_v17 }
 0x13f   : > { %162 = sbr.rel (!%p160_p9) target bundleno = 33 (0x21), region = 175 }
 0x141   : >> { %v309_v18 = vld [vmem:[%s308_s24] ss:$0 sm:$0xff] }
 0x142   : >> { %v314_v19 = vsel %vm740_vm12, %v732_v43, %v309_v18 }
 0x143   : >> { %315 = vst [vmem:[%s308_s24] sm:$0x1] %v314_v19 }
 0x144   : > { %p372_p10 = scmp.lt.s32.totalorder (%p686_p3), %s620_s11, 0  ;;  %s373_s30 = ssub.s32 (%p686_p3), 0, %s620_s11  ;;  %v396_v20 = vld [vmem:[%s146_s15] sm:$0x3] (%p686_p3) }
 0x145   : > { %s522_s3 = smin.u32 (%p686_p3), %s620_s11, %s373_s30 }
 0x146   : > { %s375_s4 = sshrl.u32 (%p686_p3), %s522_s3, 3 }
 0x147   : > { %371 = sbr.rel (!%p686_p3) target bundleno = 336 (0x150), region = 99  ;;  %s376_s5 = ssub.s32 (%p686_p3), 0, %s375_s4 }
 0x14a   : > { %v364_v5 = vld [vmem:[%s706_s18] sm:$0xff] }
 0x14b   : > { %365 = vst [vmem:[%s335_s29] sm:$0xff] %v364_v5 }
 0x14c   : > { %s814_s5 = smov (!%p372_p10, %s376_s5), %s375_s4 }
 0x14d   : > { %s523_s6 = sshll.u32 %s814_s5, 1 }
 0x14e   : > { %s379_s17 = scalar_lea.vmem %s803_s2, %s523_s6 }
 0x14f   : > { %397 = vst [vmem:[%s379_s17] sm:$0x3] %v396_v20 }
 0x150 PF: > { %s9_s13 = sadd.s32 1, %s628_s13   ;;  %s807_s9 = smov %s616_s10 }
 0x151   : > { %p6_p11 = scmp.ge.s32.totalorder %s9_s13, 4   ;;  %s808_s10 = smov %s692_s25 }
 0x152   : > { %s809_s11 = smov %s624_s12  ;;  %s810_s12 = smov %s812_s14 }
 0x153   :  { %8 = sbr.rel (!%p6_p11) target bundleno = 3 (0x3), region = 186 }

// kernel: tapnet_forward.3
= control target key start
LH: loop header
LB: loop body
LE: loop exit
PB: predicated region body
PF: predicated region fallthrough
CT: control target
= control target key end

     0   :  { %s861_s15 = smov 0   ;;  %s962_s0 = inlined_call_operand.vmem [shape: bf16[2,2,8,32], index: 0, kind: input, shape index: {}]   ;;  %s963_s1 = inlined_call_operand.vmem [shape: f32[2,128,32], index: 1, kind: input, shape index: {}]   ;;  %s964_s2 = inlined_call_operand.vmem [shape: f32[2,128,32], index: 2, kind: input, shape index: {}]   ;;  %s965_s3 = inlined_call_operand.vmem [shape: f32[2,32,32], index: 3, kind: input, shape index: {}]   ;;  %s966_s4 = inlined_call_operand.vmem [shape: f32[2,8,128], index: 4, kind: output, shape index: {}]  }
   0x1 LB: > { %s707_s16 = sadd.s32 4294967295, %s832_s15   ;;  %p711_p0 = scmp.ge.s32.totalorder %s832_s15, 1  ;;  %s832_s15 = sphi %s861_s15, %s14_s15  }
   0x2   : > { %p192_p1 = scmp.lt.s32.totalorder %s832_s15, 3 }
   0x4   : > { %p193_p2 = pnand %p711_p0, %p192_p1 }
   0x5   : > { %p232_p3 = scmp.lt.s32.totalorder (!%p193_p2), %s707_s16, 1 }
   0x6   : > { %196 = sbr.rel (%p193_p2) target bundleno = 832 (0x340), region = 36 }
   0xb   : > { %v834_v0 = vmov 0.0   ;;  %vm835_vm0 = vmmov 0   ;;  %s968_s16 = smov (!%p232_p3, %s707_s16), 1  ;;  %vm351_vm1 = vcmask 261120  }
   0xc   : > { %764 = vmatprep.subr.bf16.mxu1 %v834_v0  ;;  %768 = vmatprep.mubr.msk.bf16.mxu1 %vm835_vm0, %v834_v0  ;;  %s735_s17 = sshll.u32 %s968_s16, 7  ;;  %s737_s18 = sshll.u32 %s968_s16, 5 }
   0xd   : > { %792 = vmatprep.subr.bf16.mxu0 %v834_v0  ;;  %808 = vmatprep.mubr.msk.bf16.mxu0 %vm835_vm0, %v834_v0  ;;  %s880_s21 = scalar_lea.vmem %s963_s1, %s735_s17  ;;  %s885_s24 = scalar_lea.vmem %s964_s2, %s735_s17 }
   0xe   : > { %s251_s27 = scalar_lea.vmem %s965_s3, %s737_s18  ;;  %s734_s28 = sshll.u32 %s968_s16, 3  ;;  %v264_v1 = vld [vmem:[%s880_s21] sm:$0xff]  ;;  %v265_v2 = vld [vmem:[%s880_s21 + $0x8] sm:$0xff]  ;;  %v266_v17 = vld [vmem:[%s880_s21 + $0x10] sm:$0xff] }
   0xf   : > { %v296_v3 = vld [vmem:[%s885_s24] sm:$0xff]  ;;  %v346_v4 = vld [vmem:[%s251_s27 + $0x10] sm:$0xff]  ;;  %v347_v5 = vld [vmem:[%s251_s27 + $0x18] sm:$0xff]  ;;  %s236_s5 = scalar_lea.vmem %s962_s0, %s734_s28  ;;  %v280_v7 = vmul.f32 0.5, %v264_v1  ;;  %v281_v8 = vmul.f32 0.5, %v265_v2  ;;  %v282_v29 = vmul.f32 0.5, %v266_v17  ;;  %s255_s8 = scalar_lea.vmem %s966_s4, %s734_s28 }
  0x10   : > { %v344_v6 = vld [vmem:[%s251_s27] sm:$0xff]  ;;  %v312_v9 = vmul.f32 0.5, %v296_v3  ;;  %v349_v10 = vpack.c.bf16 %v347_v5, %v346_v4  ;;  %v345_v11 = vld [vmem:[%s251_s27 + $0x8] sm:$0xff]  ;;  %v267_v18 = vld [vmem:[%s880_s21 + $0x18] sm:$0xff] }
  0x11   : > { %v739_v12 = vld [vmem:[%s236_s5] sm:$0xff]   ;;  %v297_v13 = vld [vmem:[%s885_s24 + $0x8] sm:$0xff]  ;;  %v348_v19 = vpack.c.bf16 %v345_v11, %v344_v6  ;;  %v298_v21 = vld [vmem:[%s885_s24 + $0x10] sm:$0xff]  ;;  %v283_v30 = vmul.f32 0.5, %v267_v18 }
  0x12   : > { %v740_v14 = vunpack.c.l.bf16 %v739_v12  ;;  %v741_v15 = vunpack.c.h.bf16 %v739_v12  ;;  %v313_v16 = vmul.f32 0.5, %v297_v13  ;;  %765 = vmatpush3.bf16.msra.mxu1 %v349_v10  ;;  %v328_v20 = vadd.f32 %v312_v9, %v280_v7  ;;  %v299_v22 = vld [vmem:[%s885_s24 + $0x18] sm:$0xff]  ;;  %v268_v23 = vld [vmem:[%s880_s21 + $0x20] sm:$0xff]  ;;  %v269_v26 = vld [vmem:[%s880_s21 + $0x28] sm:$0xff] }
  0x13   : > { %766 = vmatprep.subr.bf16.mxu1 %v834_v0  ;;  %v300_v27 = vld [vmem:[%s885_s24 + $0x20] sm:$0xff]  ;;  %v301_v28 = vld [vmem:[%s885_s24 + $0x28] sm:$0xff]  ;;  %v314_v32 = vmul.f32 0.5, %v298_v21  ;;  %v315_v33 = vmul.f32 0.5, %v299_v22  ;;  %v284_v34 = vmul.f32 0.5, %v268_v23  ;;  %v285_v36 = vmul.f32 0.5, %v269_v26 }
  0x14   : > { %v262_v24 = vadd.f32 %v741_v15, %v740_v14  ;;  %v329_v25 = vadd.f32 %v313_v16, %v281_v8  ;;  %v316_v37 = vmul.f32 0.5, %v300_v27  ;;  %v317_v38 = vmul.f32 0.5, %v301_v28  ;;  %v270_v42 = vld [vmem:[%s880_s21 + $0x30] sm:$0xff]  ;;  %v271_v43 = vld [vmem:[%s880_s21 + $0x38] sm:$0xff]  ;;  %v272_v48 = vld [vmem:[%s880_s21 + $0x40] sm:$0xff] }
  0x15   : > { %v330_v40 = vadd.f32 %v314_v32, %v282_v29  ;;  %v331_v41 = vadd.f32 %v315_v33, %v283_v30  ;;  %v302_v46 = vld [vmem:[%s885_s24 + $0x30] sm:$0xff]  ;;  %v303_v47 = vld [vmem:[%s885_s24 + $0x38] sm:$0xff]  ;;  %v273_v49 = vld [vmem:[%s880_s21 + $0x48] sm:$0xff]  ;;  %v286_v52 = vmul.f32 0.5, %v270_v42  ;;  %v287_v53 = vmul.f32 0.5, %v271_v43 }
  0x16   : > { %v263_v31 = vmul.f32 0.5, %v262_v24  ;;  %767 = vmatpush3.bf16.msra.mxu1 %v348_v19  ;;  %v395_v35 = vpack.c.bf16 %v329_v25, %v328_v20  ;;  %v332_v44 = vadd.f32 %v316_v37, %v284_v34  ;;  %v333_v45 = vadd.f32 %v317_v38, %v285_v36  ;;  %v304_v50 = vld [vmem:[%s885_s24 + $0x40] sm:$0xff]  ;;  %v305_v51 = vld [vmem:[%s885_s24 + $0x48] sm:$0xff]  ;;  %v274_v1 = vld [vmem:[%s880_s21 + $0x50] sm:$0xff] }
  0x17   : > { %772 = vmatprep.subr.bf16.mxu1 %v349_v10  ;;  %v396_v54 = vpack.c.bf16 %v331_v41, %v330_v40  ;;  %v318_v55 = vmul.f32 0.5, %v302_v46  ;;  %v319_v56 = vmul.f32 0.5, %v303_v47  ;;  %v288_v57 = vmul.f32 0.5, %v272_v48  ;;  %v275_v2 = vld [vmem:[%s880_s21 + $0x58] sm:$0xff]  ;;  %v306_v5 = vld [vmem:[%s885_s24 + $0x50] sm:$0xff]  ;;  %v276_v7 = vld [vmem:[%s880_s21 + $0x60] sm:$0xff] }
  0x18   : > { %v350_v39 = vpack.c.bf16 %v263_v31, %v263_v31  ;;  %v397_v58 = vpack.c.bf16 %v333_v45, %v332_v44  ;;  %v289_v59 = vmul.f32 0.5, %v273_v49  ;;  %v320_v60 = vmul.f32 0.5, %v304_v50  ;;  %v307_v6 = vld [vmem:[%s885_s24 + $0x58] sm:$0xff]  ;;  %v277_v8 = vld [vmem:[%s880_s21 + $0x68] sm:$0xff]  ;;  %v308_v9 = vld [vmem:[%s885_s24 + $0x60] sm:$0xff] }
  0x19   : > { %v321_v61 = vmul.f32 0.5, %v305_v51  ;;  %v334_v62 = vadd.f32 %v318_v55, %v286_v52  ;;  %v335_v63 = vadd.f32 %v319_v56, %v287_v53  ;;  %v290_v11 = vmul.f32 0.5, %v274_v1  ;;  %v278_v23 = vld [vmem:[%s880_s21 + $0x70] sm:$0xff]  ;;  %v279_v26 = vld [vmem:[%s880_s21 + $0x78] sm:$0xff] }
  0x1a   : > { %769 = vmatmul.mubr.msk.bf16.vlgmr.msra.gmra.mxu1 %vm351_vm1, %v350_v39  ;;  %v336_v3 = vadd.f32 %v320_v60, %v288_v57  ;;  %v291_v12 = vmul.f32 0.5, %v275_v2  ;;  %v322_v14 = vmul.f32 0.5, %v306_v5  ;;  %v323_v15 = vmul.f32 0.5, %v307_v6  ;;  %v310_v27 = vld [vmem:[%s885_s24 + $0x70] sm:$0xff]  ;;  %v311_v28 = vld [vmem:[%s885_s24 + $0x78] sm:$0xff] }
  0x1b   : > { %773 = vmatpush3.bf16.msra.mxu1 %v349_v10  ;;  %776 = vmatprep.mubr.msk.bf16.mxu1 %vm351_vm1, %v395_v35  ;;  %v337_v4 = vadd.f32 %v321_v61, %v289_v59  ;;  %v309_v10 = vld [vmem:[%s885_s24 + $0x68] sm:$0xff]  ;;  %v398_v13 = vpack.c.bf16 %v335_v63, %v334_v62  ;;  %v292_v16 = vmul.f32 0.5, %v276_v7  ;;  %v293_v18 = vmul.f32 0.5, %v277_v8 }
  0x1c   : > { %774 = vmatprep.subr.bf16.mxu1 %v348_v19  ;;  %v325_v20 = vmul.f32 0.5, %v309_v10  ;;  %v338_v21 = vadd.f32 %v322_v14, %v290_v11  ;;  %v339_v22 = vadd.f32 %v323_v15, %v291_v12  ;;  %v294_v29 = vmul.f32 0.5, %v278_v23 }
  0x1d   : > { %v399_v17 = vpack.c.bf16 %v337_v4, %v336_v3  ;;  %v295_v31 = vmul.f32 0.5, %v279_v26  ;;  %v326_v32 = vmul.f32 0.5, %v310_v27  ;;  %v327_v33 = vmul.f32 0.5, %v311_v28 }
  0x1e   : > { %v341_v25 = vadd.f32 %v325_v20, %v293_v18  ;;  %v400_v30 = vpack.c.bf16 %v339_v22, %v338_v21  ;;  %v600_v12 = vlaneseq }
  0x1f   : > { %775 = vmatpush3.bf16.msra.mxu1 %v348_v19  ;;  %v324_v19 = vmul.f32 0.5, %v308_v9  ;;  %v342_v35 = vadd.f32 %v326_v32, %v294_v29  ;;  %v343_v36 = vadd.f32 %v327_v33, %v295_v31 }
  0x21   : > { %v340_v24 = vadd.f32 %v324_v19, %v292_v16  ;;  %v402_v37 = vpack.c.bf16 %v343_v36, %v342_v35 }
  0x22   : > { %777 = vmatmul.mubr.msk.bf16.vlgmr.msra.gmra.mxu1 %vm351_vm1, %v396_v54 }
  0x23   : > { %780 = vmatprep.mubr.msk.bf16.mxu1 %vm351_vm1, %v397_v58  ;;  %v401_v34 = vpack.c.bf16 %v341_v25, %v340_v24 }
  0x2a   : > { %781 = vmatmul.mubr.msk.bf16.gmra.mxu1 %vm351_vm1, %v398_v13  ;;  %v601_v13 = vand.u32 127, %v600_v12 }
  0x2b   : > { %784 = vmatprep.mubr.msk.bf16.mxu1 %vm351_vm1, %v399_v17 }
  0x2c   : > { %vm602_vm2 = vcmp.lt.s32.totalorder %v601_v13, 5 }
  0x32   : > { %785 = vmatmul.mubr.msk.bf16.gmra.mxu1 %vm351_vm1, %v400_v30 }
  0x33   : > { %788 = vmatprep.mubr.msk.bf16.mxu1 %vm351_vm1, %v401_v34 }
  0x3a   : > { %789 = vmatmul.mubr.msk.bf16.gmra.mxu1 %vm351_vm1, %v402_v37 }
  0xda   : > { %v389_v38 = vpop.f32.mrf.mxu1 }
  0xdb   : > { %v524_v11 = vpack.c.bf16 %v389_v38, %v389_v38 }
  0xdc   : > { %v770_v39 = vpop.f32.mrf.mxu1 }
  0xde   : > { %v392_v40 = vpop.f32.mrf.mxu1 }
  0xe0   : > { %v771_v41 = vpop.f32.mrf.mxu1 }
  0xe2   : > { %v778_v42 = vpop.f32.mrf.mxu1 }
  0xe4   : > { %v461_v43 = vpop.f32.mrf.mxu1 }
  0xe6   : > { %v779_v44 = vpop.f32.mrf.mxu1 }
  0xe7   : > { %v526_v45 = vpack.c.bf16 %v779_v44, %v778_v42 }
  0xe8   : > { %v464_v46 = vpop.f32.mrf.mxu1 }
  0xe9   : > { %v525_v47 = vpack.c.bf16 %v464_v46, %v461_v43  ;;  %v540_v9 = vsel %vm351_vm1, %v526_v45, 0 }
  0xea   : > { %v782_v48 = vpop.f32.mrf.mxu1 }
  0xeb   : > { %v537_v10 = vsel %vm351_vm1, %v525_v47, 0 }
  0xec   : > { %v477_v49 = vpop.f32.mrf.mxu1 }
  0xee   : > { %v783_v50 = vpop.f32.mrf.mxu1 }
  0xef   : > { %v528_v5 = vpack.c.bf16 %v783_v50, %v782_v48 }
  0xf0   : > { %v480_v51 = vpop.f32.mrf.mxu1 }
  0xf1   : > { %v546_v6 = vsel %vm351_vm1, %v528_v5, 0  ;;  %v527_v7 = vpack.c.bf16 %v480_v51, %v477_v49 }
  0xf2   : > { %v786_v52 = vpop.f32.mrf.mxu1 }
  0xf3   : > { %v543_v8 = vsel %vm351_vm1, %v527_v7, 0 }
  0xf4   : > { %v493_v53 = vpop.f32.mrf.mxu1 }
  0xf6   : > { %v787_v54 = vpop.f32.mrf.mxu1 }
  0xf7   : > { %v530_v1 = vpack.c.bf16 %v787_v54, %v786_v52 }
  0xf8   : > { %v496_v55 = vpop.f32.mrf.mxu1 }
  0xf9   : > { %v552_v2 = vsel %vm351_vm1, %v530_v1, 0  ;;  %v529_v3 = vpack.c.bf16 %v496_v55, %v493_v53 }
  0xfa   : > { %v790_v56 = vpop.f32.mrf.mxu1 }
  0xfb   : > { %v549_v4 = vsel %vm351_vm1, %v529_v3, 0 }
  0xfc   : > { %v509_v57 = vpop.f32.mrf.mxu1 }
  0xfe   : > { %v791_v58 = vpop.f32.mrf.mxu1 }
  0xff   : > { %v532_v59 = vpack.c.bf16 %v791_v58, %v790_v56 }
 0x100   : > { %v512_v61 = vpop.f32.mrf.mxu1 }
 0x101   : > { %v558_v60 = vsel %vm351_vm1, %v532_v59, 0  ;;  %v531_v62 = vpack.c.bf16 %v512_v61, %v509_v57 }
 0x102   : > { %793 = vmatpush3.bf16.xpose.msra.mxu0 %v558_v60 }
 0x103   : > { %794 = vmatprep.subr.bf16.mxu0 %v834_v0  ;;  %v555_v63 = vsel %vm351_vm1, %v531_v62, 0 }
 0x10a   : > { %795 = vmatpush3.bf16.xpose.msra.mxu0 %v555_v63 }
 0x10b   : > { %796 = vmatprep.subr.bf16.mxu0 %v834_v0 }
 0x112   : > { %797 = vmatpush3.bf16.xpose.msra.mxu0 %v552_v2 }
 0x113   : > { %798 = vmatprep.subr.bf16.mxu0 %v834_v0 }
 0x11a   : > { %799 = vmatpush3.bf16.xpose.msra.mxu0 %v549_v4 }
 0x11b   : > { %800 = vmatprep.subr.bf16.mxu0 %v834_v0 }
 0x122   : > { %801 = vmatpush3.bf16.xpose.msra.mxu0 %v546_v6 }
 0x123   : > { %802 = vmatprep.subr.bf16.mxu0 %v834_v0 }
 0x12a   : > { %803 = vmatpush3.bf16.xpose.msra.mxu0 %v543_v8 }
 0x12b   : > { %804 = vmatprep.subr.bf16.mxu0 %v834_v0 }
 0x132   : > { %805 = vmatpush3.bf16.xpose.msra.mxu0 %v540_v9 }
 0x133   : > { %806 = vmatprep.subr.bf16.mxu0 %v834_v0 }
 0x13a   : > { %807 = vmatpush3.bf16.xpose.msra.mxu0 %v537_v10 }
 0x141   : > { %809 = vmatmul.mubr.msk.bf16.vlgmr.msra.gmra.mxu0 %vm351_vm1, %v524_v11 }
 0x201   : > { %v594_v14 = vpop.f32.mrf.mxu0 }
 0x202   : > { %v603_v15 = vsub.f32 0.0, %v594_v14  ;;  %v615_v26 = vmul.f32 2.0, %v594_v14 }
 0x203   : > { %v810_v16 = vpop.f32.mrf.mxu0 }
 0x204   : > { %v604_v17 = vsel %vm602_vm2, %v603_v15, -inf }
 0x205   : > { %605 = vmax.xlane.f32.xlu0 %v604_v17  ;;  %v597_v18 = vpop.f32.mrf.mxu0 }
 0x207   : > { %v811_v19 = vpop.f32.mrf.mxu0 }
 0x28e   : > { %v606_v20 = vpop.xlane.xlu0 %605 }
 0x28f   : > { %v607_v21 = vsub.f32 %v604_v17, %v606_v20 }
 0x291   : > { %v608_v0 = vmul.f32 1.442695, %v607_v21 }
 0x293   : > { %822 = vpow2.f32 %v608_v0 }
 0x2a0   : > { %v823_v22 = vpop.eup %822 }
 0x2a1   : > { %610 = vadd.xlane.f32.xlu0 %v823_v22 }
 0x32a   : > { %v611_v23 = vpop.xlane.xlu0 %610 }
 0x32b   : > { %824 = vlog2.f32 %v611_v23 }
 0x338   : > { %v825_v24 = vpop.eup %824 }
 0x339   : > { %v613_v25 = vmul.f32 0.6931472, %v825_v24 }
 0x33b   : > { %v614_v27 = vadd.f32 %v613_v25, %v606_v20 }
 0x33d   : > { %v616_v28 = vadd.f32 %v615_v26, %v614_v27 }
 0x33f   : > { %617 = vst [vmem:[%s255_s8] sm:$0xff] %v616_v28 }
 0x340 PF: > { %s14_s15 = sadd.s32 1, %s832_s15  }
 0x341   : > { %p11_p4 = scmp.ge.s32.totalorder %s14_s15, 4  }
 0x343   :  { %13 = sbr.rel (!%p11_p4) target bundleno = 1 (0x1), region = 76 }

</bundles_post_ra>
